<compile_context>
chip_gen: v6e
topology: v6e:2x2x1
jax: 0.10.0
libtpu: 0.0.40
codegen_flags: <defaults>
</compile_context>

<pallas_src>
import functools

import jax
import jax.numpy as jnp
from jax.experimental import pallas as pl
from jax.experimental.pallas import tpu as pltpu


# Compute dtype for MXU inputs / inter-layer activations.  Set to jnp.float32
# to force full-precision compute everywhere.
COMPUTE_DTYPE = jnp.bfloat16


def _itemsize(x):
    return jnp.dtype(x.dtype).itemsize


def _pick_col_tile(p):
    """Lane (column) tile for a length-p pixel axis (keeps VMEM bounded)."""
    if p <= 512:
        return p
    for t in (512, 256, 128):
        if p % t == 0:
            return t
    return p


def _row_tile(n, cap=8):
    """Largest divisor of n that is <= cap (avoids pad/slice around kernels)."""
    for t in range(min(n, cap), 0, -1):
        if n % t == 0:
            return t
    return 1


# ---------------------------------------------------------------------------
# Pallas kernel 1: channel-major conv matmul with fused affine / ReLU epilogue
#   out[n] = relu((W @ x[n]) * scale + shift),  scale/shift broadcast per row.
# ---------------------------------------------------------------------------
def _conv_mm_kernel(x_ref, w_ref, scale_ref, shift_ref, o_ref, *, relu):
    acc = jnp.dot(w_ref[...], x_ref[0], preferred_element_type=jnp.float32)
    acc = acc * scale_ref[...] + shift_ref[...]
    if relu:
        acc = jnp.maximum(acc, 0.0)
    o_ref[0] = acc.astype(o_ref.dtype)


def _conv_mm(x3, w2, scale, shift, relu, out_dtype=None):
    """x3: (N, K, P), w2: (Co, K) -> (N, Co, P); grid over (sample, pixel tile)."""
    N, K, P = x3.shape
    Co = w2.shape[0]
    out_dtype = out_dtype or x3.dtype
    w2 = w2.astype(x3.dtype)
    scale = scale.reshape(Co, 1).astype(jnp.float32)
    shift = shift.reshape(Co, 1).astype(jnp.float32)
    TN = _pick_col_tile(P)
    cost = pl.CostEstimate(
        flops=2 * N * Co * K * P,
        transcendentals=0,
        bytes_accessed=N * K * P * _itemsize(x3) + Co * K * _itemsize(x3)
        + N * Co * P * jnp.dtype(out_dtype).itemsize)
    return pl.pallas_call(
        functools.partial(_conv_mm_kernel, relu=relu),
        out_shape=jax.ShapeDtypeStruct((N, Co, P), out_dtype),
        grid=(N, P // TN),
        in_specs=[
            pl.BlockSpec((1, K, TN), lambda n, j: (n, 0, j)),
            pl.BlockSpec((Co, K), lambda n, j: (0, 0)),
            pl.BlockSpec((Co, 1), lambda n, j: (0, 0)),
            pl.BlockSpec((Co, 1), lambda n, j: (0, 0)),
        ],
        out_specs=pl.BlockSpec((1, Co, TN), lambda n, j: (n, 0, j)),
        compiler_params=pltpu.CompilerParams(
            dimension_semantics=("parallel", "parallel")),
        cost_estimate=cost,
    )(x3, w2, scale, shift)


def _fold_epilogue(bias, bn, co):
    """Fold conv bias + BatchNorm2d(eval, eps=1e-5) into a single (scale, shift)."""
    bias = (jnp.zeros((co,), jnp.float32) if bias is None
            else bias.astype(jnp.float32))
    if bn is None:
        return jnp.ones((co,), jnp.float32), bias
    scale = bn['gamma'] / jnp.sqrt(bn['var'] + 1e-5)
    shift = bn['beta'] - bn['mean'] * scale + bias * scale
    return scale, shift


def conv1x1(x, w, b, bn=None, relu=False, out_dtype=None):
    N, Ci, H, W = x.shape
    Co = w.shape[0]
    scale, shift = _fold_epilogue(b, bn, Co)
    y = _conv_mm(x.reshape(N, Ci, H * W), w.reshape(Co, Ci),
                 scale, shift, relu, out_dtype)
    return y.reshape(N, Co, H, W)


def conv3x3(x, w, b, bn=None, relu=False, out_dtype=None):
    """3x3 conv, stride 1, padding 1 via channel-major im2col (no NHWC transpose).

    TODO(synk): for large H*W replace the JAX-side im2col (9x HBM amplification)
    with in-kernel halo accumulation over 9 shifted slices.
    """
    N, Ci, H, W = x.shape
    Co = w.shape[0]
    scale, shift = _fold_epilogue(b, bn, Co)
    xp = jnp.pad(x, ((0, 0), (0, 0), (1, 1), (1, 1)))
    cols = [xp[:, :, ky:ky + H, kx:kx + W] for ky in range(3) for kx in range(3)]
    patches = jnp.stack(cols, axis=2).reshape(N, Ci * 9, H * W)  # row = i*9+ky*3+kx
    y = _conv_mm(patches, w.reshape(Co, Ci * 9), scale, shift, relu, out_dtype)
    return y.reshape(N, Co, H, W)


def deconv2x2(x, w, b, relu=True, out_dtype=None):
    """ConvTranspose2d(kernel=2, stride=2); w: (Ci, Co, 2, 2)."""
    N, Ci, H, W = x.shape
    Co = w.shape[1]
    wr = jnp.transpose(w, (1, 2, 3, 0)).reshape(Co * 4, Ci)      # rows: (o, dy, dx)
    scale = jnp.ones((Co * 4,), jnp.float32)
    shift = jnp.repeat(b.astype(jnp.float32), 4)
    y = _conv_mm(x.reshape(N, Ci, H * W), wr, scale, shift, relu, out_dtype)
    y = y.reshape(N, Co, 2, 2, H, W)
    return jnp.transpose(y, (0, 1, 4, 2, 5, 3)).reshape(N, Co, 2 * H, 2 * W)


# ---------------------------------------------------------------------------
# Pallas kernel 2: fused separable bilinear resize  out[nc] = Ah @ X[nc] @ Aw^T
# (PyTorch F.interpolate, mode='bilinear', align_corners=False)
# ---------------------------------------------------------------------------
def _interp_matrix(in_size, out_size):
    dst = jnp.arange(out_size, dtype=jnp.float32)
    src = (dst + 0.5) * (in_size / out_size) - 0.5
    src = jnp.maximum(src, 0.0)
    i0 = jnp.minimum(jnp.floor(src).astype(jnp.int32), in_size - 1)
    i1 = jnp.minimum(i0 + 1, in_size - 1)
    w1 = jnp.clip(src - i0.astype(jnp.float32), 0.0, 1.0)
    w0 = 1.0 - w1
    A = jnp.zeros((out_size, in_size), jnp.float32)
    A = A.at[jnp.arange(out_size), i0].add(w0)
    A = A.at[jnp.arange(out_size), i1].add(w1)
    return A                                              # (out_size, in_size)


def _resize_kernel(x_ref, ah_ref, awt_ref, o_ref):
    for b in range(x_ref.shape[0]):                       # small, unrolled
        t = jnp.dot(ah_ref[...], x_ref[b],
                    preferred_element_type=jnp.float32).astype(x_ref.dtype)
        o_ref[b] = jnp.dot(t, awt_ref[...],
                           preferred_element_type=jnp.float32).astype(o_ref.dtype)


def bilinear_resize(x, out_h, out_w, out_dtype=None):
    N, C, H, W = x.shape
    out_dtype = out_dtype or x.dtype
    if (H, W) == (out_h, out_w):
        return x.astype(out_dtype)                        # scale_factor==1 is identity
    Ah = _interp_matrix(H, out_h).astype(x.dtype)
    AwT = jnp.transpose(_interp_matrix(W, out_w)).astype(x.dtype)
    NC = N * C
    TB = _row_tile(NC, 8)
    y = pl.pallas_call(
        _resize_kernel,
        out_shape=jax.ShapeDtypeStruct((NC, out_h, out_w), out_dtype),
        grid=(NC // TB,),
        in_specs=[
            pl.BlockSpec((TB, H, W), lambda i: (i, 0, 0)),
            pl.BlockSpec((out_h, H), lambda i: (0, 0)),
            pl.BlockSpec((W, out_w), lambda i: (0, 0)),
        ],
        out_specs=pl.BlockSpec((TB, out_h, out_w), lambda i: (i, 0, 0)),
        compiler_params=pltpu.CompilerParams(dimension_semantics=("parallel",)),
    )(x.reshape(NC, H, W), Ah, AwT)
    return y.reshape(N, C, out_h, out_w)


# ---------------------------------------------------------------------------
# Pallas kernel 3: fused similarity bmm + softmax(dim=1) + fg global predict.
# Column-tiled over the target-pixel axis; the (HW, HW) similarity matrix is
# never materialised in HBM.  bg == 1 - fg is applied outside.
# ---------------------------------------------------------------------------
def _sim_predict_kernel(r_ref, x_ref, m_ref, fg_ref):
    s = jnp.dot(r_ref[0], x_ref[0], preferred_element_type=jnp.float32)  # (HW_r, TN)
    s = s - jnp.max(s, axis=0, keepdims=True)
    e = jnp.exp(s)
    p = e / jnp.sum(e, axis=0, keepdims=True)             # softmax over ref pixels
    fg_ref[0] = jnp.dot(m_ref[0], p, preferred_element_type=jnp.float32)  # (d, TN)


def similarity_fg_predict(r_feats, x_feats, box_masks):
    B, C, H, W = x_feats.shape
    HW = H * W
    d = box_masks.shape[1]
    r_flat = jnp.transpose(r_feats.reshape(B, C, HW), (0, 2, 1))   # (B, HW, C)
    x_flat = x_feats.reshape(B, C, HW)
    masks = box_masks.reshape(B, d, HW).astype(jnp.float32)
    TN = _pick_col_tile(HW)
    cost = pl.CostEstimate(
        flops=2 * B * HW * HW * C + 2 * B * d * HW * HW,
        transcendentals=B * HW * HW,
        bytes_accessed=2 * B * C * HW * _itemsize(x_flat)
        + B * d * HW * 4 + B * d * HW * 4)
    return pl.pallas_call(
        _sim_predict_kernel,
        out_shape=jax.ShapeDtypeStruct((B, d, HW), jnp.float32),
        grid=(B, HW // TN),
        in_specs=[
            pl.BlockSpec((1, HW, C), lambda b, j: (b, 0, 0)),
            pl.BlockSpec((1, C, TN), lambda b, j: (b, 0, j)),
            pl.BlockSpec((1, d, HW), lambda b, j: (b, 0, 0)),
        ],
        out_specs=pl.BlockSpec((1, d, TN), lambda b, j: (b, 0, j)),
        compiler_params=pltpu.CompilerParams(
            dimension_semantics=("parallel", "parallel")),
        cost_estimate=cost,
    )(r_flat, x_flat, masks)


# ---------------------------------------------------------------------------
# PropHead forward
# ---------------------------------------------------------------------------
def extract_feats(p, x_list):
    H, W = x_list[1].shape[2:]
    feats = [bilinear_resize(xi.astype(COMPUTE_DTYPE), H, W) for xi in x_list]
    x = jnp.concatenate(feats, axis=1)                     # (B, 4*Cin, H, W)
    # self.convs: 1x1 conv + BN + ReLU, 3x3 conv + BN + ReLU, 1x1 conv
    x = conv1x1(x, p['convs0_w'], p['convs0_b'], bn=p['convs_bn0'], relu=True)
    x = conv3x3(x, p['convs1_w'], p['convs1_b'], bn=p['convs_bn1'], relu=True)
    x = conv1x1(x, p['convs2_w'], p['convs2_b'], relu=False)
    return x                                               # (B, Co, H, W) bf16


def make_box_masks(boxes, H, W):
    """boxes: (B, d, 4) [x1,y1,x2,y2] in image coords; floor(box/8) rasterized
    with half-open intervals (matches the PyTorch slice assignment)."""
    rb = jnp.floor(boxes / 8.0).astype(jnp.int32)
    ys = jnp.arange(H)[None, None, :, None]
    xs = jnp.arange(W)[None, None, None, :]
    x1 = rb[..., 0][..., None, None]
    y1 = rb[..., 1][..., None, None]
    x2 = rb[..., 2][..., None, None]
    y2 = rb[..., 3][..., None, None]
    return ((ys >= y1) & (ys < y2) & (xs >= x1) & (xs < x2)).astype(jnp.float32)


def prop_head_forward(p, x_list, ref_x_list, ref_boxes):
    x_feats = extract_feats(p, x_list)                     # (B, Co, H, W)
    r_feats = extract_feats(p, ref_x_list)
    B, Co, H, W = x_feats.shape

    # TODO(synk): PyTorch allows a different number of boxes per image; here every
    # image carries the same (max) number of boxes to keep shapes static.
    d = ref_boxes.shape[1]
    masks = make_box_masks(ref_boxes, H, W)                # (B, d, H, W)

    # Fused similarity + softmax + fg predict.  Softmaxed similarity columns sum
    # to 1 and the masks are binary, so bg_pred == 1 - fg_pred exactly.
    fg = similarity_fg_predict(r_feats, x_feats, masks).reshape(B, d, H, W)

    fg8 = bilinear_resize(fg, 8 * H, 8 * W)                # (B, d, 8H, 8W) f32
    bg8 = 1.0 - fg8        # resize rows sum to 1 -> resize(1-fg) == 1 - resize(fg)
    fg_attnlist = [fg8[bi] for bi in range(B)]
    bg_attnlist = [bg8[bi] for bi in range(B)]

    # softmax over stacked {bg, fg} with bg = 1 - fg  ==  sigmoid(2*fg - 1)
    prop_attn = jax.nn.sigmoid(2.0 * fg8 - 1.0)

    attn = bilinear_resize(prop_attn.reshape(B * d, 1, 8 * H, 8 * W), H, W,
                           out_dtype=COMPUTE_DTYPE)        # (B*d, 1, H, W)
    # attention * feature broadcast multiply: tiny elementwise op, left in JAX so
    # XLA fuses it with the following im2col.
    x = attn.reshape(B, d, 1, H, W) * x_feats.reshape(B, 1, Co, H, W)
    x = x.reshape(B * d, Co, H, W)

    # TODO(synk): the mask head below could be fused into a single pallas_call
    # keeping the (Co, H, W) activation resident in VMEM across all stages.
    for i in range(4):                                     # mask_convs (conv + ReLU)
        x = conv3x3(x, p[f'mask{i}_w'], p[f'mask{i}_b'], relu=True)
    x = deconv2x2(x, p['up_w'], p['up_b'], relu=True)      # upsample + ReLU
    mask_pred = conv1x1(x, p['logits_w'], p['logits_b'], relu=False,
                        out_dtype=jnp.float32)
    mask_pred = bilinear_resize(mask_pred, 4 * mask_pred.shape[2],
                                4 * mask_pred.shape[3])
    return fg_attnlist, bg_attnlist, mask_pred


# ---------------------------------------------------------------------------
# Deterministic parameter initialization (synthetic, not a checkpoint load)
# ---------------------------------------------------------------------------
def init_params(key, conv_in_channels, conv_out_channels, num_classes):
    def nrm(k, shape, s=0.1):
        return s * jax.random.normal(k, shape, jnp.float32)

    keys = iter(jax.random.split(key, 32))
    ci, co = conv_in_channels, conv_out_channels
    bn_default = lambda c: dict(gamma=jnp.ones((c,), jnp.float32),
                                beta=jnp.zeros((c,), jnp.float32),
                                mean=jnp.zeros((c,), jnp.float32),
                                var=jnp.ones((c,), jnp.float32))
    p = {
        'convs0_w': nrm(next(keys), (co, 4 * ci, 1, 1)),
        'convs0_b': nrm(next(keys), (co,), 0.02),
        'convs_bn0': bn_default(co),
        'convs1_w': nrm(next(keys), (co, co, 3, 3)),
        'convs1_b': nrm(next(keys), (co,), 0.02),
        'convs_bn1': bn_default(co),
        'convs2_w': nrm(next(keys), (co, co, 1, 1)),
        'convs2_b': nrm(next(keys), (co,), 0.02),
        'up_w': nrm(next(keys), (co, co, 2, 2)),          # ConvTranspose2d (Ci, Co, 2, 2)
        'up_b': nrm(next(keys), (co,), 0.02),
        'logits_w': nrm(next(keys), (num_classes, co, 1, 1)),
        'logits_b': nrm(next(keys), (num_classes,), 0.02),
    }
    for i in range(4):
        p[f'mask{i}_w'] = nrm(next(keys), (co, co, 3, 3))
        p[f'mask{i}_b'] = nrm(next(keys), (co,), 0.02)
    return p


# ---------------------------------------------------------------------------
if __name__ == "__main__":
    B, Cin, Cout, NCLS = 2, 4, 8, 5
    H = W = 8                      # level-1 spatial resolution (feature stride 8)
    D = 2                          # boxes per image

    key = jax.random.PRNGKey(0)
    kp, k0, k1, k2, k3, r0, r1, r2, r3 = jax.random.split(key, 9)
    params = init_params(kp, Cin, Cout, NCLS)

    # FPN-style pyramid: level sizes 2H, H, H/2, H/4 (so extract_feats' 2**(idx-1)
    # rescaling brings all of them to (H, W)).
    x_list = [jax.random.normal(k0, (B, Cin, 2 * H, 2 * W), jnp.float32),
              jax.random.normal(k1, (B, Cin, H, W), jnp.float32),
              jax.random.normal(k2, (B, Cin, H // 2, W // 2), jnp.float32),
              jax.random.normal(k3, (B, Cin, H // 4, W // 4), jnp.float32)]
    ref_x_list = [jax.random.normal(r0, (B, Cin, 2 * H, 2 * W), jnp.float32),
                  jax.random.normal(r1, (B, Cin, H, W), jnp.float32),
                  jax.random.normal(r2, (B, Cin, H // 2, W // 2), jnp.float32),
                  jax.random.normal(r3, (B, Cin, H // 4, W // 4), jnp.float32)]

    # Reference boxes in image coordinates (image = 8H x 8W = 64 x 64).
    ref_boxes = jnp.array([[[4., 4., 36., 40.], [10., 16., 60., 56.]],
                           [[0., 0., 32., 32.], [20., 8., 52., 48.]]], jnp.float32)

    forward = jax.jit(prop_head_forward)
    fg_attnlist, bg_attnlist, mask_pred = forward(params, x_list, ref_x_list,
                                                  ref_boxes)

    jax.block_until_ready(mask_pred)
    for t in fg_attnlist + bg_attnlist:
        jax.block_until_ready(t)

    assert fg_attnlist[0].shape == (D, 8 * H, 8 * W)
    assert bg_attnlist[0].shape == (D, 8 * H, 8 * W)
    assert mask_pred.shape == (B * D, NCLS, 8 * H, 8 * W)
    print("KERNEL_OK")
</pallas_src>

<mosaic_0001>
module attributes {stable_mosaic.version = 11 : i64} {
  func.func private @main(%arg0: i32) attributes {dimension_semantics = [#tpu.dimension_semantics<core_parallel>], iteration_bounds = array<i64: 2>, tpu.core_type = #tpu.core_type<sc_scalar_subcore>, window_params = []} {
    return
  }
}

module attributes {stable_mosaic.version = 11 : i64} {
  func.func private @main(%arg0: i32) attributes {dimension_semantics = [#tpu.dimension_semantics<core_parallel>], iteration_bounds = array<i64: 2>, tpu.core_type = #tpu.core_type<sc_scalar_subcore>, window_params = []} {
    return
  }
}

module attributes {stable_mosaic.version = 11 : i64} {
  func.func @_resize_kernel(%arg0: i32, %arg1: memref<8x16x16xbf16, #tpu.memory_space<vmem>>, %arg2: memref<8x16xbf16, #tpu.memory_space<vmem>>, %arg3: memref<16x8xbf16, #tpu.memory_space<vmem>>, %arg4: memref<8x8x8xbf16, #tpu.memory_space<vmem>>) attributes {dimension_semantics = [#tpu.dimension_semantics<parallel>], iteration_bounds = array<i64: 1>, scalar_prefetch = 0 : i64, scratch_operands = 0 : i64, tpu.core_type = #tpu.core_type<tc>, window_params = [{transform_indices = @transform_0, window_bounds = array<i64: 8, 16, 16>}, {pipeline_mode = #tpu.pipeline_mode<synchronous>, transform_indices = @transform_1, window_bounds = array<i64: 8, 16>}, {pipeline_mode = #tpu.pipeline_mode<synchronous>, transform_indices = @transform_2, window_bounds = array<i64: 16, 8>}, {transform_indices = @transform_3, window_bounds = array<i64: 8, 8, 8>}]} {
    %c0 = arith.constant 0 : index
    %c0_0 = arith.constant 0 : index
    %0 = vector.load %arg2[%c0, %c0_0] : memref<8x16xbf16, #tpu.memory_space<vmem>>, vector<8x16xbf16>
    %c0_1 = arith.constant 0 : index
    %c0_2 = arith.constant 0 : index
    %c0_3 = arith.constant 0 : index
    %1 = vector.load %arg1[%c0_1, %c0_2, %c0_3] : memref<8x16x16xbf16, #tpu.memory_space<vmem>>, vector<1x16x16xbf16>
    %2 = vector.shape_cast %1 : vector<1x16x16xbf16> to vector<16x16xbf16>
    %cst = arith.constant dense<0.000000e+00> : vector<8x16xf32>
    %3 = tpu.matmul %0, %2, %cst {dimension_numbers = #tpu.dot_dimension_numbers<[1], [0], [0], [1], [0, 0, 1, 1], [], []>} : vector<8x16xbf16>, vector<16x16xbf16>, vector<8x16xf32> -> vector<8x16xf32>
    %4 = arith.truncf %3 : vector<8x16xf32> to vector<8x16xbf16>
    %c0_4 = arith.constant 0 : index
    %c0_5 = arith.constant 0 : index
    %5 = vector.load %arg3[%c0_4, %c0_5] : memref<16x8xbf16, #tpu.memory_space<vmem>>, vector<16x8xbf16>
    %cst_6 = arith.constant dense<0.000000e+00> : vector<8x8xf32>
    %6 = tpu.matmul %4, %5, %cst_6 {dimension_numbers = #tpu.dot_dimension_numbers<[1], [0], [0], [1], [0, 0, 1, 1], [], []>} : vector<8x16xbf16>, vector<16x8xbf16>, vector<8x8xf32> -> vector<8x8xf32>
    %7 = arith.truncf %6 : vector<8x8xf32> to vector<8x8xbf16>
    %c0_7 = arith.constant 0 : index
    %c0_8 = arith.constant 0 : index
    %c0_9 = arith.constant 0 : index
    %8 = vector.load %arg4[%c0_7, %c0_8, %c0_9] : memref<8x8x8xbf16, #tpu.memory_space<vmem>>, vector<1x8x8xbf16>
    %9 = vector.shape_cast %8 : vector<1x8x8xbf16> to vector<8x8xbf16>
    %10 = vector.shape_cast %7 : vector<8x8xbf16> to vector<1x8x8xbf16>
    tpu.vector_store %arg4[%c0_7, %c0_8, %c0_9], %10 {strides = array<i32>} : memref<8x8x8xbf16, #tpu.memory_space<vmem>>, vector<1x8x8xbf16>,
    %c0_10 = arith.constant 0 : index
    %c0_11 = arith.constant 0 : index
    %11 = vector.load %arg2[%c0_10, %c0_11] : memref<8x16xbf16, #tpu.memory_space<vmem>>, vector<8x16xbf16>
    %c1 = arith.constant 1 : index
    %c0_12 = arith.constant 0 : index
    %c0_13 = arith.constant 0 : index
    %12 = vector.load %arg1[%c1, %c0_12, %c0_13] : memref<8x16x16xbf16, #tpu.memory_space<vmem>>, vector<1x16x16xbf16>
    %13 = vector.shape_cast %12 : vector<1x16x16xbf16> to vector<16x16xbf16>
    %cst_14 = arith.constant dense<0.000000e+00> : vector<8x16xf32>
    %14 = tpu.matmul %11, %13, %cst_14 {dimension_numbers = #tpu.dot_dimension_numbers<[1], [0], [0], [1], [0, 0, 1, 1], [], []>} : vector<8x16xbf16>, vector<16x16xbf16>, vector<8x16xf32> -> vector<8x16xf32>
    %15 = arith.truncf %14 : vector<8x16xf32> to vector<8x16xbf16>
    %c0_15 = arith.constant 0 : index
    %c0_16 = arith.constant 0 : index
    %16 = vector.load %arg3[%c0_15, %c0_16] : memref<16x8xbf16, #tpu.memory_space<vmem>>, vector<16x8xbf16>
    %cst_17 = arith.constant dense<0.000000e+00> : vector<8x8xf32>
    %17 = tpu.matmul %15, %16, %cst_17 {dimension_numbers = #tpu.dot_dimension_numbers<[1], [0], [0], [1], [0, 0, 1, 1], [], []>} : vector<8x16xbf16>, vector<16x8xbf16>, vector<8x8xf32> -> vector<8x8xf32>
    %18 = arith.truncf %17 : vector<8x8xf32> to vector<8x8xbf16>
    %c1_18 = arith.constant 1 : index
    %c0_19 = arith.constant 0 : index
    %c0_20 = arith.constant 0 : index
    %19 = vector.load %arg4[%c1_18, %c0_19, %c0_20] : memref<8x8x8xbf16, #tpu.memory_space<vmem>>, vector<1x8x8xbf16>
    %20 = vector.shape_cast %19 : vector<1x8x8xbf16> to vector<8x8xbf16>
    %21 = vector.shape_cast %18 : vector<8x8xbf16> to vector<1x8x8xbf16>
    tpu.vector_store %arg4[%c1_18, %c0_19, %c0_20], %21 {strides = array<i32>} : memref<8x8x8xbf16, #tpu.memory_space<vmem>>, vector<1x8x8xbf16>,
    %c0_21 = arith.constant 0 : index
    %c0_22 = arith.constant 0 : index
    %22 = vector.load %arg2[%c0_21, %c0_22] : memref<8x16xbf16, #tpu.memory_space<vmem>>, vector<8x16xbf16>
    %c2 = arith.constant 2 : index
    %c0_23 = arith.constant 0 : index
    %c0_24 = arith.constant 0 : index
    %23 = vector.load %arg1[%c2, %c0_23, %c0_24] : memref<8x16x16xbf16, #tpu.memory_space<vmem>>, vector<1x16x16xbf16>
    %24 = vector.shape_cast %23 : vector<1x16x16xbf16> to vector<16x16xbf16>
    %cst_25 = arith.constant dense<0.000000e+00> : vector<8x16xf32>
    %25 = tpu.matmul %22, %24, %cst_25 {dimension_numbers = #tpu.dot_dimension_numbers<[1], [0], [0], [1], [0, 0, 1, 1], [], []>} : vector<8x16xbf16>, vector<16x16xbf16>, vector<8x16xf32> -> vector<8x16xf32>
    %26 = arith.truncf %25 : vector<8x16xf32> to vector<8x16xbf16>
    %c0_26 = arith.constant 0 : index
    %c0_27 = arith.constant 0 : index
    %27 = vector.load %arg3[%c0_26, %c0_27] : memref<16x8xbf16, #tpu.memory_space<vmem>>, vector<16x8xbf16>
    %cst_28 = arith.constant dense<0.000000e+00> : vector<8x8xf32>
    %28 = tpu.matmul %26, %27, %cst_28 {dimension_numbers = #tpu.dot_dimension_numbers<[1], [0], [0], [1], [0, 0, 1, 1], [], []>} : vector<8x16xbf16>, vector<16x8xbf16>, vector<8x8xf32> -> vector<8x8xf32>
    %29 = arith.truncf %28 : vector<8x8xf32> to vector<8x8xbf16>
    %c2_29 = arith.constant 2 : index
    %c0_30 = arith.constant 0 : index
    %c0_31 = arith.constant 0 : index
    %30 = vector.load %arg4[%c2_29, %c0_30, %c0_31] : memref<8x8x8xbf16, #tpu.memory_space<vmem>>, vector<1x8x8xbf16>
    %31 = vector.shape_cast %30 : vector<1x8x8xbf16> to vector<8x8xbf16>
    %32 = vector.shape_cast %29 : vector<8x8xbf16> to vector<1x8x8xbf16>
    tpu.vector_store %arg4[%c2_29, %c0_30, %c0_31], %32 {strides = array<i32>} : memref<8x8x8xbf16, #tpu.memory_space<vmem>>, vector<1x8x8xbf16>,
    %c0_32 = arith.constant 0 : index
    %c0_33 = arith.constant 0 : index
    %33 = vector.load %arg2[%c0_32, %c0_33] : memref<8x16xbf16, #tpu.memory_space<vmem>>, vector<8x16xbf16>
    %c3 = arith.constant 3 : index
    %c0_34 = arith.constant 0 : index
    %c0_35 = arith.constant 0 : index
    %34 = vector.load %arg1[%c3, %c0_34, %c0_35] : memref<8x16x16xbf16, #tpu.memory_space<vmem>>, vector<1x16x16xbf16>
    %35 = vector.shape_cast %34 : vector<1x16x16xbf16> to vector<16x16xbf16>
    %cst_36 = arith.constant dense<0.000000e+00> : vector<8x16xf32>
    %36 = tpu.matmul %33, %35, %cst_36 {dimension_numbers = #tpu.dot_dimension_numbers<[1], [0], [0], [1], [0, 0, 1, 1], [], []>} : vector<8x16xbf16>, vector<16x16xbf16>, vector<8x16xf32> -> vector<8x16xf32>
    %37 = arith.truncf %36 : vector<8x16xf32> to vector<8x16xbf16>
    %c0_37 = arith.constant 0 : index
    %c0_38 = arith.constant 0 : index
    %38 = vector.load %arg3[%c0_37, %c0_38] : memref<16x8xbf16, #tpu.memory_space<vmem>>, vector<16x8xbf16>
    %cst_39 = arith.constant dense<0.000000e+00> : vector<8x8xf32>
    %39 = tpu.matmul %37, %38, %cst_39 {dimension_numbers = #tpu.dot_dimension_numbers<[1], [0], [0], [1], [0, 0, 1, 1], [], []>} : vector<8x16xbf16>, vector<16x8xbf16>, vector<8x8xf32> -> vector<8x8xf32>
    %40 = arith.truncf %39 : vector<8x8xf32> to vector<8x8xbf16>
    %c3_40 = arith.constant 3 : index
    %c0_41 = arith.constant 0 : index
    %c0_42 = arith.constant 0 : index
    %41 = vector.load %arg4[%c3_40, %c0_41, %c0_42] : memref<8x8x8xbf16, #tpu.memory_space<vmem>>, vector<1x8x8xbf16>
    %42 = vector.shape_cast %41 : vector<1x8x8xbf16> to vector<8x8xbf16>
    %43 = vector.shape_cast %40 : vector<8x8xbf16> to vector<1x8x8xbf16>
    tpu.vector_store %arg4[%c3_40, %c0_41, %c0_42], %43 {strides = array<i32>} : memref<8x8x8xbf16, #tpu.memory_space<vmem>>, vector<1x8x8xbf16>,
    %c0_43 = arith.constant 0 : index
    %c0_44 = arith.constant 0 : index
    %44 = vector.load %arg2[%c0_43, %c0_44] : memref<8x16xbf16, #tpu.memory_space<vmem>>, vector<8x16xbf16>
    %c4 = arith.constant 4 : index
    %c0_45 = arith.constant 0 : index
    %c0_46 = arith.constant 0 : index
    %45 = vector.load %arg1[%c4, %c0_45, %c0_46] : memref<8x16x16xbf16, #tpu.memory_space<vmem>>, vector<1x16x16xbf16>
    %46 = vector.shape_cast %45 : vector<1x16x16xbf16> to vector<16x16xbf16>
    %cst_47 = arith.constant dense<0.000000e+00> : vector<8x16xf32>
    %47 = tpu.matmul %44, %46, %cst_47 {dimension_numbers = #tpu.dot_dimension_numbers<[1], [0], [0], [1], [0, 0, 1, 1], [], []>} : vector<8x16xbf16>, vector<16x16xbf16>, vector<8x16xf32> -> vector<8x16xf32>
    %48 = arith.truncf %47 : vector<8x16xf32> to vector<8x16xbf16>
    %c0_48 = arith.constant 0 : index
    %c0_49 = arith.constant 0 : index
    %49 = vector.load %arg3[%c0_48, %c0_49] : memref<16x8xbf16, #tpu.memory_space<vmem>>, vector<16x8xbf16>
    %cst_50 = arith.constant dense<0.000000e+00> : vector<8x8xf32>
    %50 = tpu.matmul %48, %49, %cst_50 {dimension_numbers = #tpu.dot_dimension_numbers<[1], [0], [0], [1], [0, 0, 1, 1], [], []>} : vector<8x16xbf16>, vector<16x8xbf16>, vector<8x8xf32> -> vector<8x8xf32>
    %51 = arith.truncf %50 : vector<8x8xf32> to vector<8x8xbf16>
    %c4_51 = arith.constant 4 : index
    %c0_52 = arith.constant 0 : index
    %c0_53 = arith.constant 0 : index
    %52 = vector.load %arg4[%c4_51, %c0_52, %c0_53] : memref<8x8x8xbf16, #tpu.memory_space<vmem>>, vector<1x8x8xbf16>
    %53 = vector.shape_cast %52 : vector<1x8x8xbf16> to vector<8x8xbf16>
    %54 = vector.shape_cast %51 : vector<8x8xbf16> to vector<1x8x8xbf16>
    tpu.vector_store %arg4[%c4_51, %c0_52, %c0_53], %54 {strides = array<i32>} : memref<8x8x8xbf16, #tpu.memory_space<vmem>>, vector<1x8x8xbf16>,
    %c0_54 = arith.constant 0 : index
    %c0_55 = arith.constant 0 : index
    %55 = vector.load %arg2[%c0_54, %c0_55] : memref<8x16xbf16, #tpu.memory_space<vmem>>, vector<8x16xbf16>
    %c5 = arith.constant 5 : index
    %c0_56 = arith.constant 0 : index
    %c0_57 = arith.constant 0 : index
    %56 = vector.load %arg1[%c5, %c0_56, %c0_57] : memref<8x16x16xbf16, #tpu.memory_space<vmem>>, vector<1x16x16xbf16>
    %57 = vector.shape_cast %56 : vector<1x16x16xbf16> to vector<16x16xbf16>
    %cst_58 = arith.constant dense<0.000000e+00> : vector<8x16xf32>
    %58 = tpu.matmul %55, %57, %cst_58 {dimension_numbers = #tpu.dot_dimension_numbers<[1], [0], [0], [1], [0, 0, 1, 1], [], []>} : vector<8x16xbf16>, vector<16x16xbf16>, vector<8x16xf32> -> vector<8x16xf32>
    %59 = arith.truncf %58 : vector<8x16xf32> to vector<8x16xbf16>
    %c0_59 = arith.constant 0 : index
    %c0_60 = arith.constant 0 : index
    %60 = vector.load %arg3[%c0_59, %c0_60] : memref<16x8xbf16, #tpu.memory_space<vmem>>, vector<16x8xbf16>
    %cst_61 = arith.constant dense<0.000000e+00> : vector<8x8xf32>
    %61 = tpu.matmul %59, %60, %cst_61 {dimension_numbers = #tpu.dot_dimension_numbers<[1], [0], [0], [1], [0, 0, 1, 1], [], []>} : vector<8x16xbf16>, vector<16x8xbf16>, vector<8x8xf32> -> vector<8x8xf32>
    %62 = arith.truncf %61 : vector<8x8xf32> to vector<8x8xbf16>
    %c5_62 = arith.constant 5 : index
    %c0_63 = arith.constant 0 : index
    %c0_64 = arith.constant 0 : index
    %63 = vector.load %arg4[%c5_62, %c0_63, %c0_64] : memref<8x8x8xbf16, #tpu.memory_space<vmem>>, vector<1x8x8xbf16>
    %64 = vector.shape_cast %63 : vector<1x8x8xbf16> to vector<8x8xbf16>
    %65 = vector.shape_cast %62 : vector<8x8xbf16> to vector<1x8x8xbf16>
    tpu.vector_store %arg4[%c5_62, %c0_63, %c0_64], %65 {strides = array<i32>} : memref<8x8x8xbf16, #tpu.memory_space<vmem>>, vector<1x8x8xbf16>,
    %c0_65 = arith.constant 0 : index
    %c0_66 = arith.constant 0 : index
    %66 = vector.load %arg2[%c0_65, %c0_66] : memref<8x16xbf16, #tpu.memory_space<vmem>>, vector<8x16xbf16>
    %c6 = arith.constant 6 : index
    %c0_67 = arith.constant 0 : index
    %c0_68 = arith.constant 0 : index
    %67 = vector.load %arg1[%c6, %c0_67, %c0_68] : memref<8x16x16xbf16, #tpu.memory_space<vmem>>, vector<1x16x16xbf16>
    %68 = vector.shape_cast %67 : vector<1x16x16xbf16> to vector<16x16xbf16>
    %cst_69 = arith.constant dense<0.000000e+00> : vector<8x16xf32>
    %69 = tpu.matmul %66, %68, %cst_69 {dimension_numbers = #tpu.dot_dimension_numbers<[1], [0], [0], [1], [0, 0, 1, 1], [], []>} : vector<8x16xbf16>, vector<16x16xbf16>, vector<8x16xf32> -> vector<8x16xf32>
    %70 = arith.truncf %69 : vector<8x16xf32> to vector<8x16xbf16>
    %c0_70 = arith.constant 0 : index
    %c0_71 = arith.constant 0 : index
    %71 = vector.load %arg3[%c0_70, %c0_71] : memref<16x8xbf16, #tpu.memory_space<vmem>>, vector<16x8xbf16>
    %cst_72 = arith.constant dense<0.000000e+00> : vector<8x8xf32>
    %72 = tpu.matmul %70, %71, %cst_72 {dimension_numbers = #tpu.dot_dimension_numbers<[1], [0], [0], [1], [0, 0, 1, 1], [], []>} : vector<8x16xbf16>, vector<16x8xbf16>, vector<8x8xf32> -> vector<8x8xf32>
    %73 = arith.truncf %72 : vector<8x8xf32> to vector<8x8xbf16>
    %c6_73 = arith.constant 6 : index
    %c0_74 = arith.constant 0 : index
    %c0_75 = arith.constant 0 : index
    %74 = vector.load %arg4[%c6_73, %c0_74, %c0_75] : memref<8x8x8xbf16, #tpu.memory_space<vmem>>, vector<1x8x8xbf16>
    %75 = vector.shape_cast %74 : vector<1x8x8xbf16> to vector<8x8xbf16>
    %76 = vector.shape_cast %73 : vector<8x8xbf16> to vector<1x8x8xbf16>
    tpu.vector_store %arg4[%c6_73, %c0_74, %c0_75], %76 {strides = array<i32>} : memref<8x8x8xbf16, #tpu.memory_space<vmem>>, vector<1x8x8xbf16>,
    %c0_76 = arith.constant 0 : index
    %c0_77 = arith.constant 0 : index
    %77 = vector.load %arg2[%c0_76, %c0_77] : memref<8x16xbf16, #tpu.memory_space<vmem>>, vector<8x16xbf16>
    %c7 = arith.constant 7 : index
    %c0_78 = arith.constant 0 : index
    %c0_79 = arith.constant 0 : index
    %78 = vector.load %arg1[%c7, %c0_78, %c0_79] : memref<8x16x16xbf16, #tpu.memory_space<vmem>>, vector<1x16x16xbf16>
    %79 = vector.shape_cast %78 : vector<1x16x16xbf16> to vector<16x16xbf16>
    %cst_80 = arith.constant dense<0.000000e+00> : vector<8x16xf32>
    %80 = tpu.matmul %77, %79, %cst_80 {dimension_numbers = #tpu.dot_dimension_numbers<[1], [0], [0], [1], [0, 0, 1, 1], [], []>} : vector<8x16xbf16>, vector<16x16xbf16>, vector<8x16xf32> -> vector<8x16xf32>
    %81 = arith.truncf %80 : vector<8x16xf32> to vector<8x16xbf16>
    %c0_81 = arith.constant 0 : index
    %c0_82 = arith.constant 0 : index
    %82 = vector.load %arg3[%c0_81, %c0_82] : memref<16x8xbf16, #tpu.memory_space<vmem>>, vector<16x8xbf16>
    %cst_83 = arith.constant dense<0.000000e+00> : vector<8x8xf32>
    %83 = tpu.matmul %81, %82, %cst_83 {dimension_numbers = #tpu.dot_dimension_numbers<[1], [0], [0], [1], [0, 0, 1, 1], [], []>} : vector<8x16xbf16>, vector<16x8xbf16>, vector<8x8xf32> -> vector<8x8xf32>
    %84 = arith.truncf %83 : vector<8x8xf32> to vector<8x8xbf16>
    %c7_84 = arith.constant 7 : index
    %c0_85 = arith.constant 0 : index
    %c0_86 = arith.constant 0 : index
    %85 = vector.load %arg4[%c7_84, %c0_85, %c0_86] : memref<8x8x8xbf16, #tpu.memory_space<vmem>>, vector<1x8x8xbf16>
    %86 = vector.shape_cast %85 : vector<1x8x8xbf16> to vector<8x8xbf16>
    %87 = vector.shape_cast %84 : vector<8x8xbf16> to vector<1x8x8xbf16>
    tpu.vector_store %arg4[%c7_84, %c0_85, %c0_86], %87 {strides = array<i32>} : memref<8x8x8xbf16, #tpu.memory_space<vmem>>, vector<1x8x8xbf16>,
    return
  }
  func.func @transform_0(%arg0: i32) -> (i32, i32, i32) {
    %c0_i32 = arith.constant 0 : i32
    %c0_i32_0 = arith.constant 0 : i32
    %c0_i32_1 = arith.constant 0 : i32
    return %arg0, %c0_i32, %c0_i32_0 : i32, i32, i32
  }
  func.func @transform_1(%arg0: i32) -> (i32, i32) {
    %c0_i32 = arith.constant 0 : i32
    %c0_i32_0 = arith.constant 0 : i32
    %c0_i32_1 = arith.constant 0 : i32
    return %c0_i32, %c0_i32_0 : i32, i32
  }
  func.func @transform_2(%arg0: i32) -> (i32, i32) {
    %c0_i32 = arith.constant 0 : i32
    %c0_i32_0 = arith.constant 0 : i32
    %c0_i32_1 = arith.constant 0 : i32
    return %c0_i32, %c0_i32_0 : i32, i32
  }
  func.func @transform_3(%arg0: i32) -> (i32, i32, i32) {
    %c0_i32 = arith.constant 0 : i32
    %c0_i32_0 = arith.constant 0 : i32
    %c0_i32_1 = arith.constant 0 : i32
    return %arg0, %c0_i32, %c0_i32_0 : i32, i32, i32
  }
}

module attributes {stable_mosaic.version = 11 : i64} {
  func.func @_resize_kernel(%arg0: i32, %arg1: memref<8x2x2xbf16, #tpu.memory_space<vmem>>, %arg2: memref<8x2xbf16, #tpu.memory_space<vmem>>, %arg3: memref<2x8xbf16, #tpu.memory_space<vmem>>, %arg4: memref<8x8x8xbf16, #tpu.memory_space<vmem>>) attributes {dimension_semantics = [#tpu.dimension_semantics<parallel>], iteration_bounds = array<i64: 1>, scalar_prefetch = 0 : i64, scratch_operands = 0 : i64, tpu.core_type = #tpu.core_type<tc>, window_params = [{transform_indices = @transform_0, window_bounds = array<i64: 8, 2, 2>}, {pipeline_mode = #tpu.pipeline_mode<synchronous>, transform_indices = @transform_1, window_bounds = array<i64: 8, 2>}, {pipeline_mode = #tpu.pipeline_mode<synchronous>, transform_indices = @transform_2, window_bounds = array<i64: 2, 8>}, {transform_indices = @transform_3, window_bounds = array<i64: 8, 8, 8>}]} {
    %c0 = arith.constant 0 : index
    %c0_0 = arith.constant 0 : index
    %0 = vector.load %arg2[%c0, %c0_0] : memref<8x2xbf16, #tpu.memory_space<vmem>>, vector<8x2xbf16>
    %c0_1 = arith.constant 0 : index
    %c0_2 = arith.constant 0 : index
    %c0_3 = arith.constant 0 : index
    %1 = vector.load %arg1[%c0_1, %c0_2, %c0_3] : memref<8x2x2xbf16, #tpu.memory_space<vmem>>, vector<1x2x2xbf16>
    %2 = vector.shape_cast %1 : vector<1x2x2xbf16> to vector<2x2xbf16>
    %cst = arith.constant dense<0.000000e+00> : vector<8x2xf32>
    %3 = tpu.matmul %0, %2, %cst {dimension_numbers = #tpu.dot_dimension_numbers<[1], [0], [0], [1], [0, 0, 1, 1], [], []>} : vector<8x2xbf16>, vector<2x2xbf16>, vector<8x2xf32> -> vector<8x2xf32>
    %4 = arith.truncf %3 : vector<8x2xf32> to vector<8x2xbf16>
    %c0_4 = arith.constant 0 : index
    %c0_5 = arith.constant 0 : index
    %5 = vector.load %arg3[%c0_4, %c0_5] : memref<2x8xbf16, #tpu.memory_space<vmem>>, vector<2x8xbf16>
    %cst_6 = arith.constant dense<0.000000e+00> : vector<8x8xf32>
    %6 = tpu.matmul %4, %5, %cst_6 {dimension_numbers = #tpu.dot_dimension_numbers<[1], [0], [0], [1], [0, 0, 1, 1], [], []>} : vector<8x2xbf16>, vector<2x8xbf16>, vector<8x8xf32> -> vector<8x8xf32>
    %7 = arith.truncf %6 : vector<8x8xf32> to vector<8x8xbf16>
    %c0_7 = arith.constant 0 : index
    %c0_8 = arith.constant 0 : index
    %c0_9 = arith.constant 0 : index
    %8 = vector.load %arg4[%c0_7, %c0_8, %c0_9] : memref<8x8x8xbf16, #tpu.memory_space<vmem>>, vector<1x8x8xbf16>
    %9 = vector.shape_cast %8 : vector<1x8x8xbf16> to vector<8x8xbf16>
    %10 = vector.shape_cast %7 : vector<8x8xbf16> to vector<1x8x8xbf16>
    tpu.vector_store %arg4[%c0_7, %c0_8, %c0_9], %10 {strides = array<i32>} : memref<8x8x8xbf16, #tpu.memory_space<vmem>>, vector<1x8x8xbf16>,
    %c0_10 = arith.constant 0 : index
    %c0_11 = arith.constant 0 : index
    %11 = vector.load %arg2[%c0_10, %c0_11] : memref<8x2xbf16, #tpu.memory_space<vmem>>, vector<8x2xbf16>
    %c1 = arith.constant 1 : index
    %c0_12 = arith.constant 0 : index
    %c0_13 = arith.constant 0 : index
    %12 = vector.load %arg1[%c1, %c0_12, %c0_13] : memref<8x2x2xbf16, #tpu.memory_space<vmem>>, vector<1x2x2xbf16>
    %13 = vector.shape_cast %12 : vector<1x2x2xbf16> to vector<2x2xbf16>
    %cst_14 = arith.constant dense<0.000000e+00> : vector<8x2xf32>
    %14 = tpu.matmul %11, %13, %cst_14 {dimension_numbers = #tpu.dot_dimension_numbers<[1], [0], [0], [1], [0, 0, 1, 1], [], []>} : vector<8x2xbf16>, vector<2x2xbf16>, vector<8x2xf32> -> vector<8x2xf32>
    %15 = arith.truncf %14 : vector<8x2xf32> to vector<8x2xbf16>
    %c0_15 = arith.constant 0 : index
    %c0_16 = arith.constant 0 : index
    %16 = vector.load %arg3[%c0_15, %c0_16] : memref<2x8xbf16, #tpu.memory_space<vmem>>, vector<2x8xbf16>
    %cst_17 = arith.constant dense<0.000000e+00> : vector<8x8xf32>
    %17 = tpu.matmul %15, %16, %cst_17 {dimension_numbers = #tpu.dot_dimension_numbers<[1], [0], [0], [1], [0, 0, 1, 1], [], []>} : vector<8x2xbf16>, vector<2x8xbf16>, vector<8x8xf32> -> vector<8x8xf32>
    %18 = arith.truncf %17 : vector<8x8xf32> to vector<8x8xbf16>
    %c1_18 = arith.constant 1 : index
    %c0_19 = arith.constant 0 : index
    %c0_20 = arith.constant 0 : index
    %19 = vector.load %arg4[%c1_18, %c0_19, %c0_20] : memref<8x8x8xbf16, #tpu.memory_space<vmem>>, vector<1x8x8xbf16>
    %20 = vector.shape_cast %19 : vector<1x8x8xbf16> to vector<8x8xbf16>
    %21 = vector.shape_cast %18 : vector<8x8xbf16> to vector<1x8x8xbf16>
    tpu.vector_store %arg4[%c1_18, %c0_19, %c0_20], %21 {strides = array<i32>} : memref<8x8x8xbf16, #tpu.memory_space<vmem>>, vector<1x8x8xbf16>,
    %c0_21 = arith.constant 0 : index
    %c0_22 = arith.constant 0 : index
    %22 = vector.load %arg2[%c0_21, %c0_22] : memref<8x2xbf16, #tpu.memory_space<vmem>>, vector<8x2xbf16>
    %c2 = arith.constant 2 : index
    %c0_23 = arith.constant 0 : index
    %c0_24 = arith.constant 0 : index
    %23 = vector.load %arg1[%c2, %c0_23, %c0_24] : memref<8x2x2xbf16, #tpu.memory_space<vmem>>, vector<1x2x2xbf16>
    %24 = vector.shape_cast %23 : vector<1x2x2xbf16> to vector<2x2xbf16>
    %cst_25 = arith.constant dense<0.000000e+00> : vector<8x2xf32>
    %25 = tpu.matmul %22, %24, %cst_25 {dimension_numbers = #tpu.dot_dimension_numbers<[1], [0], [0], [1], [0, 0, 1, 1], [], []>} : vector<8x2xbf16>, vector<2x2xbf16>, vector<8x2xf32> -> vector<8x2xf32>
    %26 = arith.truncf %25 : vector<8x2xf32> to vector<8x2xbf16>
    %c0_26 = arith.constant 0 : index
    %c0_27 = arith.constant 0 : index
    %27 = vector.load %arg3[%c0_26, %c0_27] : memref<2x8xbf16, #tpu.memory_space<vmem>>, vector<2x8xbf16>
    %cst_28 = arith.constant dense<0.000000e+00> : vector<8x8xf32>
    %28 = tpu.matmul %26, %27, %cst_28 {dimension_numbers = #tpu.dot_dimension_numbers<[1], [0], [0], [1], [0, 0, 1, 1], [], []>} : vector<8x2xbf16>, vector<2x8xbf16>, vector<8x8xf32> -> vector<8x8xf32>
    %29 = arith.truncf %28 : vector<8x8xf32> to vector<8x8xbf16>
    %c2_29 = arith.constant 2 : index
    %c0_30 = arith.constant 0 : index
    %c0_31 = arith.constant 0 : index
    %30 = vector.load %arg4[%c2_29, %c0_30, %c0_31] : memref<8x8x8xbf16, #tpu.memory_space<vmem>>, vector<1x8x8xbf16>
    %31 = vector.shape_cast %30 : vector<1x8x8xbf16> to vector<8x8xbf16>
    %32 = vector.shape_cast %29 : vector<8x8xbf16> to vector<1x8x8xbf16>
    tpu.vector_store %arg4[%c2_29, %c0_30, %c0_31], %32 {strides = array<i32>} : memref<8x8x8xbf16, #tpu.memory_space<vmem>>, vector<1x8x8xbf16>,
    %c0_32 = arith.constant 0 : index
    %c0_33 = arith.constant 0 : index
    %33 = vector.load %arg2[%c0_32, %c0_33] : memref<8x2xbf16, #tpu.memory_space<vmem>>, vector<8x2xbf16>
    %c3 = arith.constant 3 : index
    %c0_34 = arith.constant 0 : index
    %c0_35 = arith.constant 0 : index
    %34 = vector.load %arg1[%c3, %c0_34, %c0_35] : memref<8x2x2xbf16, #tpu.memory_space<vmem>>, vector<1x2x2xbf16>
    %35 = vector.shape_cast %34 : vector<1x2x2xbf16> to vector<2x2xbf16>
    %cst_36 = arith.constant dense<0.000000e+00> : vector<8x2xf32>
    %36 = tpu.matmul %33, %35, %cst_36 {dimension_numbers = #tpu.dot_dimension_numbers<[1], [0], [0], [1], [0, 0, 1, 1], [], []>} : vector<8x2xbf16>, vector<2x2xbf16>, vector<8x2xf32> -> vector<8x2xf32>
    %37 = arith.truncf %36 : vector<8x2xf32> to vector<8x2xbf16>
    %c0_37 = arith.constant 0 : index
    %c0_38 = arith.constant 0 : index
    %38 = vector.load %arg3[%c0_37, %c0_38] : memref<2x8xbf16, #tpu.memory_space<vmem>>, vector<2x8xbf16>
    %cst_39 = arith.constant dense<0.000000e+00> : vector<8x8xf32>
    %39 = tpu.matmul %37, %38, %cst_39 {dimension_numbers = #tpu.dot_dimension_numbers<[1], [0], [0], [1], [0, 0, 1, 1], [], []>} : vector<8x2xbf16>, vector<2x8xbf16>, vector<8x8xf32> -> vector<8x8xf32>
    %40 = arith.truncf %39 : vector<8x8xf32> to vector<8x8xbf16>
    %c3_40 = arith.constant 3 : index
    %c0_41 = arith.constant 0 : index
    %c0_42 = arith.constant 0 : index
    %41 = vector.load %arg4[%c3_40, %c0_41, %c0_42] : memref<8x8x8xbf16, #tpu.memory_space<vmem>>, vector<1x8x8xbf16>
    %42 = vector.shape_cast %41 : vector<1x8x8xbf16> to vector<8x8xbf16>
    %43 = vector.shape_cast %40 : vector<8x8xbf16> to vector<1x8x8xbf16>
    tpu.vector_store %arg4[%c3_40, %c0_41, %c0_42], %43 {strides = array<i32>} : memref<8x8x8xbf16, #tpu.memory_space<vmem>>, vector<1x8x8xbf16>,
    %c0_43 = arith.constant 0 : index
    %c0_44 = arith.constant 0 : index
    %44 = vector.load %arg2[%c0_43, %c0_44] : memref<8x2xbf16, #tpu.memory_space<vmem>>, vector<8x2xbf16>
    %c4 = arith.constant 4 : index
    %c0_45 = arith.constant 0 : index
    %c0_46 = arith.constant 0 : index
    %45 = vector.load %arg1[%c4, %c0_45, %c0_46] : memref<8x2x2xbf16, #tpu.memory_space<vmem>>, vector<1x2x2xbf16>
    %46 = vector.shape_cast %45 : vector<1x2x2xbf16> to vector<2x2xbf16>
    %cst_47 = arith.constant dense<0.000000e+00> : vector<8x2xf32>
    %47 = tpu.matmul %44, %46, %cst_47 {dimension_numbers = #tpu.dot_dimension_numbers<[1], [0], [0], [1], [0, 0, 1, 1], [], []>} : vector<8x2xbf16>, vector<2x2xbf16>, vector<8x2xf32> -> vector<8x2xf32>
    %48 = arith.truncf %47 : vector<8x2xf32> to vector<8x2xbf16>
    %c0_48 = arith.constant 0 : index
    %c0_49 = arith.constant 0 : index
    %49 = vector.load %arg3[%c0_48, %c0_49] : memref<2x8xbf16, #tpu.memory_space<vmem>>, vector<2x8xbf16>
    %cst_50 = arith.constant dense<0.000000e+00> : vector<8x8xf32>
    %50 = tpu.matmul %48, %49, %cst_50 {dimension_numbers = #tpu.dot_dimension_numbers<[1], [0], [0], [1], [0, 0, 1, 1], [], []>} : vector<8x2xbf16>, vector<2x8xbf16>, vector<8x8xf32> -> vector<8x8xf32>
    %51 = arith.truncf %50 : vector<8x8xf32> to vector<8x8xbf16>
    %c4_51 = arith.constant 4 : index
    %c0_52 = arith.constant 0 : index
    %c0_53 = arith.constant 0 : index
    %52 = vector.load %arg4[%c4_51, %c0_52, %c0_53] : memref<8x8x8xbf16, #tpu.memory_space<vmem>>, vector<1x8x8xbf16>
    %53 = vector.shape_cast %52 : vector<1x8x8xbf16> to vector<8x8xbf16>
    %54 = vector.shape_cast %51 : vector<8x8xbf16> to vector<1x8x8xbf16>
    tpu.vector_store %arg4[%c4_51, %c0_52, %c0_53], %54 {strides = array<i32>} : memref<8x8x8xbf16, #tpu.memory_space<vmem>>, vector<1x8x8xbf16>,
    %c0_54 = arith.constant 0 : index
    %c0_55 = arith.constant 0 : index
    %55 = vector.load %arg2[%c0_54, %c0_55] : memref<8x2xbf16, #tpu.memory_space<vmem>>, vector<8x2xbf16>
    %c5 = arith.constant 5 : index
    %c0_56 = arith.constant 0 : index
    %c0_57 = arith.constant 0 : index
    %56 = vector.load %arg1[%c5, %c0_56, %c0_57] : memref<8x2x2xbf16, #tpu.memory_space<vmem>>, vector<1x2x2xbf16>
    %57 = vector.shape_cast %56 : vector<1x2x2xbf16> to vector<2x2xbf16>
    %cst_58 = arith.constant dense<0.000000e+00> : vector<8x2xf32>
    %58 = tpu.matmul %55, %57, %cst_58 {dimension_numbers = #tpu.dot_dimension_numbers<[1], [0], [0], [1], [0, 0, 1, 1], [], []>} : vector<8x2xbf16>, vector<2x2xbf16>, vector<8x2xf32> -> vector<8x2xf32>
    %59 = arith.truncf %58 : vector<8x2xf32> to vector<8x2xbf16>
    %c0_59 = arith.constant 0 : index
    %c0_60 = arith.constant 0 : index
    %60 = vector.load %arg3[%c0_59, %c0_60] : memref<2x8xbf16, #tpu.memory_space<vmem>>, vector<2x8xbf16>
    %cst_61 = arith.constant dense<0.000000e+00> : vector<8x8xf32>
    %61 = tpu.matmul %59, %60, %cst_61 {dimension_numbers = #tpu.dot_dimension_numbers<[1], [0], [0], [1], [0, 0, 1, 1], [], []>} : vector<8x2xbf16>, vector<2x8xbf16>, vector<8x8xf32> -> vector<8x8xf32>
    %62 = arith.truncf %61 : vector<8x8xf32> to vector<8x8xbf16>
    %c5_62 = arith.constant 5 : index
    %c0_63 = arith.constant 0 : index
    %c0_64 = arith.constant 0 : index
    %63 = vector.load %arg4[%c5_62, %c0_63, %c0_64] : memref<8x8x8xbf16, #tpu.memory_space<vmem>>, vector<1x8x8xbf16>
    %64 = vector.shape_cast %63 : vector<1x8x8xbf16> to vector<8x8xbf16>
    %65 = vector.shape_cast %62 : vector<8x8xbf16> to vector<1x8x8xbf16>
    tpu.vector_store %arg4[%c5_62, %c0_63, %c0_64], %65 {strides = array<i32>} : memref<8x8x8xbf16, #tpu.memory_space<vmem>>, vector<1x8x8xbf16>,
    %c0_65 = arith.constant 0 : index
    %c0_66 = arith.constant 0 : index
    %66 = vector.load %arg2[%c0_65, %c0_66] : memref<8x2xbf16, #tpu.memory_space<vmem>>, vector<8x2xbf16>
    %c6 = arith.constant 6 : index
    %c0_67 = arith.constant 0 : index
    %c0_68 = arith.constant 0 : index
    %67 = vector.load %arg1[%c6, %c0_67, %c0_68] : memref<8x2x2xbf16, #tpu.memory_space<vmem>>, vector<1x2x2xbf16>
    %68 = vector.shape_cast %67 : vector<1x2x2xbf16> to vector<2x2xbf16>
    %cst_69 = arith.constant dense<0.000000e+00> : vector<8x2xf32>
    %69 = tpu.matmul %66, %68, %cst_69 {dimension_numbers = #tpu.dot_dimension_numbers<[1], [0], [0], [1], [0, 0, 1, 1], [], []>} : vector<8x2xbf16>, vector<2x2xbf16>, vector<8x2xf32> -> vector<8x2xf32>
    %70 = arith.truncf %69 : vector<8x2xf32> to vector<8x2xbf16>
    %c0_70 = arith.constant 0 : index
    %c0_71 = arith.constant 0 : index
    %71 = vector.load %arg3[%c0_70, %c0_71] : memref<2x8xbf16, #tpu.memory_space<vmem>>, vector<2x8xbf16>
    %cst_72 = arith.constant dense<0.000000e+00> : vector<8x8xf32>
    %72 = tpu.matmul %70, %71, %cst_72 {dimension_numbers = #tpu.dot_dimension_numbers<[1], [0], [0], [1], [0, 0, 1, 1], [], []>} : vector<8x2xbf16>, vector<2x8xbf16>, vector<8x8xf32> -> vector<8x8xf32>
    %73 = arith.truncf %72 : vector<8x8xf32> to vector<8x8xbf16>
    %c6_73 = arith.constant 6 : index
    %c0_74 = arith.constant 0 : index
    %c0_75 = arith.constant 0 : index
    %74 = vector.load %arg4[%c6_73, %c0_74, %c0_75] : memref<8x8x8xbf16, #tpu.memory_space<vmem>>, vector<1x8x8xbf16>
    %75 = vector.shape_cast %74 : vector<1x8x8xbf16> to vector<8x8xbf16>
    %76 = vector.shape_cast %73 : vector<8x8xbf16> to vector<1x8x8xbf16>
    tpu.vector_store %arg4[%c6_73, %c0_74, %c0_75], %76 {strides = array<i32>} : memref<8x8x8xbf16, #tpu.memory_space<vmem>>, vector<1x8x8xbf16>,
    %c0_76 = arith.constant 0 : index
    %c0_77 = arith.constant 0 : index
    %77 = vector.load %arg2[%c0_76, %c0_77] : memref<8x2xbf16, #tpu.memory_space<vmem>>, vector<8x2xbf16>
    %c7 = arith.constant 7 : index
    %c0_78 = arith.constant 0 : index
    %c0_79 = arith.constant 0 : index
    %78 = vector.load %arg1[%c7, %c0_78, %c0_79] : memref<8x2x2xbf16, #tpu.memory_space<vmem>>, vector<1x2x2xbf16>
    %79 = vector.shape_cast %78 : vector<1x2x2xbf16> to vector<2x2xbf16>
    %cst_80 = arith.constant dense<0.000000e+00> : vector<8x2xf32>
    %80 = tpu.matmul %77, %79, %cst_80 {dimension_numbers = #tpu.dot_dimension_numbers<[1], [0], [0], [1], [0, 0, 1, 1], [], []>} : vector<8x2xbf16>, vector<2x2xbf16>, vector<8x2xf32> -> vector<8x2xf32>
    %81 = arith.truncf %80 : vector<8x2xf32> to vector<8x2xbf16>
    %c0_81 = arith.constant 0 : index
    %c0_82 = arith.constant 0 : index
    %82 = vector.load %arg3[%c0_81, %c0_82] : memref<2x8xbf16, #tpu.memory_space<vmem>>, vector<2x8xbf16>
    %cst_83 = arith.constant dense<0.000000e+00> : vector<8x8xf32>
    %83 = tpu.matmul %81, %82, %cst_83 {dimension_numbers = #tpu.dot_dimension_numbers<[1], [0], [0], [1], [0, 0, 1, 1], [], []>} : vector<8x2xbf16>, vector<2x8xbf16>, vector<8x8xf32> -> vector<8x8xf32>
    %84 = arith.truncf %83 : vector<8x8xf32> to vector<8x8xbf16>
    %c7_84 = arith.constant 7 : index
    %c0_85 = arith.constant 0 : index
    %c0_86 = arith.constant 0 : index
    %85 = vector.load %arg4[%c7_84, %c0_85, %c0_86] : memref<8x8x8xbf16, #tpu.memory_space<vmem>>, vector<1x8x8xbf16>
    %86 = vector.shape_cast %85 : vector<1x8x8xbf16> to vector<8x8xbf16>
    %87 = vector.shape_cast %84 : vector<8x8xbf16> to vector<1x8x8xbf16>
    tpu.vector_store %arg4[%c7_84, %c0_85, %c0_86], %87 {strides = array<i32>} : memref<8x8x8xbf16, #tpu.memory_space<vmem>>, vector<1x8x8xbf16>,
    return
  }
  func.func @transform_0(%arg0: i32) -> (i32, i32, i32) {
    %c0_i32 = arith.constant 0 : i32
    %c0_i32_0 = arith.constant 0 : i32
    %c0_i32_1 = arith.constant 0 : i32
    return %arg0, %c0_i32, %c0_i32_0 : i32, i32, i32
  }
  func.func @transform_1(%arg0: i32) -> (i32, i32) {
    %c0_i32 = arith.constant 0 : i32
    %c0_i32_0 = arith.constant 0 : i32
    %c0_i32_1 = arith.constant 0 : i32
    return %c0_i32, %c0_i32_0 : i32, i32
  }
  func.func @transform_2(%arg0: i32) -> (i32, i32) {
    %c0_i32 = arith.constant 0 : i32
    %c0_i32_0 = arith.constant 0 : i32
    %c0_i32_1 = arith.constant 0 : i32
    return %c0_i32, %c0_i32_0 : i32, i32
  }
  func.func @transform_3(%arg0: i32) -> (i32, i32, i32) {
    %c0_i32 = arith.constant 0 : i32
    %c0_i32_0 = arith.constant 0 : i32
    %c0_i32_1 = arith.constant 0 : i32
    return %arg0, %c0_i32, %c0_i32_0 : i32, i32, i32
  }
}

module attributes {stable_mosaic.version = 11 : i64} {
  func.func @_resize_kernel(%arg0: i32, %arg1: memref<8x4x4xbf16, #tpu.memory_space<vmem>>, %arg2: memref<8x4xbf16, #tpu.memory_space<vmem>>, %arg3: memref<4x8xbf16, #tpu.memory_space<vmem>>, %arg4: memref<8x8x8xbf16, #tpu.memory_space<vmem>>) attributes {dimension_semantics = [#tpu.dimension_semantics<parallel>], iteration_bounds = array<i64: 1>, scalar_prefetch = 0 : i64, scratch_operands = 0 : i64, tpu.core_type = #tpu.core_type<tc>, window_params = [{transform_indices = @transform_0, window_bounds = array<i64: 8, 4, 4>}, {pipeline_mode = #tpu.pipeline_mode<synchronous>, transform_indices = @transform_1, window_bounds = array<i64: 8, 4>}, {pipeline_mode = #tpu.pipeline_mode<synchronous>, transform_indices = @transform_2, window_bounds = array<i64: 4, 8>}, {transform_indices = @transform_3, window_bounds = array<i64: 8, 8, 8>}]} {
    %c0 = arith.constant 0 : index
    %c0_0 = arith.constant 0 : index
    %0 = vector.load %arg2[%c0, %c0_0] : memref<8x4xbf16, #tpu.memory_space<vmem>>, vector<8x4xbf16>
    %c0_1 = arith.constant 0 : index
    %c0_2 = arith.constant 0 : index
    %c0_3 = arith.constant 0 : index
    %1 = vector.load %arg1[%c0_1, %c0_2, %c0_3] : memref<8x4x4xbf16, #tpu.memory_space<vmem>>, vector<1x4x4xbf16>
    %2 = vector.shape_cast %1 : vector<1x4x4xbf16> to vector<4x4xbf16>
    %cst = arith.constant dense<0.000000e+00> : vector<8x4xf32>
    %3 = tpu.matmul %0, %2, %cst {dimension_numbers = #tpu.dot_dimension_numbers<[1], [0], [0], [1], [0, 0, 1, 1], [], []>} : vector<8x4xbf16>, vector<4x4xbf16>, vector<8x4xf32> -> vector<8x4xf32>
    %4 = arith.truncf %3 : vector<8x4xf32> to vector<8x4xbf16>
    %c0_4 = arith.constant 0 : index
    %c0_5 = arith.constant 0 : index
    %5 = vector.load %arg3[%c0_4, %c0_5] : memref<4x8xbf16, #tpu.memory_space<vmem>>, vector<4x8xbf16>
    %cst_6 = arith.constant dense<0.000000e+00> : vector<8x8xf32>
    %6 = tpu.matmul %4, %5, %cst_6 {dimension_numbers = #tpu.dot_dimension_numbers<[1], [0], [0], [1], [0, 0, 1, 1], [], []>} : vector<8x4xbf16>, vector<4x8xbf16>, vector<8x8xf32> -> vector<8x8xf32>
    %7 = arith.truncf %6 : vector<8x8xf32> to vector<8x8xbf16>
    %c0_7 = arith.constant 0 : index
    %c0_8 = arith.constant 0 : index
    %c0_9 = arith.constant 0 : index
    %8 = vector.load %arg4[%c0_7, %c0_8, %c0_9] : memref<8x8x8xbf16, #tpu.memory_space<vmem>>, vector<1x8x8xbf16>
    %9 = vector.shape_cast %8 : vector<1x8x8xbf16> to vector<8x8xbf16>
    %10 = vector.shape_cast %7 : vector<8x8xbf16> to vector<1x8x8xbf16>
    tpu.vector_store %arg4[%c0_7, %c0_8, %c0_9], %10 {strides = array<i32>} : memref<8x8x8xbf16, #tpu.memory_space<vmem>>, vector<1x8x8xbf16>,
    %c0_10 = arith.constant 0 : index
    %c0_11 = arith.constant 0 : index
    %11 = vector.load %arg2[%c0_10, %c0_11] : memref<8x4xbf16, #tpu.memory_space<vmem>>, vector<8x4xbf16>
    %c1 = arith.constant 1 : index
    %c0_12 = arith.constant 0 : index
    %c0_13 = arith.constant 0 : index
    %12 = vector.load %arg1[%c1, %c0_12, %c0_13] : memref<8x4x4xbf16, #tpu.memory_space<vmem>>, vector<1x4x4xbf16>
    %13 = vector.shape_cast %12 : vector<1x4x4xbf16> to vector<4x4xbf16>
    %cst_14 = arith.constant dense<0.000000e+00> : vector<8x4xf32>
    %14 = tpu.matmul %11, %13, %cst_14 {dimension_numbers = #tpu.dot_dimension_numbers<[1], [0], [0], [1], [0, 0, 1, 1], [], []>} : vector<8x4xbf16>, vector<4x4xbf16>, vector<8x4xf32> -> vector<8x4xf32>
    %15 = arith.truncf %14 : vector<8x4xf32> to vector<8x4xbf16>
    %c0_15 = arith.constant 0 : index
    %c0_16 = arith.constant 0 : index
    %16 = vector.load %arg3[%c0_15, %c0_16] : memref<4x8xbf16, #tpu.memory_space<vmem>>, vector<4x8xbf16>
    %cst_17 = arith.constant dense<0.000000e+00> : vector<8x8xf32>
    %17 = tpu.matmul %15, %16, %cst_17 {dimension_numbers = #tpu.dot_dimension_numbers<[1], [0], [0], [1], [0, 0, 1, 1], [], []>} : vector<8x4xbf16>, vector<4x8xbf16>, vector<8x8xf32> -> vector<8x8xf32>
    %18 = arith.truncf %17 : vector<8x8xf32> to vector<8x8xbf16>
    %c1_18 = arith.constant 1 : index
    %c0_19 = arith.constant 0 : index
    %c0_20 = arith.constant 0 : index
    %19 = vector.load %arg4[%c1_18, %c0_19, %c0_20] : memref<8x8x8xbf16, #tpu.memory_space<vmem>>, vector<1x8x8xbf16>
    %20 = vector.shape_cast %19 : vector<1x8x8xbf16> to vector<8x8xbf16>
    %21 = vector.shape_cast %18 : vector<8x8xbf16> to vector<1x8x8xbf16>
    tpu.vector_store %arg4[%c1_18, %c0_19, %c0_20], %21 {strides = array<i32>} : memref<8x8x8xbf16, #tpu.memory_space<vmem>>, vector<1x8x8xbf16>,
    %c0_21 = arith.constant 0 : index
    %c0_22 = arith.constant 0 : index
    %22 = vector.load %arg2[%c0_21, %c0_22] : memref<8x4xbf16, #tpu.memory_space<vmem>>, vector<8x4xbf16>
    %c2 = arith.constant 2 : index
    %c0_23 = arith.constant 0 : index
    %c0_24 = arith.constant 0 : index
    %23 = vector.load %arg1[%c2, %c0_23, %c0_24] : memref<8x4x4xbf16, #tpu.memory_space<vmem>>, vector<1x4x4xbf16>
    %24 = vector.shape_cast %23 : vector<1x4x4xbf16> to vector<4x4xbf16>
    %cst_25 = arith.constant dense<0.000000e+00> : vector<8x4xf32>
    %25 = tpu.matmul %22, %24, %cst_25 {dimension_numbers = #tpu.dot_dimension_numbers<[1], [0], [0], [1], [0, 0, 1, 1], [], []>} : vector<8x4xbf16>, vector<4x4xbf16>, vector<8x4xf32> -> vector<8x4xf32>
    %26 = arith.truncf %25 : vector<8x4xf32> to vector<8x4xbf16>
    %c0_26 = arith.constant 0 : index
    %c0_27 = arith.constant 0 : index
    %27 = vector.load %arg3[%c0_26, %c0_27] : memref<4x8xbf16, #tpu.memory_space<vmem>>, vector<4x8xbf16>
    %cst_28 = arith.constant dense<0.000000e+00> : vector<8x8xf32>
    %28 = tpu.matmul %26, %27, %cst_28 {dimension_numbers = #tpu.dot_dimension_numbers<[1], [0], [0], [1], [0, 0, 1, 1], [], []>} : vector<8x4xbf16>, vector<4x8xbf16>, vector<8x8xf32> -> vector<8x8xf32>
    %29 = arith.truncf %28 : vector<8x8xf32> to vector<8x8xbf16>
    %c2_29 = arith.constant 2 : index
    %c0_30 = arith.constant 0 : index
    %c0_31 = arith.constant 0 : index
    %30 = vector.load %arg4[%c2_29, %c0_30, %c0_31] : memref<8x8x8xbf16, #tpu.memory_space<vmem>>, vector<1x8x8xbf16>
    %31 = vector.shape_cast %30 : vector<1x8x8xbf16> to vector<8x8xbf16>
    %32 = vector.shape_cast %29 : vector<8x8xbf16> to vector<1x8x8xbf16>
    tpu.vector_store %arg4[%c2_29, %c0_30, %c0_31], %32 {strides = array<i32>} : memref<8x8x8xbf16, #tpu.memory_space<vmem>>, vector<1x8x8xbf16>,
    %c0_32 = arith.constant 0 : index
    %c0_33 = arith.constant 0 : index
    %33 = vector.load %arg2[%c0_32, %c0_33] : memref<8x4xbf16, #tpu.memory_space<vmem>>, vector<8x4xbf16>
    %c3 = arith.constant 3 : index
    %c0_34 = arith.constant 0 : index
    %c0_35 = arith.constant 0 : index
    %34 = vector.load %arg1[%c3, %c0_34, %c0_35] : memref<8x4x4xbf16, #tpu.memory_space<vmem>>, vector<1x4x4xbf16>
    %35 = vector.shape_cast %34 : vector<1x4x4xbf16> to vector<4x4xbf16>
    %cst_36 = arith.constant dense<0.000000e+00> : vector<8x4xf32>
    %36 = tpu.matmul %33, %35, %cst_36 {dimension_numbers = #tpu.dot_dimension_numbers<[1], [0], [0], [1], [0, 0, 1, 1], [], []>} : vector<8x4xbf16>, vector<4x4xbf16>, vector<8x4xf32> -> vector<8x4xf32>
    %37 = arith.truncf %36 : vector<8x4xf32> to vector<8x4xbf16>
    %c0_37 = arith.constant 0 : index
    %c0_38 = arith.constant 0 : index
    %38 = vector.load %arg3[%c0_37, %c0_38] : memref<4x8xbf16, #tpu.memory_space<vmem>>, vector<4x8xbf16>
    %cst_39 = arith.constant dense<0.000000e+00> : vector<8x8xf32>
    %39 = tpu.matmul %37, %38, %cst_39 {dimension_numbers = #tpu.dot_dimension_numbers<[1], [0], [0], [1], [0, 0, 1, 1], [], []>} : vector<8x4xbf16>, vector<4x8xbf16>, vector<8x8xf32> -> vector<8x8xf32>
    %40 = arith.truncf %39 : vector<8x8xf32> to vector<8x8xbf16>
    %c3_40 = arith.constant 3 : index
    %c0_41 = arith.constant 0 : index
    %c0_42 = arith.constant 0 : index
    %41 = vector.load %arg4[%c3_40, %c0_41, %c0_42] : memref<8x8x8xbf16, #tpu.memory_space<vmem>>, vector<1x8x8xbf16>
    %42 = vector.shape_cast %41 : vector<1x8x8xbf16> to vector<8x8xbf16>
    %43 = vector.shape_cast %40 : vector<8x8xbf16> to vector<1x8x8xbf16>
    tpu.vector_store %arg4[%c3_40, %c0_41, %c0_42], %43 {strides = array<i32>} : memref<8x8x8xbf16, #tpu.memory_space<vmem>>, vector<1x8x8xbf16>,
    %c0_43 = arith.constant 0 : index
    %c0_44 = arith.constant 0 : index
    %44 = vector.load %arg2[%c0_43, %c0_44] : memref<8x4xbf16, #tpu.memory_space<vmem>>, vector<8x4xbf16>
    %c4 = arith.constant 4 : index
    %c0_45 = arith.constant 0 : index
    %c0_46 = arith.constant 0 : index
    %45 = vector.load %arg1[%c4, %c0_45, %c0_46] : memref<8x4x4xbf16, #tpu.memory_space<vmem>>, vector<1x4x4xbf16>
    %46 = vector.shape_cast %45 : vector<1x4x4xbf16> to vector<4x4xbf16>
    %cst_47 = arith.constant dense<0.000000e+00> : vector<8x4xf32>
    %47 = tpu.matmul %44, %46, %cst_47 {dimension_numbers = #tpu.dot_dimension_numbers<[1], [0], [0], [1], [0, 0, 1, 1], [], []>} : vector<8x4xbf16>, vector<4x4xbf16>, vector<8x4xf32> -> vector<8x4xf32>
    %48 = arith.truncf %47 : vector<8x4xf32> to vector<8x4xbf16>
    %c0_48 = arith.constant 0 : index
    %c0_49 = arith.constant 0 : index
    %49 = vector.load %arg3[%c0_48, %c0_49] : memref<4x8xbf16, #tpu.memory_space<vmem>>, vector<4x8xbf16>
    %cst_50 = arith.constant dense<0.000000e+00> : vector<8x8xf32>
    %50 = tpu.matmul %48, %49, %cst_50 {dimension_numbers = #tpu.dot_dimension_numbers<[1], [0], [0], [1], [0, 0, 1, 1], [], []>} : vector<8x4xbf16>, vector<4x8xbf16>, vector<8x8xf32> -> vector<8x8xf32>
    %51 = arith.truncf %50 : vector<8x8xf32> to vector<8x8xbf16>
    %c4_51 = arith.constant 4 : index
    %c0_52 = arith.constant 0 : index
    %c0_53 = arith.constant 0 : index
    %52 = vector.load %arg4[%c4_51, %c0_52, %c0_53] : memref<8x8x8xbf16, #tpu.memory_space<vmem>>, vector<1x8x8xbf16>
    %53 = vector.shape_cast %52 : vector<1x8x8xbf16> to vector<8x8xbf16>
    %54 = vector.shape_cast %51 : vector<8x8xbf16> to vector<1x8x8xbf16>
    tpu.vector_store %arg4[%c4_51, %c0_52, %c0_53], %54 {strides = array<i32>} : memref<8x8x8xbf16, #tpu.memory_space<vmem>>, vector<1x8x8xbf16>,
    %c0_54 = arith.constant 0 : index
    %c0_55 = arith.constant 0 : index
    %55 = vector.load %arg2[%c0_54, %c0_55] : memref<8x4xbf16, #tpu.memory_space<vmem>>, vector<8x4xbf16>
    %c5 = arith.constant 5 : index
    %c0_56 = arith.constant 0 : index
    %c0_57 = arith.constant 0 : index
    %56 = vector.load %arg1[%c5, %c0_56, %c0_57] : memref<8x4x4xbf16, #tpu.memory_space<vmem>>, vector<1x4x4xbf16>
    %57 = vector.shape_cast %56 : vector<1x4x4xbf16> to vector<4x4xbf16>
    %cst_58 = arith.constant dense<0.000000e+00> : vector<8x4xf32>
    %58 = tpu.matmul %55, %57, %cst_58 {dimension_numbers = #tpu.dot_dimension_numbers<[1], [0], [0], [1], [0, 0, 1, 1], [], []>} : vector<8x4xbf16>, vector<4x4xbf16>, vector<8x4xf32> -> vector<8x4xf32>
    %59 = arith.truncf %58 : vector<8x4xf32> to vector<8x4xbf16>
    %c0_59 = arith.constant 0 : index
    %c0_60 = arith.constant 0 : index
    %60 = vector.load %arg3[%c0_59, %c0_60] : memref<4x8xbf16, #tpu.memory_space<vmem>>, vector<4x8xbf16>
    %cst_61 = arith.constant dense<0.000000e+00> : vector<8x8xf32>
    %61 = tpu.matmul %59, %60, %cst_61 {dimension_numbers = #tpu.dot_dimension_numbers<[1], [0], [0], [1], [0, 0, 1, 1], [], []>} : vector<8x4xbf16>, vector<4x8xbf16>, vector<8x8xf32> -> vector<8x8xf32>
    %62 = arith.truncf %61 : vector<8x8xf32> to vector<8x8xbf16>
    %c5_62 = arith.constant 5 : index
    %c0_63 = arith.constant 0 : index
    %c0_64 = arith.constant 0 : index
    %63 = vector.load %arg4[%c5_62, %c0_63, %c0_64] : memref<8x8x8xbf16, #tpu.memory_space<vmem>>, vector<1x8x8xbf16>
    %64 = vector.shape_cast %63 : vector<1x8x8xbf16> to vector<8x8xbf16>
    %65 = vector.shape_cast %62 : vector<8x8xbf16> to vector<1x8x8xbf16>
    tpu.vector_store %arg4[%c5_62, %c0_63, %c0_64], %65 {strides = array<i32>} : memref<8x8x8xbf16, #tpu.memory_space<vmem>>, vector<1x8x8xbf16>,
    %c0_65 = arith.constant 0 : index
    %c0_66 = arith.constant 0 : index
    %66 = vector.load %arg2[%c0_65, %c0_66] : memref<8x4xbf16, #tpu.memory_space<vmem>>, vector<8x4xbf16>
    %c6 = arith.constant 6 : index
    %c0_67 = arith.constant 0 : index
    %c0_68 = arith.constant 0 : index
    %67 = vector.load %arg1[%c6, %c0_67, %c0_68] : memref<8x4x4xbf16, #tpu.memory_space<vmem>>, vector<1x4x4xbf16>
    %68 = vector.shape_cast %67 : vector<1x4x4xbf16> to vector<4x4xbf16>
    %cst_69 = arith.constant dense<0.000000e+00> : vector<8x4xf32>
    %69 = tpu.matmul %66, %68, %cst_69 {dimension_numbers = #tpu.dot_dimension_numbers<[1], [0], [0], [1], [0, 0, 1, 1], [], []>} : vector<8x4xbf16>, vector<4x4xbf16>, vector<8x4xf32> -> vector<8x4xf32>
    %70 = arith.truncf %69 : vector<8x4xf32> to vector<8x4xbf16>
    %c0_70 = arith.constant 0 : index
    %c0_71 = arith.constant 0 : index
    %71 = vector.load %arg3[%c0_70, %c0_71] : memref<4x8xbf16, #tpu.memory_space<vmem>>, vector<4x8xbf16>
    %cst_72 = arith.constant dense<0.000000e+00> : vector<8x8xf32>
    %72 = tpu.matmul %70, %71, %cst_72 {dimension_numbers = #tpu.dot_dimension_numbers<[1], [0], [0], [1], [0, 0, 1, 1], [], []>} : vector<8x4xbf16>, vector<4x8xbf16>, vector<8x8xf32> -> vector<8x8xf32>
    %73 = arith.truncf %72 : vector<8x8xf32> to vector<8x8xbf16>
    %c6_73 = arith.constant 6 : index
    %c0_74 = arith.constant 0 : index
    %c0_75 = arith.constant 0 : index
    %74 = vector.load %arg4[%c6_73, %c0_74, %c0_75] : memref<8x8x8xbf16, #tpu.memory_space<vmem>>, vector<1x8x8xbf16>
    %75 = vector.shape_cast %74 : vector<1x8x8xbf16> to vector<8x8xbf16>
    %76 = vector.shape_cast %73 : vector<8x8xbf16> to vector<1x8x8xbf16>
    tpu.vector_store %arg4[%c6_73, %c0_74, %c0_75], %76 {strides = array<i32>} : memref<8x8x8xbf16, #tpu.memory_space<vmem>>, vector<1x8x8xbf16>,
    %c0_76 = arith.constant 0 : index
    %c0_77 = arith.constant 0 : index
    %77 = vector.load %arg2[%c0_76, %c0_77] : memref<8x4xbf16, #tpu.memory_space<vmem>>, vector<8x4xbf16>
    %c7 = arith.constant 7 : index
    %c0_78 = arith.constant 0 : index
    %c0_79 = arith.constant 0 : index
    %78 = vector.load %arg1[%c7, %c0_78, %c0_79] : memref<8x4x4xbf16, #tpu.memory_space<vmem>>, vector<1x4x4xbf16>
    %79 = vector.shape_cast %78 : vector<1x4x4xbf16> to vector<4x4xbf16>
    %cst_80 = arith.constant dense<0.000000e+00> : vector<8x4xf32>
    %80 = tpu.matmul %77, %79, %cst_80 {dimension_numbers = #tpu.dot_dimension_numbers<[1], [0], [0], [1], [0, 0, 1, 1], [], []>} : vector<8x4xbf16>, vector<4x4xbf16>, vector<8x4xf32> -> vector<8x4xf32>
    %81 = arith.truncf %80 : vector<8x4xf32> to vector<8x4xbf16>
    %c0_81 = arith.constant 0 : index
    %c0_82 = arith.constant 0 : index
    %82 = vector.load %arg3[%c0_81, %c0_82] : memref<4x8xbf16, #tpu.memory_space<vmem>>, vector<4x8xbf16>
    %cst_83 = arith.constant dense<0.000000e+00> : vector<8x8xf32>
    %83 = tpu.matmul %81, %82, %cst_83 {dimension_numbers = #tpu.dot_dimension_numbers<[1], [0], [0], [1], [0, 0, 1, 1], [], []>} : vector<8x4xbf16>, vector<4x8xbf16>, vector<8x8xf32> -> vector<8x8xf32>
    %84 = arith.truncf %83 : vector<8x8xf32> to vector<8x8xbf16>
    %c7_84 = arith.constant 7 : index
    %c0_85 = arith.constant 0 : index
    %c0_86 = arith.constant 0 : index
    %85 = vector.load %arg4[%c7_84, %c0_85, %c0_86] : memref<8x8x8xbf16, #tpu.memory_space<vmem>>, vector<1x8x8xbf16>
    %86 = vector.shape_cast %85 : vector<1x8x8xbf16> to vector<8x8xbf16>
    %87 = vector.shape_cast %84 : vector<8x8xbf16> to vector<1x8x8xbf16>
    tpu.vector_store %arg4[%c7_84, %c0_85, %c0_86], %87 {strides = array<i32>} : memref<8x8x8xbf16, #tpu.memory_space<vmem>>, vector<1x8x8xbf16>,
    return
  }
  func.func @transform_0(%arg0: i32) -> (i32, i32, i32) {
    %c0_i32 = arith.constant 0 : i32
    %c0_i32_0 = arith.constant 0 : i32
    %c0_i32_1 = arith.constant 0 : i32
    return %arg0, %c0_i32, %c0_i32_0 : i32, i32, i32
  }
  func.func @transform_1(%arg0: i32) -> (i32, i32) {
    %c0_i32 = arith.constant 0 : i32
    %c0_i32_0 = arith.constant 0 : i32
    %c0_i32_1 = arith.constant 0 : i32
    return %c0_i32, %c0_i32_0 : i32, i32
  }
  func.func @transform_2(%arg0: i32) -> (i32, i32) {
    %c0_i32 = arith.constant 0 : i32
    %c0_i32_0 = arith.constant 0 : i32
    %c0_i32_1 = arith.constant 0 : i32
    return %c0_i32, %c0_i32_0 : i32, i32
  }
  func.func @transform_3(%arg0: i32) -> (i32, i32, i32) {
    %c0_i32 = arith.constant 0 : i32
    %c0_i32_0 = arith.constant 0 : i32
    %c0_i32_1 = arith.constant 0 : i32
    return %arg0, %c0_i32, %c0_i32_0 : i32, i32, i32
  }
}

module attributes {stable_mosaic.version = 11 : i64} {
  func.func @_conv_mm_kernel(%arg0: i32, %arg1: i32, %arg2: memref<1x16x64xbf16, #tpu.memory_space<vmem>>, %arg3: memref<8x16xbf16, #tpu.memory_space<vmem>>, %arg4: memref<8x1xf32, #tpu.memory_space<vmem>>, %arg5: memref<8x1xf32, #tpu.memory_space<vmem>>, %arg6: memref<1x8x64xbf16, #tpu.memory_space<vmem>>) attributes {dimension_semantics = [#tpu.dimension_semantics<parallel>, #tpu.dimension_semantics<parallel>], iteration_bounds = array<i64: 2, 1>, scalar_prefetch = 0 : i64, scratch_operands = 0 : i64, tpu.core_type = #tpu.core_type<tc>, window_params = [{transform_indices = @transform_0, window_bounds = array<i64: 1, 16, 64>}, {pipeline_mode = #tpu.pipeline_mode<synchronous>, transform_indices = @transform_1, window_bounds = array<i64: 8, 16>}, {pipeline_mode = #tpu.pipeline_mode<synchronous>, transform_indices = @transform_2, window_bounds = array<i64: 8, 1>}, {pipeline_mode = #tpu.pipeline_mode<synchronous>, transform_indices = @transform_3, window_bounds = array<i64: 8, 1>}, {transform_indices = @transform_4, window_bounds = array<i64: 1, 8, 64>}]} {
    %c0 = arith.constant 0 : index
    %c0_0 = arith.constant 0 : index
    %0 = vector.load %arg3[%c0, %c0_0] : memref<8x16xbf16, #tpu.memory_space<vmem>>, vector<8x16xbf16>
    %c0_1 = arith.constant 0 : index
    %c0_2 = arith.constant 0 : index
    %c0_3 = arith.constant 0 : index
    %1 = vector.load %arg2[%c0_1, %c0_2, %c0_3] : memref<1x16x64xbf16, #tpu.memory_space<vmem>>, vector<1x16x64xbf16>
    %2 = vector.shape_cast %1 : vector<1x16x64xbf16> to vector<16x64xbf16>
    %cst = arith.constant dense<0.000000e+00> : vector<8x64xf32>
    %3 = tpu.matmul %0, %2, %cst {dimension_numbers = #tpu.dot_dimension_numbers<[1], [0], [0], [1], [0, 0, 1, 1], [], []>} : vector<8x16xbf16>, vector<16x64xbf16>, vector<8x64xf32> -> vector<8x64xf32>
    %c0_4 = arith.constant 0 : index
    %c0_5 = arith.constant 0 : index
    %4 = vector.load %arg4[%c0_4, %c0_5] : memref<8x1xf32, #tpu.memory_space<vmem>>, vector<8x1xf32>
    %5 = vector.broadcast %4 : vector<8x1xf32> to vector<8x64xf32>
    %6 = arith.mulf %3, %5 : vector<8x64xf32>
    %c0_6 = arith.constant 0 : index
    %c0_7 = arith.constant 0 : index
    %7 = vector.load %arg5[%c0_6, %c0_7] : memref<8x1xf32, #tpu.memory_space<vmem>>, vector<8x1xf32>
    %8 = vector.broadcast %7 : vector<8x1xf32> to vector<8x64xf32>
    %9 = arith.addf %6, %8 : vector<8x64xf32>
    %cst_8 = arith.constant 0.000000e+00 : f32
    %10 = vector.broadcast %cst_8 : f32 to vector<8x64xf32>
    %11 = arith.maximumf %9, %10 : vector<8x64xf32>
    %12 = arith.truncf %11 : vector<8x64xf32> to vector<8x64xbf16>
    %c0_9 = arith.constant 0 : index
    %c0_10 = arith.constant 0 : index
    %c0_11 = arith.constant 0 : index
    %13 = vector.load %arg6[%c0_9, %c0_10, %c0_11] : memref<1x8x64xbf16, #tpu.memory_space<vmem>>, vector<1x8x64xbf16>
    %14 = vector.shape_cast %13 : vector<1x8x64xbf16> to vector<8x64xbf16>
    %15 = vector.shape_cast %12 : vector<8x64xbf16> to vector<1x8x64xbf16>
    tpu.vector_store %arg6[%c0_9, %c0_10, %c0_11], %15 {strides = array<i32>} : memref<1x8x64xbf16, #tpu.memory_space<vmem>>, vector<1x8x64xbf16>,
    return
  }
  func.func @transform_0(%arg0: i32, %arg1: i32) -> (i32, i32, i32) {
    %c0_i32 = arith.constant 0 : i32
    %c0_i32_0 = arith.constant 0 : i32
    return %arg0, %c0_i32, %arg1 : i32, i32, i32
  }
  func.func @transform_1(%arg0: i32, %arg1: i32) -> (i32, i32) {
    %c0_i32 = arith.constant 0 : i32
    %c0_i32_0 = arith.constant 0 : i32
    %c0_i32_1 = arith.constant 0 : i32
    return %c0_i32, %c0_i32_0 : i32, i32
  }
  func.func @transform_2(%arg0: i32, %arg1: i32) -> (i32, i32) {
    %c0_i32 = arith.constant 0 : i32
    %c0_i32_0 = arith.constant 0 : i32
    %c0_i32_1 = arith.constant 0 : i32
    return %c0_i32, %c0_i32_0 : i32, i32
  }
  func.func @transform_3(%arg0: i32, %arg1: i32) -> (i32, i32) {
    %c0_i32 = arith.constant 0 : i32
    %c0_i32_0 = arith.constant 0 : i32
    %c0_i32_1 = arith.constant 0 : i32
    return %c0_i32, %c0_i32_0 : i32, i32
  }
  func.func @transform_4(%arg0: i32, %arg1: i32) -> (i32, i32, i32) {
    %c0_i32 = arith.constant 0 : i32
    %c0_i32_0 = arith.constant 0 : i32
    return %arg0, %c0_i32, %arg1 : i32, i32, i32
  }
}

module attributes {stable_mosaic.version = 11 : i64} {
  func.func @_conv_mm_kernel(%arg0: i32, %arg1: i32, %arg2: memref<1x8x64xbf16, #tpu.memory_space<vmem>>, %arg3: memref<8x8xbf16, #tpu.memory_space<vmem>>, %arg4: memref<8x1xf32, #tpu.memory_space<vmem>>, %arg5: memref<8x1xf32, #tpu.memory_space<vmem>>, %arg6: memref<1x8x64xbf16, #tpu.memory_space<vmem>>) attributes {dimension_semantics = [#tpu.dimension_semantics<parallel>, #tpu.dimension_semantics<parallel>], iteration_bounds = array<i64: 2, 1>, scalar_prefetch = 0 : i64, scratch_operands = 0 : i64, tpu.core_type = #tpu.core_type<tc>, window_params = [{transform_indices = @transform_0, window_bounds = array<i64: 1, 8, 64>}, {pipeline_mode = #tpu.pipeline_mode<synchronous>, transform_indices = @transform_1, window_bounds = array<i64: 8, 8>}, {pipeline_mode = #tpu.pipeline_mode<synchronous>, transform_indices = @transform_2, window_bounds = array<i64: 8, 1>}, {pipeline_mode = #tpu.pipeline_mode<synchronous>, transform_indices = @transform_3, window_bounds = array<i64: 8, 1>}, {transform_indices = @transform_4, window_bounds = array<i64: 1, 8, 64>}]} {
    %c0 = arith.constant 0 : index
    %c0_0 = arith.constant 0 : index
    %0 = vector.load %arg3[%c0, %c0_0] : memref<8x8xbf16, #tpu.memory_space<vmem>>, vector<8x8xbf16>
    %c0_1 = arith.constant 0 : index
    %c0_2 = arith.constant 0 : index
    %c0_3 = arith.constant 0 : index
    %1 = vector.load %arg2[%c0_1, %c0_2, %c0_3] : memref<1x8x64xbf16, #tpu.memory_space<vmem>>, vector<1x8x64xbf16>
    %2 = vector.shape_cast %1 : vector<1x8x64xbf16> to vector<8x64xbf16>
    %cst = arith.constant dense<0.000000e+00> : vector<8x64xf32>
    %3 = tpu.matmul %0, %2, %cst {dimension_numbers = #tpu.dot_dimension_numbers<[1], [0], [0], [1], [0, 0, 1, 1], [], []>} : vector<8x8xbf16>, vector<8x64xbf16>, vector<8x64xf32> -> vector<8x64xf32>
    %c0_4 = arith.constant 0 : index
    %c0_5 = arith.constant 0 : index
    %4 = vector.load %arg4[%c0_4, %c0_5] : memref<8x1xf32, #tpu.memory_space<vmem>>, vector<8x1xf32>
    %5 = vector.broadcast %4 : vector<8x1xf32> to vector<8x64xf32>
    %6 = arith.mulf %3, %5 : vector<8x64xf32>
    %c0_6 = arith.constant 0 : index
    %c0_7 = arith.constant 0 : index
    %7 = vector.load %arg5[%c0_6, %c0_7] : memref<8x1xf32, #tpu.memory_space<vmem>>, vector<8x1xf32>
    %8 = vector.broadcast %7 : vector<8x1xf32> to vector<8x64xf32>
    %9 = arith.addf %6, %8 : vector<8x64xf32>
    %10 = arith.truncf %9 : vector<8x64xf32> to vector<8x64xbf16>
    %c0_8 = arith.constant 0 : index
    %c0_9 = arith.constant 0 : index
    %c0_10 = arith.constant 0 : index
    %11 = vector.load %arg6[%c0_8, %c0_9, %c0_10] : memref<1x8x64xbf16, #tpu.memory_space<vmem>>, vector<1x8x64xbf16>
    %12 = vector.shape_cast %11 : vector<1x8x64xbf16> to vector<8x64xbf16>
    %13 = vector.shape_cast %10 : vector<8x64xbf16> to vector<1x8x64xbf16>
    tpu.vector_store %arg6[%c0_8, %c0_9, %c0_10], %13 {strides = array<i32>} : memref<1x8x64xbf16, #tpu.memory_space<vmem>>, vector<1x8x64xbf16>,
    return
  }
  func.func @transform_0(%arg0: i32, %arg1: i32) -> (i32, i32, i32) {
    %c0_i32 = arith.constant 0 : i32
    %c0_i32_0 = arith.constant 0 : i32
    return %arg0, %c0_i32, %arg1 : i32, i32, i32
  }
  func.func @transform_1(%arg0: i32, %arg1: i32) -> (i32, i32) {
    %c0_i32 = arith.constant 0 : i32
    %c0_i32_0 = arith.constant 0 : i32
    %c0_i32_1 = arith.constant 0 : i32
    return %c0_i32, %c0_i32_0 : i32, i32
  }
  func.func @transform_2(%arg0: i32, %arg1: i32) -> (i32, i32) {
    %c0_i32 = arith.constant 0 : i32
    %c0_i32_0 = arith.constant 0 : i32
    %c0_i32_1 = arith.constant 0 : i32
    return %c0_i32, %c0_i32_0 : i32, i32
  }
  func.func @transform_3(%arg0: i32, %arg1: i32) -> (i32, i32) {
    %c0_i32 = arith.constant 0 : i32
    %c0_i32_0 = arith.constant 0 : i32
    %c0_i32_1 = arith.constant 0 : i32
    return %c0_i32, %c0_i32_0 : i32, i32
  }
  func.func @transform_4(%arg0: i32, %arg1: i32) -> (i32, i32, i32) {
    %c0_i32 = arith.constant 0 : i32
    %c0_i32_0 = arith.constant 0 : i32
    return %arg0, %c0_i32, %arg1 : i32, i32, i32
  }
}

module attributes {stable_mosaic.version = 11 : i64} {
  func.func @_conv_mm_kernel(%arg0: i32, %arg1: i32, %arg2: memref<1x72x64xbf16, #tpu.memory_space<vmem>>, %arg3: memref<8x72xbf16, #tpu.memory_space<vmem>>, %arg4: memref<8x1xf32, #tpu.memory_space<vmem>>, %arg5: memref<8x1xf32, #tpu.memory_space<vmem>>, %arg6: memref<1x8x64xbf16, #tpu.memory_space<vmem>>) attributes {dimension_semantics = [#tpu.dimension_semantics<parallel>, #tpu.dimension_semantics<parallel>], iteration_bounds = array<i64: 2, 1>, scalar_prefetch = 0 : i64, scratch_operands = 0 : i64, tpu.core_type = #tpu.core_type<tc>, window_params = [{transform_indices = @transform_0, window_bounds = array<i64: 1, 72, 64>}, {pipeline_mode = #tpu.pipeline_mode<synchronous>, transform_indices = @transform_1, window_bounds = array<i64: 8, 72>}, {pipeline_mode = #tpu.pipeline_mode<synchronous>, transform_indices = @transform_2, window_bounds = array<i64: 8, 1>}, {pipeline_mode = #tpu.pipeline_mode<synchronous>, transform_indices = @transform_3, window_bounds = array<i64: 8, 1>}, {transform_indices = @transform_4, window_bounds = array<i64: 1, 8, 64>}]} {
    %c0 = arith.constant 0 : index
    %c0_0 = arith.constant 0 : index
    %0 = vector.load %arg3[%c0, %c0_0] : memref<8x72xbf16, #tpu.memory_space<vmem>>, vector<8x72xbf16>
    %c0_1 = arith.constant 0 : index
    %c0_2 = arith.constant 0 : index
    %c0_3 = arith.constant 0 : index
    %1 = vector.load %arg2[%c0_1, %c0_2, %c0_3] : memref<1x72x64xbf16, #tpu.memory_space<vmem>>, vector<1x72x64xbf16>
    %2 = vector.shape_cast %1 : vector<1x72x64xbf16> to vector<72x64xbf16>
    %cst = arith.constant dense<0.000000e+00> : vector<8x64xf32>
    %3 = tpu.matmul %0, %2, %cst {dimension_numbers = #tpu.dot_dimension_numbers<[1], [0], [0], [1], [0, 0, 1, 1], [], []>} : vector<8x72xbf16>, vector<72x64xbf16>, vector<8x64xf32> -> vector<8x64xf32>
    %c0_4 = arith.constant 0 : index
    %c0_5 = arith.constant 0 : index
    %4 = vector.load %arg4[%c0_4, %c0_5] : memref<8x1xf32, #tpu.memory_space<vmem>>, vector<8x1xf32>
    %5 = vector.broadcast %4 : vector<8x1xf32> to vector<8x64xf32>
    %6 = arith.mulf %3, %5 : vector<8x64xf32>
    %c0_6 = arith.constant 0 : index
    %c0_7 = arith.constant 0 : index
    %7 = vector.load %arg5[%c0_6, %c0_7] : memref<8x1xf32, #tpu.memory_space<vmem>>, vector<8x1xf32>
    %8 = vector.broadcast %7 : vector<8x1xf32> to vector<8x64xf32>
    %9 = arith.addf %6, %8 : vector<8x64xf32>
    %cst_8 = arith.constant 0.000000e+00 : f32
    %10 = vector.broadcast %cst_8 : f32 to vector<8x64xf32>
    %11 = arith.maximumf %9, %10 : vector<8x64xf32>
    %12 = arith.truncf %11 : vector<8x64xf32> to vector<8x64xbf16>
    %c0_9 = arith.constant 0 : index
    %c0_10 = arith.constant 0 : index
    %c0_11 = arith.constant 0 : index
    %13 = vector.load %arg6[%c0_9, %c0_10, %c0_11] : memref<1x8x64xbf16, #tpu.memory_space<vmem>>, vector<1x8x64xbf16>
    %14 = vector.shape_cast %13 : vector<1x8x64xbf16> to vector<8x64xbf16>
    %15 = vector.shape_cast %12 : vector<8x64xbf16> to vector<1x8x64xbf16>
    tpu.vector_store %arg6[%c0_9, %c0_10, %c0_11], %15 {strides = array<i32>} : memref<1x8x64xbf16, #tpu.memory_space<vmem>>, vector<1x8x64xbf16>,
    return
  }
  func.func @transform_0(%arg0: i32, %arg1: i32) -> (i32, i32, i32) {
    %c0_i32 = arith.constant 0 : i32
    %c0_i32_0 = arith.constant 0 : i32
    return %arg0, %c0_i32, %arg1 : i32, i32, i32
  }
  func.func @transform_1(%arg0: i32, %arg1: i32) -> (i32, i32) {
    %c0_i32 = arith.constant 0 : i32
    %c0_i32_0 = arith.constant 0 : i32
    %c0_i32_1 = arith.constant 0 : i32
    return %c0_i32, %c0_i32_0 : i32, i32
  }
  func.func @transform_2(%arg0: i32, %arg1: i32) -> (i32, i32) {
    %c0_i32 = arith.constant 0 : i32
    %c0_i32_0 = arith.constant 0 : i32
    %c0_i32_1 = arith.constant 0 : i32
    return %c0_i32, %c0_i32_0 : i32, i32
  }
  func.func @transform_3(%arg0: i32, %arg1: i32) -> (i32, i32) {
    %c0_i32 = arith.constant 0 : i32
    %c0_i32_0 = arith.constant 0 : i32
    %c0_i32_1 = arith.constant 0 : i32
    return %c0_i32, %c0_i32_0 : i32, i32
  }
  func.func @transform_4(%arg0: i32, %arg1: i32) -> (i32, i32, i32) {
    %c0_i32 = arith.constant 0 : i32
    %c0_i32_0 = arith.constant 0 : i32
    return %arg0, %c0_i32, %arg1 : i32, i32, i32
  }
}

module attributes {stable_mosaic.version = 11 : i64} {
  func.func @_sim_predict_kernel(%arg0: i32, %arg1: i32, %arg2: memref<1x64x8xbf16, #tpu.memory_space<vmem>>, %arg3: memref<1x8x64xbf16, #tpu.memory_space<vmem>>, %arg4: memref<1x2x64xf32, #tpu.memory_space<vmem>>, %arg5: memref<1x2x64xf32, #tpu.memory_space<vmem>>) attributes {dimension_semantics = [#tpu.dimension_semantics<parallel>, #tpu.dimension_semantics<parallel>], iteration_bounds = array<i64: 2, 1>, scalar_prefetch = 0 : i64, scratch_operands = 0 : i64, tpu.core_type = #tpu.core_type<tc>, window_params = [{transform_indices = @transform_0, window_bounds = array<i64: 1, 64, 8>}, {transform_indices = @transform_1, window_bounds = array<i64: 1, 8, 64>}, {transform_indices = @transform_2, window_bounds = array<i64: 1, 2, 64>}, {transform_indices = @transform_3, window_bounds = array<i64: 1, 2, 64>}]} {
    %c0 = arith.constant 0 : index
    %c0_0 = arith.constant 0 : index
    %c0_1 = arith.constant 0 : index
    %0 = vector.load %arg2[%c0, %c0_0, %c0_1] : memref<1x64x8xbf16, #tpu.memory_space<vmem>>, vector<1x64x8xbf16>
    %1 = vector.shape_cast %0 : vector<1x64x8xbf16> to vector<64x8xbf16>
    %c0_2 = arith.constant 0 : index
    %c0_3 = arith.constant 0 : index
    %c0_4 = arith.constant 0 : index
    %2 = vector.load %arg3[%c0_2, %c0_3, %c0_4] : memref<1x8x64xbf16, #tpu.memory_space<vmem>>, vector<1x8x64xbf16>
    %3 = vector.shape_cast %2 : vector<1x8x64xbf16> to vector<8x64xbf16>
    %cst = arith.constant dense<0.000000e+00> : vector<64x64xf32>
    %4 = tpu.matmul %1, %3, %cst {dimension_numbers = #tpu.dot_dimension_numbers<[1], [0], [0], [1], [0, 0, 1, 1], [], []>} : vector<64x8xbf16>, vector<8x64xbf16>, vector<64x64xf32> -> vector<64x64xf32>
    %cst_5 = arith.constant dense<0xFF800000> : vector<64xf32>
    %5 = vector.multi_reduction <maximumf>, %4, %cst_5 [0] : vector<64x64xf32> to vector<64xf32>
    %6 = vector.shape_cast %5 : vector<64xf32> to vector<1x64xf32>
    %7 = vector.broadcast %6 : vector<1x64xf32> to vector<64x64xf32>
    %8 = arith.subf %4, %7 : vector<64x64xf32>
    %9 = math.exp %8 : vector<64x64xf32>
    %cst_6 = arith.constant dense<0.000000e+00> : vector<64xf32>
    %10 = vector.multi_reduction <add>, %9, %cst_6 [0] : vector<64x64xf32> to vector<64xf32>
    %11 = vector.shape_cast %10 : vector<64xf32> to vector<1x64xf32>
    %12 = vector.broadcast %11 : vector<1x64xf32> to vector<64x64xf32>
    %13 = arith.divf %9, %12 : vector<64x64xf32>
    %c0_7 = arith.constant 0 : index
    %c0_8 = arith.constant 0 : index
    %c0_9 = arith.constant 0 : index
    %14 = vector.load %arg4[%c0_7, %c0_8, %c0_9] : memref<1x2x64xf32, #tpu.memory_space<vmem>>, vector<1x2x64xf32>
    %15 = vector.shape_cast %14 : vector<1x2x64xf32> to vector<2x64xf32>
    %cst_10 = arith.constant dense<0.000000e+00> : vector<2x64xf32>
    %16 = tpu.matmul %15, %13, %cst_10 {dimension_numbers = #tpu.dot_dimension_numbers<[1], [0], [0], [1], [0, 0, 1, 1], [], []>} : vector<2x64xf32>, vector<64x64xf32>, vector<2x64xf32> -> vector<2x64xf32>
    %c0_11 = arith.constant 0 : index
    %c0_12 = arith.constant 0 : index
    %c0_13 = arith.constant 0 : index
    %17 = vector.load %arg5[%c0_11, %c0_12, %c0_13] : memref<1x2x64xf32, #tpu.memory_space<vmem>>, vector<1x2x64xf32>
    %18 = vector.shape_cast %17 : vector<1x2x64xf32> to vector<2x64xf32>
    %19 = vector.shape_cast %16 : vector<2x64xf32> to vector<1x2x64xf32>
    tpu.vector_store %arg5[%c0_11, %c0_12, %c0_13], %19 {strides = array<i32>} : memref<1x2x64xf32, #tpu.memory_space<vmem>>, vector<1x2x64xf32>,
    return
  }
  func.func @transform_0(%arg0: i32, %arg1: i32) -> (i32, i32, i32) {
    %c0_i32 = arith.constant 0 : i32
    %c0_i32_0 = arith.constant 0 : i32
    %c0_i32_1 = arith.constant 0 : i32
    return %arg0, %c0_i32, %c0_i32_0 : i32, i32, i32
  }
  func.func @transform_1(%arg0: i32, %arg1: i32) -> (i32, i32, i32) {
    %c0_i32 = arith.constant 0 : i32
    %c0_i32_0 = arith.constant 0 : i32
    return %arg0, %c0_i32, %arg1 : i32, i32, i32
  }
  func.func @transform_2(%arg0: i32, %arg1: i32) -> (i32, i32, i32) {
    %c0_i32 = arith.constant 0 : i32
    %c0_i32_0 = arith.constant 0 : i32
    %c0_i32_1 = arith.constant 0 : i32
    return %arg0, %c0_i32, %c0_i32_0 : i32, i32, i32
  }
  func.func @transform_3(%arg0: i32, %arg1: i32) -> (i32, i32, i32) {
    %c0_i32 = arith.constant 0 : i32
    %c0_i32_0 = arith.constant 0 : i32
    return %arg0, %c0_i32, %arg1 : i32, i32, i32
  }
}

module attributes {stable_mosaic.version = 11 : i64} {
  func.func @_resize_kernel(%arg0: i32, %arg1: memref<4x8x8xf32, #tpu.memory_space<vmem>>, %arg2: memref<64x8xf32, #tpu.memory_space<vmem>>, %arg3: memref<8x64xf32, #tpu.memory_space<vmem>>, %arg4: memref<4x64x64xf32, #tpu.memory_space<vmem>>) attributes {dimension_semantics = [#tpu.dimension_semantics<parallel>], iteration_bounds = array<i64: 1>, scalar_prefetch = 0 : i64, scratch_operands = 0 : i64, tpu.core_type = #tpu.core_type<tc>, window_params = [{transform_indices = @transform_0, window_bounds = array<i64: 4, 8, 8>}, {pipeline_mode = #tpu.pipeline_mode<synchronous>, transform_indices = @transform_1, window_bounds = array<i64: 64, 8>}, {pipeline_mode = #tpu.pipeline_mode<synchronous>, transform_indices = @transform_2, window_bounds = array<i64: 8, 64>}, {transform_indices = @transform_3, window_bounds = array<i64: 4, 64, 64>}]} {
    %c0 = arith.constant 0 : index
    %c0_0 = arith.constant 0 : index
    %0 = vector.load %arg2[%c0, %c0_0] : memref<64x8xf32, #tpu.memory_space<vmem>>, vector<64x8xf32>
    %c0_1 = arith.constant 0 : index
    %c0_2 = arith.constant 0 : index
    %c0_3 = arith.constant 0 : index
    %1 = vector.load %arg1[%c0_1, %c0_2, %c0_3] : memref<4x8x8xf32, #tpu.memory_space<vmem>>, vector<1x8x8xf32>
    %2 = vector.shape_cast %1 : vector<1x8x8xf32> to vector<8x8xf32>
    %cst = arith.constant dense<0.000000e+00> : vector<64x8xf32>
    %3 = tpu.matmul %0, %2, %cst {dimension_numbers = #tpu.dot_dimension_numbers<[1], [0], [0], [1], [0, 0, 1, 1], [], []>} : vector<64x8xf32>, vector<8x8xf32>, vector<64x8xf32> -> vector<64x8xf32>
    %c0_4 = arith.constant 0 : index
    %c0_5 = arith.constant 0 : index
    %4 = vector.load %arg3[%c0_4, %c0_5] : memref<8x64xf32, #tpu.memory_space<vmem>>, vector<8x64xf32>
    %cst_6 = arith.constant dense<0.000000e+00> : vector<64x64xf32>
    %5 = tpu.matmul %3, %4, %cst_6 {dimension_numbers = #tpu.dot_dimension_numbers<[1], [0], [0], [1], [0, 0, 1, 1], [], []>} : vector<64x8xf32>, vector<8x64xf32>, vector<64x64xf32> -> vector<64x64xf32>
    %c0_7 = arith.constant 0 : index
    %c0_8 = arith.constant 0 : index
    %c0_9 = arith.constant 0 : index
    %6 = vector.load %arg4[%c0_7, %c0_8, %c0_9] : memref<4x64x64xf32, #tpu.memory_space<vmem>>, vector<1x64x64xf32>
    %7 = vector.shape_cast %6 : vector<1x64x64xf32> to vector<64x64xf32>
    %8 = vector.shape_cast %5 : vector<64x64xf32> to vector<1x64x64xf32>
    tpu.vector_store %arg4[%c0_7, %c0_8, %c0_9], %8 {strides = array<i32>} : memref<4x64x64xf32, #tpu.memory_space<vmem>>, vector<1x64x64xf32>,
    %c0_10 = arith.constant 0 : index
    %c0_11 = arith.constant 0 : index
    %9 = vector.load %arg2[%c0_10, %c0_11] : memref<64x8xf32, #tpu.memory_space<vmem>>, vector<64x8xf32>
    %c1 = arith.constant 1 : index
    %c0_12 = arith.constant 0 : index
    %c0_13 = arith.constant 0 : index
    %10 = vector.load %arg1[%c1, %c0_12, %c0_13] : memref<4x8x8xf32, #tpu.memory_space<vmem>>, vector<1x8x8xf32>
    %11 = vector.shape_cast %10 : vector<1x8x8xf32> to vector<8x8xf32>
    %cst_14 = arith.constant dense<0.000000e+00> : vector<64x8xf32>
    %12 = tpu.matmul %9, %11, %cst_14 {dimension_numbers = #tpu.dot_dimension_numbers<[1], [0], [0], [1], [0, 0, 1, 1], [], []>} : vector<64x8xf32>, vector<8x8xf32>, vector<64x8xf32> -> vector<64x8xf32>
    %c0_15 = arith.constant 0 : index
    %c0_16 = arith.constant 0 : index
    %13 = vector.load %arg3[%c0_15, %c0_16] : memref<8x64xf32, #tpu.memory_space<vmem>>, vector<8x64xf32>
    %cst_17 = arith.constant dense<0.000000e+00> : vector<64x64xf32>
    %14 = tpu.matmul %12, %13, %cst_17 {dimension_numbers = #tpu.dot_dimension_numbers<[1], [0], [0], [1], [0, 0, 1, 1], [], []>} : vector<64x8xf32>, vector<8x64xf32>, vector<64x64xf32> -> vector<64x64xf32>
    %c1_18 = arith.constant 1 : index
    %c0_19 = arith.constant 0 : index
    %c0_20 = arith.constant 0 : index
    %15 = vector.load %arg4[%c1_18, %c0_19, %c0_20] : memref<4x64x64xf32, #tpu.memory_space<vmem>>, vector<1x64x64xf32>
    %16 = vector.shape_cast %15 : vector<1x64x64xf32> to vector<64x64xf32>
    %17 = vector.shape_cast %14 : vector<64x64xf32> to vector<1x64x64xf32>
    tpu.vector_store %arg4[%c1_18, %c0_19, %c0_20], %17 {strides = array<i32>} : memref<4x64x64xf32, #tpu.memory_space<vmem>>, vector<1x64x64xf32>,
    %c0_21 = arith.constant 0 : index
    %c0_22 = arith.constant 0 : index
    %18 = vector.load %arg2[%c0_21, %c0_22] : memref<64x8xf32, #tpu.memory_space<vmem>>, vector<64x8xf32>
    %c2 = arith.constant 2 : index
    %c0_23 = arith.constant 0 : index
    %c0_24 = arith.constant 0 : index
    %19 = vector.load %arg1[%c2, %c0_23, %c0_24] : memref<4x8x8xf32, #tpu.memory_space<vmem>>, vector<1x8x8xf32>
    %20 = vector.shape_cast %19 : vector<1x8x8xf32> to vector<8x8xf32>
    %cst_25 = arith.constant dense<0.000000e+00> : vector<64x8xf32>
    %21 = tpu.matmul %18, %20, %cst_25 {dimension_numbers = #tpu.dot_dimension_numbers<[1], [0], [0], [1], [0, 0, 1, 1], [], []>} : vector<64x8xf32>, vector<8x8xf32>, vector<64x8xf32> -> vector<64x8xf32>
    %c0_26 = arith.constant 0 : index
    %c0_27 = arith.constant 0 : index
    %22 = vector.load %arg3[%c0_26, %c0_27] : memref<8x64xf32, #tpu.memory_space<vmem>>, vector<8x64xf32>
    %cst_28 = arith.constant dense<0.000000e+00> : vector<64x64xf32>
    %23 = tpu.matmul %21, %22, %cst_28 {dimension_numbers = #tpu.dot_dimension_numbers<[1], [0], [0], [1], [0, 0, 1, 1], [], []>} : vector<64x8xf32>, vector<8x64xf32>, vector<64x64xf32> -> vector<64x64xf32>
    %c2_29 = arith.constant 2 : index
    %c0_30 = arith.constant 0 : index
    %c0_31 = arith.constant 0 : index
    %24 = vector.load %arg4[%c2_29, %c0_30, %c0_31] : memref<4x64x64xf32, #tpu.memory_space<vmem>>, vector<1x64x64xf32>
    %25 = vector.shape_cast %24 : vector<1x64x64xf32> to vector<64x64xf32>
    %26 = vector.shape_cast %23 : vector<64x64xf32> to vector<1x64x64xf32>
    tpu.vector_store %arg4[%c2_29, %c0_30, %c0_31], %26 {strides = array<i32>} : memref<4x64x64xf32, #tpu.memory_space<vmem>>, vector<1x64x64xf32>,
    %c0_32 = arith.constant 0 : index
    %c0_33 = arith.constant 0 : index
    %27 = vector.load %arg2[%c0_32, %c0_33] : memref<64x8xf32, #tpu.memory_space<vmem>>, vector<64x8xf32>
    %c3 = arith.constant 3 : index
    %c0_34 = arith.constant 0 : index
    %c0_35 = arith.constant 0 : index
    %28 = vector.load %arg1[%c3, %c0_34, %c0_35] : memref<4x8x8xf32, #tpu.memory_space<vmem>>, vector<1x8x8xf32>
    %29 = vector.shape_cast %28 : vector<1x8x8xf32> to vector<8x8xf32>
    %cst_36 = arith.constant dense<0.000000e+00> : vector<64x8xf32>
    %30 = tpu.matmul %27, %29, %cst_36 {dimension_numbers = #tpu.dot_dimension_numbers<[1], [0], [0], [1], [0, 0, 1, 1], [], []>} : vector<64x8xf32>, vector<8x8xf32>, vector<64x8xf32> -> vector<64x8xf32>
    %c0_37 = arith.constant 0 : index
    %c0_38 = arith.constant 0 : index
    %31 = vector.load %arg3[%c0_37, %c0_38] : memref<8x64xf32, #tpu.memory_space<vmem>>, vector<8x64xf32>
    %cst_39 = arith.constant dense<0.000000e+00> : vector<64x64xf32>
    %32 = tpu.matmul %30, %31, %cst_39 {dimension_numbers = #tpu.dot_dimension_numbers<[1], [0], [0], [1], [0, 0, 1, 1], [], []>} : vector<64x8xf32>, vector<8x64xf32>, vector<64x64xf32> -> vector<64x64xf32>
    %c3_40 = arith.constant 3 : index
    %c0_41 = arith.constant 0 : index
    %c0_42 = arith.constant 0 : index
    %33 = vector.load %arg4[%c3_40, %c0_41, %c0_42] : memref<4x64x64xf32, #tpu.memory_space<vmem>>, vector<1x64x64xf32>
    %34 = vector.shape_cast %33 : vector<1x64x64xf32> to vector<64x64xf32>
    %35 = vector.shape_cast %32 : vector<64x64xf32> to vector<1x64x64xf32>
    tpu.vector_store %arg4[%c3_40, %c0_41, %c0_42], %35 {strides = array<i32>} : memref<4x64x64xf32, #tpu.memory_space<vmem>>, vector<1x64x64xf32>,
    return
  }
  func.func @transform_0(%arg0: i32) -> (i32, i32, i32) {
    %c0_i32 = arith.constant 0 : i32
    %c0_i32_0 = arith.constant 0 : i32
    %c0_i32_1 = arith.constant 0 : i32
    return %arg0, %c0_i32, %c0_i32_0 : i32, i32, i32
  }
  func.func @transform_1(%arg0: i32) -> (i32, i32) {
    %c0_i32 = arith.constant 0 : i32
    %c0_i32_0 = arith.constant 0 : i32
    %c0_i32_1 = arith.constant 0 : i32
    return %c0_i32, %c0_i32_0 : i32, i32
  }
  func.func @transform_2(%arg0: i32) -> (i32, i32) {
    %c0_i32 = arith.constant 0 : i32
    %c0_i32_0 = arith.constant 0 : i32
    %c0_i32_1 = arith.constant 0 : i32
    return %c0_i32, %c0_i32_0 : i32, i32
  }
  func.func @transform_3(%arg0: i32) -> (i32, i32, i32) {
    %c0_i32 = arith.constant 0 : i32
    %c0_i32_0 = arith.constant 0 : i32
    %c0_i32_1 = arith.constant 0 : i32
    return %arg0, %c0_i32, %c0_i32_0 : i32, i32, i32
  }
}

module attributes {stable_mosaic.version = 11 : i64} {
  func.func @_resize_kernel(%arg0: i32, %arg1: memref<4x64x64xf32, #tpu.memory_space<vmem>>, %arg2: memref<8x64xf32, #tpu.memory_space<vmem>>, %arg3: memref<64x8xf32, #tpu.memory_space<vmem>>, %arg4: memref<4x8x8xbf16, #tpu.memory_space<vmem>>) attributes {dimension_semantics = [#tpu.dimension_semantics<parallel>], iteration_bounds = array<i64: 1>, scalar_prefetch = 0 : i64, scratch_operands = 0 : i64, tpu.core_type = #tpu.core_type<tc>, window_params = [{transform_indices = @transform_0, window_bounds = array<i64: 4, 64, 64>}, {pipeline_mode = #tpu.pipeline_mode<synchronous>, transform_indices = @transform_1, window_bounds = array<i64: 8, 64>}, {pipeline_mode = #tpu.pipeline_mode<synchronous>, transform_indices = @transform_2, window_bounds = array<i64: 64, 8>}, {transform_indices = @transform_3, window_bounds = array<i64: 4, 8, 8>}]} {
    %c0 = arith.constant 0 : index
    %c0_0 = arith.constant 0 : index
    %0 = vector.load %arg2[%c0, %c0_0] : memref<8x64xf32, #tpu.memory_space<vmem>>, vector<8x64xf32>
    %c0_1 = arith.constant 0 : index
    %c0_2 = arith.constant 0 : index
    %c0_3 = arith.constant 0 : index
    %1 = vector.load %arg1[%c0_1, %c0_2, %c0_3] : memref<4x64x64xf32, #tpu.memory_space<vmem>>, vector<1x64x64xf32>
    %2 = vector.shape_cast %1 : vector<1x64x64xf32> to vector<64x64xf32>
    %cst = arith.constant dense<0.000000e+00> : vector<8x64xf32>
    %3 = tpu.matmul %0, %2, %cst {dimension_numbers = #tpu.dot_dimension_numbers<[1], [0], [0], [1], [0, 0, 1, 1], [], []>} : vector<8x64xf32>, vector<64x64xf32>, vector<8x64xf32> -> vector<8x64xf32>
    %c0_4 = arith.constant 0 : index
    %c0_5 = arith.constant 0 : index
    %4 = vector.load %arg3[%c0_4, %c0_5] : memref<64x8xf32, #tpu.memory_space<vmem>>, vector<64x8xf32>
    %cst_6 = arith.constant dense<0.000000e+00> : vector<8x8xf32>
    %5 = tpu.matmul %3, %4, %cst_6 {dimension_numbers = #tpu.dot_dimension_numbers<[1], [0], [0], [1], [0, 0, 1, 1], [], []>} : vector<8x64xf32>, vector<64x8xf32>, vector<8x8xf32> -> vector<8x8xf32>
    %6 = arith.truncf %5 : vector<8x8xf32> to vector<8x8xbf16>
    %c0_7 = arith.constant 0 : index
    %c0_8 = arith.constant 0 : index
    %c0_9 = arith.constant 0 : index
    %7 = vector.load %arg4[%c0_7, %c0_8, %c0_9] : memref<4x8x8xbf16, #tpu.memory_space<vmem>>, vector<1x8x8xbf16>
    %8 = vector.shape_cast %7 : vector<1x8x8xbf16> to vector<8x8xbf16>
    %9 = vector.shape_cast %6 : vector<8x8xbf16> to vector<1x8x8xbf16>
    tpu.vector_store %arg4[%c0_7, %c0_8, %c0_9], %9 {strides = array<i32>} : memref<4x8x8xbf16, #tpu.memory_space<vmem>>, vector<1x8x8xbf16>,
    %c0_10 = arith.constant 0 : index
    %c0_11 = arith.constant 0 : index
    %10 = vector.load %arg2[%c0_10, %c0_11] : memref<8x64xf32, #tpu.memory_space<vmem>>, vector<8x64xf32>
    %c1 = arith.constant 1 : index
    %c0_12 = arith.constant 0 : index
    %c0_13 = arith.constant 0 : index
    %11 = vector.load %arg1[%c1, %c0_12, %c0_13] : memref<4x64x64xf32, #tpu.memory_space<vmem>>, vector<1x64x64xf32>
    %12 = vector.shape_cast %11 : vector<1x64x64xf32> to vector<64x64xf32>
    %cst_14 = arith.constant dense<0.000000e+00> : vector<8x64xf32>
    %13 = tpu.matmul %10, %12, %cst_14 {dimension_numbers = #tpu.dot_dimension_numbers<[1], [0], [0], [1], [0, 0, 1, 1], [], []>} : vector<8x64xf32>, vector<64x64xf32>, vector<8x64xf32> -> vector<8x64xf32>
    %c0_15 = arith.constant 0 : index
    %c0_16 = arith.constant 0 : index
    %14 = vector.load %arg3[%c0_15, %c0_16] : memref<64x8xf32, #tpu.memory_space<vmem>>, vector<64x8xf32>
    %cst_17 = arith.constant dense<0.000000e+00> : vector<8x8xf32>
    %15 = tpu.matmul %13, %14, %cst_17 {dimension_numbers = #tpu.dot_dimension_numbers<[1], [0], [0], [1], [0, 0, 1, 1], [], []>} : vector<8x64xf32>, vector<64x8xf32>, vector<8x8xf32> -> vector<8x8xf32>
    %16 = arith.truncf %15 : vector<8x8xf32> to vector<8x8xbf16>
    %c1_18 = arith.constant 1 : index
    %c0_19 = arith.constant 0 : index
    %c0_20 = arith.constant 0 : index
    %17 = vector.load %arg4[%c1_18, %c0_19, %c0_20] : memref<4x8x8xbf16, #tpu.memory_space<vmem>>, vector<1x8x8xbf16>
    %18 = vector.shape_cast %17 : vector<1x8x8xbf16> to vector<8x8xbf16>
    %19 = vector.shape_cast %16 : vector<8x8xbf16> to vector<1x8x8xbf16>
    tpu.vector_store %arg4[%c1_18, %c0_19, %c0_20], %19 {strides = array<i32>} : memref<4x8x8xbf16, #tpu.memory_space<vmem>>, vector<1x8x8xbf16>,
    %c0_21 = arith.constant 0 : index
    %c0_22 = arith.constant 0 : index
    %20 = vector.load %arg2[%c0_21, %c0_22] : memref<8x64xf32, #tpu.memory_space<vmem>>, vector<8x64xf32>
    %c2 = arith.constant 2 : index
    %c0_23 = arith.constant 0 : index
    %c0_24 = arith.constant 0 : index
    %21 = vector.load %arg1[%c2, %c0_23, %c0_24] : memref<4x64x64xf32, #tpu.memory_space<vmem>>, vector<1x64x64xf32>
    %22 = vector.shape_cast %21 : vector<1x64x64xf32> to vector<64x64xf32>
    %cst_25 = arith.constant dense<0.000000e+00> : vector<8x64xf32>
    %23 = tpu.matmul %20, %22, %cst_25 {dimension_numbers = #tpu.dot_dimension_numbers<[1], [0], [0], [1], [0, 0, 1, 1], [], []>} : vector<8x64xf32>, vector<64x64xf32>, vector<8x64xf32> -> vector<8x64xf32>
    %c0_26 = arith.constant 0 : index
    %c0_27 = arith.constant 0 : index
    %24 = vector.load %arg3[%c0_26, %c0_27] : memref<64x8xf32, #tpu.memory_space<vmem>>, vector<64x8xf32>
    %cst_28 = arith.constant dense<0.000000e+00> : vector<8x8xf32>
    %25 = tpu.matmul %23, %24, %cst_28 {dimension_numbers = #tpu.dot_dimension_numbers<[1], [0], [0], [1], [0, 0, 1, 1], [], []>} : vector<8x64xf32>, vector<64x8xf32>, vector<8x8xf32> -> vector<8x8xf32>
    %26 = arith.truncf %25 : vector<8x8xf32> to vector<8x8xbf16>
    %c2_29 = arith.constant 2 : index
    %c0_30 = arith.constant 0 : index
    %c0_31 = arith.constant 0 : index
    %27 = vector.load %arg4[%c2_29, %c0_30, %c0_31] : memref<4x8x8xbf16, #tpu.memory_space<vmem>>, vector<1x8x8xbf16>
    %28 = vector.shape_cast %27 : vector<1x8x8xbf16> to vector<8x8xbf16>
    %29 = vector.shape_cast %26 : vector<8x8xbf16> to vector<1x8x8xbf16>
    tpu.vector_store %arg4[%c2_29, %c0_30, %c0_31], %29 {strides = array<i32>} : memref<4x8x8xbf16, #tpu.memory_space<vmem>>, vector<1x8x8xbf16>,
    %c0_32 = arith.constant 0 : index
    %c0_33 = arith.constant 0 : index
    %30 = vector.load %arg2[%c0_32, %c0_33] : memref<8x64xf32, #tpu.memory_space<vmem>>, vector<8x64xf32>
    %c3 = arith.constant 3 : index
    %c0_34 = arith.constant 0 : index
    %c0_35 = arith.constant 0 : index
    %31 = vector.load %arg1[%c3, %c0_34, %c0_35] : memref<4x64x64xf32, #tpu.memory_space<vmem>>, vector<1x64x64xf32>
    %32 = vector.shape_cast %31 : vector<1x64x64xf32> to vector<64x64xf32>
    %cst_36 = arith.constant dense<0.000000e+00> : vector<8x64xf32>
    %33 = tpu.matmul %30, %32, %cst_36 {dimension_numbers = #tpu.dot_dimension_numbers<[1], [0], [0], [1], [0, 0, 1, 1], [], []>} : vector<8x64xf32>, vector<64x64xf32>, vector<8x64xf32> -> vector<8x64xf32>
    %c0_37 = arith.constant 0 : index
    %c0_38 = arith.constant 0 : index
    %34 = vector.load %arg3[%c0_37, %c0_38] : memref<64x8xf32, #tpu.memory_space<vmem>>, vector<64x8xf32>
    %cst_39 = arith.constant dense<0.000000e+00> : vector<8x8xf32>
    %35 = tpu.matmul %33, %34, %cst_39 {dimension_numbers = #tpu.dot_dimension_numbers<[1], [0], [0], [1], [0, 0, 1, 1], [], []>} : vector<8x64xf32>, vector<64x8xf32>, vector<8x8xf32> -> vector<8x8xf32>
    %36 = arith.truncf %35 : vector<8x8xf32> to vector<8x8xbf16>
    %c3_40 = arith.constant 3 : index
    %c0_41 = arith.constant 0 : index
    %c0_42 = arith.constant 0 : index
    %37 = vector.load %arg4[%c3_40, %c0_41, %c0_42] : memref<4x8x8xbf16, #tpu.memory_space<vmem>>, vector<1x8x8xbf16>
    %38 = vector.shape_cast %37 : vector<1x8x8xbf16> to vector<8x8xbf16>
    %39 = vector.shape_cast %36 : vector<8x8xbf16> to vector<1x8x8xbf16>
    tpu.vector_store %arg4[%c3_40, %c0_41, %c0_42], %39 {strides = array<i32>} : memref<4x8x8xbf16, #tpu.memory_space<vmem>>, vector<1x8x8xbf16>,
    return
  }
  func.func @transform_0(%arg0: i32) -> (i32, i32, i32) {
    %c0_i32 = arith.constant 0 : i32
    %c0_i32_0 = arith.constant 0 : i32
    %c0_i32_1 = arith.constant 0 : i32
    return %arg0, %c0_i32, %c0_i32_0 : i32, i32, i32
  }
  func.func @transform_1(%arg0: i32) -> (i32, i32) {
    %c0_i32 = arith.constant 0 : i32
    %c0_i32_0 = arith.constant 0 : i32
    %c0_i32_1 = arith.constant 0 : i32
    return %c0_i32, %c0_i32_0 : i32, i32
  }
  func.func @transform_2(%arg0: i32) -> (i32, i32) {
    %c0_i32 = arith.constant 0 : i32
    %c0_i32_0 = arith.constant 0 : i32
    %c0_i32_1 = arith.constant 0 : i32
    return %c0_i32, %c0_i32_0 : i32, i32
  }
  func.func @transform_3(%arg0: i32) -> (i32, i32, i32) {
    %c0_i32 = arith.constant 0 : i32
    %c0_i32_0 = arith.constant 0 : i32
    %c0_i32_1 = arith.constant 0 : i32
    return %arg0, %c0_i32, %c0_i32_0 : i32, i32, i32
  }
}

module attributes {stable_mosaic.version = 11 : i64} {
  func.func @_conv_mm_kernel(%arg0: i32, %arg1: i32, %arg2: memref<1x72x64xbf16, #tpu.memory_space<vmem>>, %arg3: memref<8x72xbf16, #tpu.memory_space<vmem>>, %arg4: memref<8x1xf32, #tpu.memory_space<vmem>>, %arg5: memref<8x1xf32, #tpu.memory_space<vmem>>, %arg6: memref<1x8x64xbf16, #tpu.memory_space<vmem>>) attributes {dimension_semantics = [#tpu.dimension_semantics<parallel>, #tpu.dimension_semantics<parallel>], iteration_bounds = array<i64: 4, 1>, scalar_prefetch = 0 : i64, scratch_operands = 0 : i64, tpu.core_type = #tpu.core_type<tc>, window_params = [{transform_indices = @transform_0, window_bounds = array<i64: 1, 72, 64>}, {pipeline_mode = #tpu.pipeline_mode<synchronous>, transform_indices = @transform_1, window_bounds = array<i64: 8, 72>}, {pipeline_mode = #tpu.pipeline_mode<synchronous>, transform_indices = @transform_2, window_bounds = array<i64: 8, 1>}, {pipeline_mode = #tpu.pipeline_mode<synchronous>, transform_indices = @transform_3, window_bounds = array<i64: 8, 1>}, {transform_indices = @transform_4, window_bounds = array<i64: 1, 8, 64>}]} {
    %c0 = arith.constant 0 : index
    %c0_0 = arith.constant 0 : index
    %0 = vector.load %arg3[%c0, %c0_0] : memref<8x72xbf16, #tpu.memory_space<vmem>>, vector<8x72xbf16>
    %c0_1 = arith.constant 0 : index
    %c0_2 = arith.constant 0 : index
    %c0_3 = arith.constant 0 : index
    %1 = vector.load %arg2[%c0_1, %c0_2, %c0_3] : memref<1x72x64xbf16, #tpu.memory_space<vmem>>, vector<1x72x64xbf16>
    %2 = vector.shape_cast %1 : vector<1x72x64xbf16> to vector<72x64xbf16>
    %cst = arith.constant dense<0.000000e+00> : vector<8x64xf32>
    %3 = tpu.matmul %0, %2, %cst {dimension_numbers = #tpu.dot_dimension_numbers<[1], [0], [0], [1], [0, 0, 1, 1], [], []>} : vector<8x72xbf16>, vector<72x64xbf16>, vector<8x64xf32> -> vector<8x64xf32>
    %c0_4 = arith.constant 0 : index
    %c0_5 = arith.constant 0 : index
    %4 = vector.load %arg4[%c0_4, %c0_5] : memref<8x1xf32, #tpu.memory_space<vmem>>, vector<8x1xf32>
    %5 = vector.broadcast %4 : vector<8x1xf32> to vector<8x64xf32>
    %6 = arith.mulf %3, %5 : vector<8x64xf32>
    %c0_6 = arith.constant 0 : index
    %c0_7 = arith.constant 0 : index
    %7 = vector.load %arg5[%c0_6, %c0_7] : memref<8x1xf32, #tpu.memory_space<vmem>>, vector<8x1xf32>
    %8 = vector.broadcast %7 : vector<8x1xf32> to vector<8x64xf32>
    %9 = arith.addf %6, %8 : vector<8x64xf32>
    %cst_8 = arith.constant 0.000000e+00 : f32
    %10 = vector.broadcast %cst_8 : f32 to vector<8x64xf32>
    %11 = arith.maximumf %9, %10 : vector<8x64xf32>
    %12 = arith.truncf %11 : vector<8x64xf32> to vector<8x64xbf16>
    %c0_9 = arith.constant 0 : index
    %c0_10 = arith.constant 0 : index
    %c0_11 = arith.constant 0 : index
    %13 = vector.load %arg6[%c0_9, %c0_10, %c0_11] : memref<1x8x64xbf16, #tpu.memory_space<vmem>>, vector<1x8x64xbf16>
    %14 = vector.shape_cast %13 : vector<1x8x64xbf16> to vector<8x64xbf16>
    %15 = vector.shape_cast %12 : vector<8x64xbf16> to vector<1x8x64xbf16>
    tpu.vector_store %arg6[%c0_9, %c0_10, %c0_11], %15 {strides = array<i32>} : memref<1x8x64xbf16, #tpu.memory_space<vmem>>, vector<1x8x64xbf16>,
    return
  }
  func.func @transform_0(%arg0: i32, %arg1: i32) -> (i32, i32, i32) {
    %c0_i32 = arith.constant 0 : i32
    %c0_i32_0 = arith.constant 0 : i32
    return %arg0, %c0_i32, %arg1 : i32, i32, i32
  }
  func.func @transform_1(%arg0: i32, %arg1: i32) -> (i32, i32) {
    %c0_i32 = arith.constant 0 : i32
    %c0_i32_0 = arith.constant 0 : i32
    %c0_i32_1 = arith.constant 0 : i32
    return %c0_i32, %c0_i32_0 : i32, i32
  }
  func.func @transform_2(%arg0: i32, %arg1: i32) -> (i32, i32) {
    %c0_i32 = arith.constant 0 : i32
    %c0_i32_0 = arith.constant 0 : i32
    %c0_i32_1 = arith.constant 0 : i32
    return %c0_i32, %c0_i32_0 : i32, i32
  }
  func.func @transform_3(%arg0: i32, %arg1: i32) -> (i32, i32) {
    %c0_i32 = arith.constant 0 : i32
    %c0_i32_0 = arith.constant 0 : i32
    %c0_i32_1 = arith.constant 0 : i32
    return %c0_i32, %c0_i32_0 : i32, i32
  }
  func.func @transform_4(%arg0: i32, %arg1: i32) -> (i32, i32, i32) {
    %c0_i32 = arith.constant 0 : i32
    %c0_i32_0 = arith.constant 0 : i32
    return %arg0, %c0_i32, %arg1 : i32, i32, i32
  }
}

module attributes {stable_mosaic.version = 11 : i64} {
  func.func @_conv_mm_kernel(%arg0: i32, %arg1: i32, %arg2: memref<1x8x64xbf16, #tpu.memory_space<vmem>>, %arg3: memref<32x8xbf16, #tpu.memory_space<vmem>>, %arg4: memref<32x1xf32, #tpu.memory_space<vmem>>, %arg5: memref<32x1xf32, #tpu.memory_space<vmem>>, %arg6: memref<1x32x64xbf16, #tpu.memory_space<vmem>>) attributes {dimension_semantics = [#tpu.dimension_semantics<parallel>, #tpu.dimension_semantics<parallel>], iteration_bounds = array<i64: 4, 1>, scalar_prefetch = 0 : i64, scratch_operands = 0 : i64, tpu.core_type = #tpu.core_type<tc>, window_params = [{transform_indices = @transform_0, window_bounds = array<i64: 1, 8, 64>}, {pipeline_mode = #tpu.pipeline_mode<synchronous>, transform_indices = @transform_1, window_bounds = array<i64: 32, 8>}, {pipeline_mode = #tpu.pipeline_mode<synchronous>, transform_indices = @transform_2, window_bounds = array<i64: 32, 1>}, {pipeline_mode = #tpu.pipeline_mode<synchronous>, transform_indices = @transform_3, window_bounds = array<i64: 32, 1>}, {transform_indices = @transform_4, window_bounds = array<i64: 1, 32, 64>}]} {
    %c0 = arith.constant 0 : index
    %c0_0 = arith.constant 0 : index
    %0 = vector.load %arg3[%c0, %c0_0] : memref<32x8xbf16, #tpu.memory_space<vmem>>, vector<32x8xbf16>
    %c0_1 = arith.constant 0 : index
    %c0_2 = arith.constant 0 : index
    %c0_3 = arith.constant 0 : index
    %1 = vector.load %arg2[%c0_1, %c0_2, %c0_3] : memref<1x8x64xbf16, #tpu.memory_space<vmem>>, vector<1x8x64xbf16>
    %2 = vector.shape_cast %1 : vector<1x8x64xbf16> to vector<8x64xbf16>
    %cst = arith.constant dense<0.000000e+00> : vector<32x64xf32>
    %3 = tpu.matmul %0, %2, %cst {dimension_numbers = #tpu.dot_dimension_numbers<[1], [0], [0], [1], [0, 0, 1, 1], [], []>} : vector<32x8xbf16>, vector<8x64xbf16>, vector<32x64xf32> -> vector<32x64xf32>
    %c0_4 = arith.constant 0 : index
    %c0_5 = arith.constant 0 : index
    %4 = vector.load %arg4[%c0_4, %c0_5] : memref<32x1xf32, #tpu.memory_space<vmem>>, vector<32x1xf32>
    %5 = vector.broadcast %4 : vector<32x1xf32> to vector<32x64xf32>
    %6 = arith.mulf %3, %5 : vector<32x64xf32>
    %c0_6 = arith.constant 0 : index
    %c0_7 = arith.constant 0 : index
    %7 = vector.load %arg5[%c0_6, %c0_7] : memref<32x1xf32, #tpu.memory_space<vmem>>, vector<32x1xf32>
    %8 = vector.broadcast %7 : vector<32x1xf32> to vector<32x64xf32>
    %9 = arith.addf %6, %8 : vector<32x64xf32>
    %cst_8 = arith.constant 0.000000e+00 : f32
    %10 = vector.broadcast %cst_8 : f32 to vector<32x64xf32>
    %11 = arith.maximumf %9, %10 : vector<32x64xf32>
    %12 = arith.truncf %11 : vector<32x64xf32> to vector<32x64xbf16>
    %c0_9 = arith.constant 0 : index
    %c0_10 = arith.constant 0 : index
    %c0_11 = arith.constant 0 : index
    %13 = vector.load %arg6[%c0_9, %c0_10, %c0_11] : memref<1x32x64xbf16, #tpu.memory_space<vmem>>, vector<1x32x64xbf16>
    %14 = vector.shape_cast %13 : vector<1x32x64xbf16> to vector<32x64xbf16>
    %15 = vector.shape_cast %12 : vector<32x64xbf16> to vector<1x32x64xbf16>
    tpu.vector_store %arg6[%c0_9, %c0_10, %c0_11], %15 {strides = array<i32>} : memref<1x32x64xbf16, #tpu.memory_space<vmem>>, vector<1x32x64xbf16>,
    return
  }
  func.func @transform_0(%arg0: i32, %arg1: i32) -> (i32, i32, i32) {
    %c0_i32 = arith.constant 0 : i32
    %c0_i32_0 = arith.constant 0 : i32
    return %arg0, %c0_i32, %arg1 : i32, i32, i32
  }
  func.func @transform_1(%arg0: i32, %arg1: i32) -> (i32, i32) {
    %c0_i32 = arith.constant 0 : i32
    %c0_i32_0 = arith.constant 0 : i32
    %c0_i32_1 = arith.constant 0 : i32
    return %c0_i32, %c0_i32_0 : i32, i32
  }
  func.func @transform_2(%arg0: i32, %arg1: i32) -> (i32, i32) {
    %c0_i32 = arith.constant 0 : i32
    %c0_i32_0 = arith.constant 0 : i32
    %c0_i32_1 = arith.constant 0 : i32
    return %c0_i32, %c0_i32_0 : i32, i32
  }
  func.func @transform_3(%arg0: i32, %arg1: i32) -> (i32, i32) {
    %c0_i32 = arith.constant 0 : i32
    %c0_i32_0 = arith.constant 0 : i32
    %c0_i32_1 = arith.constant 0 : i32
    return %c0_i32, %c0_i32_0 : i32, i32
  }
  func.func @transform_4(%arg0: i32, %arg1: i32) -> (i32, i32, i32) {
    %c0_i32 = arith.constant 0 : i32
    %c0_i32_0 = arith.constant 0 : i32
    return %arg0, %c0_i32, %arg1 : i32, i32, i32
  }
}

module attributes {stable_mosaic.version = 11 : i64} {
  func.func @_conv_mm_kernel(%arg0: i32, %arg1: i32, %arg2: memref<1x8x256xbf16, #tpu.memory_space<vmem>>, %arg3: memref<5x8xbf16, #tpu.memory_space<vmem>>, %arg4: memref<5x1xf32, #tpu.memory_space<vmem>>, %arg5: memref<5x1xf32, #tpu.memory_space<vmem>>, %arg6: memref<1x5x256xf32, #tpu.memory_space<vmem>>) attributes {dimension_semantics = [#tpu.dimension_semantics<parallel>, #tpu.dimension_semantics<parallel>], iteration_bounds = array<i64: 4, 1>, scalar_prefetch = 0 : i64, scratch_operands = 0 : i64, tpu.core_type = #tpu.core_type<tc>, window_params = [{transform_indices = @transform_0, window_bounds = array<i64: 1, 8, 256>}, {pipeline_mode = #tpu.pipeline_mode<synchronous>, transform_indices = @transform_1, window_bounds = array<i64: 5, 8>}, {pipeline_mode = #tpu.pipeline_mode<synchronous>, transform_indices = @transform_2, window_bounds = array<i64: 5, 1>}, {pipeline_mode = #tpu.pipeline_mode<synchronous>, transform_indices = @transform_3, window_bounds = array<i64: 5, 1>}, {transform_indices = @transform_4, window_bounds = array<i64: 1, 5, 256>}]} {
    %c0 = arith.constant 0 : index
    %c0_0 = arith.constant 0 : index
    %0 = vector.load %arg3[%c0, %c0_0] : memref<5x8xbf16, #tpu.memory_space<vmem>>, vector<5x8xbf16>
    %c0_1 = arith.constant 0 : index
    %c0_2 = arith.constant 0 : index
    %c0_3 = arith.constant 0 : index
    %1 = vector.load %arg2[%c0_1, %c0_2, %c0_3] : memref<1x8x256xbf16, #tpu.memory_space<vmem>>, vector<1x8x256xbf16>
    %2 = vector.shape_cast %1 : vector<1x8x256xbf16> to vector<8x256xbf16>
    %cst = arith.constant dense<0.000000e+00> : vector<5x256xf32>
    %3 = tpu.matmul %0, %2, %cst {dimension_numbers = #tpu.dot_dimension_numbers<[1], [0], [0], [1], [0, 0, 1, 1], [], []>} : vector<5x8xbf16>, vector<8x256xbf16>, vector<5x256xf32> -> vector<5x256xf32>
    %c0_4 = arith.constant 0 : index
    %c0_5 = arith.constant 0 : index
    %4 = vector.load %arg4[%c0_4, %c0_5] : memref<5x1xf32, #tpu.memory_space<vmem>>, vector<5x1xf32>
    %5 = vector.broadcast %4 : vector<5x1xf32> to vector<5x256xf32>
    %6 = arith.mulf %3, %5 : vector<5x256xf32>
    %c0_6 = arith.constant 0 : index
    %c0_7 = arith.constant 0 : index
    %7 = vector.load %arg5[%c0_6, %c0_7] : memref<5x1xf32, #tpu.memory_space<vmem>>, vector<5x1xf32>
    %8 = vector.broadcast %7 : vector<5x1xf32> to vector<5x256xf32>
    %9 = arith.addf %6, %8 : vector<5x256xf32>
    %c0_8 = arith.constant 0 : index
    %c0_9 = arith.constant 0 : index
    %c0_10 = arith.constant 0 : index
    %10 = vector.load %arg6[%c0_8, %c0_9, %c0_10] : memref<1x5x256xf32, #tpu.memory_space<vmem>>, vector<1x5x256xf32>
    %11 = vector.shape_cast %10 : vector<1x5x256xf32> to vector<5x256xf32>
    %12 = vector.shape_cast %9 : vector<5x256xf32> to vector<1x5x256xf32>
    tpu.vector_store %arg6[%c0_8, %c0_9, %c0_10], %12 {strides = array<i32>} : memref<1x5x256xf32, #tpu.memory_space<vmem>>, vector<1x5x256xf32>,
    return
  }
  func.func @transform_0(%arg0: i32, %arg1: i32) -> (i32, i32, i32) {
    %c0_i32 = arith.constant 0 : i32
    %c0_i32_0 = arith.constant 0 : i32
    return %arg0, %c0_i32, %arg1 : i32, i32, i32
  }
  func.func @transform_1(%arg0: i32, %arg1: i32) -> (i32, i32) {
    %c0_i32 = arith.constant 0 : i32
    %c0_i32_0 = arith.constant 0 : i32
    %c0_i32_1 = arith.constant 0 : i32
    return %c0_i32, %c0_i32_0 : i32, i32
  }
  func.func @transform_2(%arg0: i32, %arg1: i32) -> (i32, i32) {
    %c0_i32 = arith.constant 0 : i32
    %c0_i32_0 = arith.constant 0 : i32
    %c0_i32_1 = arith.constant 0 : i32
    return %c0_i32, %c0_i32_0 : i32, i32
  }
  func.func @transform_3(%arg0: i32, %arg1: i32) -> (i32, i32) {
    %c0_i32 = arith.constant 0 : i32
    %c0_i32_0 = arith.constant 0 : i32
    %c0_i32_1 = arith.constant 0 : i32
    return %c0_i32, %c0_i32_0 : i32, i32
  }
  func.func @transform_4(%arg0: i32, %arg1: i32) -> (i32, i32, i32) {
    %c0_i32 = arith.constant 0 : i32
    %c0_i32_0 = arith.constant 0 : i32
    return %arg0, %c0_i32, %arg1 : i32, i32, i32
  }
}

module attributes {stable_mosaic.version = 11 : i64} {
  func.func @_resize_kernel(%arg0: i32, %arg1: memref<5x16x16xf32, #tpu.memory_space<vmem>>, %arg2: memref<64x16xf32, #tpu.memory_space<vmem>>, %arg3: memref<16x64xf32, #tpu.memory_space<vmem>>, %arg4: memref<5x64x64xf32, #tpu.memory_space<vmem>>) attributes {dimension_semantics = [#tpu.dimension_semantics<parallel>], iteration_bounds = array<i64: 4>, scalar_prefetch = 0 : i64, scratch_operands = 0 : i64, tpu.core_type = #tpu.core_type<tc>, window_params = [{transform_indices = @transform_0, window_bounds = array<i64: 5, 16, 16>}, {pipeline_mode = #tpu.pipeline_mode<synchronous>, transform_indices = @transform_1, window_bounds = array<i64: 64, 16>}, {pipeline_mode = #tpu.pipeline_mode<synchronous>, transform_indices = @transform_2, window_bounds = array<i64: 16, 64>}, {transform_indices = @transform_3, window_bounds = array<i64: 5, 64, 64>}]} {
    %c0 = arith.constant 0 : index
    %c0_0 = arith.constant 0 : index
    %0 = vector.load %arg2[%c0, %c0_0] : memref<64x16xf32, #tpu.memory_space<vmem>>, vector<64x16xf32>
    %c0_1 = arith.constant 0 : index
    %c0_2 = arith.constant 0 : index
    %c0_3 = arith.constant 0 : index
    %1 = vector.load %arg1[%c0_1, %c0_2, %c0_3] : memref<5x16x16xf32, #tpu.memory_space<vmem>>, vector<1x16x16xf32>
    %2 = vector.shape_cast %1 : vector<1x16x16xf32> to vector<16x16xf32>
    %cst = arith.constant dense<0.000000e+00> : vector<64x16xf32>
    %3 = tpu.matmul %0, %2, %cst {dimension_numbers = #tpu.dot_dimension_numbers<[1], [0], [0], [1], [0, 0, 1, 1], [], []>} : vector<64x16xf32>, vector<16x16xf32>, vector<64x16xf32> -> vector<64x16xf32>
    %c0_4 = arith.constant 0 : index
    %c0_5 = arith.constant 0 : index
    %4 = vector.load %arg3[%c0_4, %c0_5] : memref<16x64xf32, #tpu.memory_space<vmem>>, vector<16x64xf32>
    %cst_6 = arith.constant dense<0.000000e+00> : vector<64x64xf32>
    %5 = tpu.matmul %3, %4, %cst_6 {dimension_numbers = #tpu.dot_dimension_numbers<[1], [0], [0], [1], [0, 0, 1, 1], [], []>} : vector<64x16xf32>, vector<16x64xf32>, vector<64x64xf32> -> vector<64x64xf32>
    %c0_7 = arith.constant 0 : index
    %c0_8 = arith.constant 0 : index
    %c0_9 = arith.constant 0 : index
    %6 = vector.load %arg4[%c0_7, %c0_8, %c0_9] : memref<5x64x64xf32, #tpu.memory_space<vmem>>, vector<1x64x64xf32>
    %7 = vector.shape_cast %6 : vector<1x64x64xf32> to vector<64x64xf32>
    %8 = vector.shape_cast %5 : vector<64x64xf32> to vector<1x64x64xf32>
    tpu.vector_store %arg4[%c0_7, %c0_8, %c0_9], %8 {strides = array<i32>} : memref<5x64x64xf32, #tpu.memory_space<vmem>>, vector<1x64x64xf32>,
    %c0_10 = arith.constant 0 : index
    %c0_11 = arith.constant 0 : index
    %9 = vector.load %arg2[%c0_10, %c0_11] : memref<64x16xf32, #tpu.memory_space<vmem>>, vector<64x16xf32>
    %c1 = arith.constant 1 : index
    %c0_12 = arith.constant 0 : index
    %c0_13 = arith.constant 0 : index
    %10 = vector.load %arg1[%c1, %c0_12, %c0_13] : memref<5x16x16xf32, #tpu.memory_space<vmem>>, vector<1x16x16xf32>
    %11 = vector.shape_cast %10 : vector<1x16x16xf32> to vector<16x16xf32>
    %cst_14 = arith.constant dense<0.000000e+00> : vector<64x16xf32>
    %12 = tpu.matmul %9, %11, %cst_14 {dimension_numbers = #tpu.dot_dimension_numbers<[1], [0], [0], [1], [0, 0, 1, 1], [], []>} : vector<64x16xf32>, vector<16x16xf32>, vector<64x16xf32> -> vector<64x16xf32>
    %c0_15 = arith.constant 0 : index
    %c0_16 = arith.constant 0 : index
    %13 = vector.load %arg3[%c0_15, %c0_16] : memref<16x64xf32, #tpu.memory_space<vmem>>, vector<16x64xf32>
    %cst_17 = arith.constant dense<0.000000e+00> : vector<64x64xf32>
    %14 = tpu.matmul %12, %13, %cst_17 {dimension_numbers = #tpu.dot_dimension_numbers<[1], [0], [0], [1], [0, 0, 1, 1], [], []>} : vector<64x16xf32>, vector<16x64xf32>, vector<64x64xf32> -> vector<64x64xf32>
    %c1_18 = arith.constant 1 : index
    %c0_19 = arith.constant 0 : index
    %c0_20 = arith.constant 0 : index
    %15 = vector.load %arg4[%c1_18, %c0_19, %c0_20] : memref<5x64x64xf32, #tpu.memory_space<vmem>>, vector<1x64x64xf32>
    %16 = vector.shape_cast %15 : vector<1x64x64xf32> to vector<64x64xf32>
    %17 = vector.shape_cast %14 : vector<64x64xf32> to vector<1x64x64xf32>
    tpu.vector_store %arg4[%c1_18, %c0_19, %c0_20], %17 {strides = array<i32>} : memref<5x64x64xf32, #tpu.memory_space<vmem>>, vector<1x64x64xf32>,
    %c0_21 = arith.constant 0 : index
    %c0_22 = arith.constant 0 : index
    %18 = vector.load %arg2[%c0_21, %c0_22] : memref<64x16xf32, #tpu.memory_space<vmem>>, vector<64x16xf32>
    %c2 = arith.constant 2 : index
    %c0_23 = arith.constant 0 : index
    %c0_24 = arith.constant 0 : index
    %19 = vector.load %arg1[%c2, %c0_23, %c0_24] : memref<5x16x16xf32, #tpu.memory_space<vmem>>, vector<1x16x16xf32>
    %20 = vector.shape_cast %19 : vector<1x16x16xf32> to vector<16x16xf32>
    %cst_25 = arith.constant dense<0.000000e+00> : vector<64x16xf32>
    %21 = tpu.matmul %18, %20, %cst_25 {dimension_numbers = #tpu.dot_dimension_numbers<[1], [0], [0], [1], [0, 0, 1, 1], [], []>} : vector<64x16xf32>, vector<16x16xf32>, vector<64x16xf32> -> vector<64x16xf32>
    %c0_26 = arith.constant 0 : index
    %c0_27 = arith.constant 0 : index
    %22 = vector.load %arg3[%c0_26, %c0_27] : memref<16x64xf32, #tpu.memory_space<vmem>>, vector<16x64xf32>
    %cst_28 = arith.constant dense<0.000000e+00> : vector<64x64xf32>
    %23 = tpu.matmul %21, %22, %cst_28 {dimension_numbers = #tpu.dot_dimension_numbers<[1], [0], [0], [1], [0, 0, 1, 1], [], []>} : vector<64x16xf32>, vector<16x64xf32>, vector<64x64xf32> -> vector<64x64xf32>
    %c2_29 = arith.constant 2 : index
    %c0_30 = arith.constant 0 : index
    %c0_31 = arith.constant 0 : index
    %24 = vector.load %arg4[%c2_29, %c0_30, %c0_31] : memref<5x64x64xf32, #tpu.memory_space<vmem>>, vector<1x64x64xf32>
    %25 = vector.shape_cast %24 : vector<1x64x64xf32> to vector<64x64xf32>
    %26 = vector.shape_cast %23 : vector<64x64xf32> to vector<1x64x64xf32>
    tpu.vector_store %arg4[%c2_29, %c0_30, %c0_31], %26 {strides = array<i32>} : memref<5x64x64xf32, #tpu.memory_space<vmem>>, vector<1x64x64xf32>,
    %c0_32 = arith.constant 0 : index
    %c0_33 = arith.constant 0 : index
    %27 = vector.load %arg2[%c0_32, %c0_33] : memref<64x16xf32, #tpu.memory_space<vmem>>, vector<64x16xf32>
    %c3 = arith.constant 3 : index
    %c0_34 = arith.constant 0 : index
    %c0_35 = arith.constant 0 : index
    %28 = vector.load %arg1[%c3, %c0_34, %c0_35] : memref<5x16x16xf32, #tpu.memory_space<vmem>>, vector<1x16x16xf32>
    %29 = vector.shape_cast %28 : vector<1x16x16xf32> to vector<16x16xf32>
    %cst_36 = arith.constant dense<0.000000e+00> : vector<64x16xf32>
    %30 = tpu.matmul %27, %29, %cst_36 {dimension_numbers = #tpu.dot_dimension_numbers<[1], [0], [0], [1], [0, 0, 1, 1], [], []>} : vector<64x16xf32>, vector<16x16xf32>, vector<64x16xf32> -> vector<64x16xf32>
    %c0_37 = arith.constant 0 : index
    %c0_38 = arith.constant 0 : index
    %31 = vector.load %arg3[%c0_37, %c0_38] : memref<16x64xf32, #tpu.memory_space<vmem>>, vector<16x64xf32>
    %cst_39 = arith.constant dense<0.000000e+00> : vector<64x64xf32>
    %32 = tpu.matmul %30, %31, %cst_39 {dimension_numbers = #tpu.dot_dimension_numbers<[1], [0], [0], [1], [0, 0, 1, 1], [], []>} : vector<64x16xf32>, vector<16x64xf32>, vector<64x64xf32> -> vector<64x64xf32>
    %c3_40 = arith.constant 3 : index
    %c0_41 = arith.constant 0 : index
    %c0_42 = arith.constant 0 : index
    %33 = vector.load %arg4[%c3_40, %c0_41, %c0_42] : memref<5x64x64xf32, #tpu.memory_space<vmem>>, vector<1x64x64xf32>
    %34 = vector.shape_cast %33 : vector<1x64x64xf32> to vector<64x64xf32>
    %35 = vector.shape_cast %32 : vector<64x64xf32> to vector<1x64x64xf32>
    tpu.vector_store %arg4[%c3_40, %c0_41, %c0_42], %35 {strides = array<i32>} : memref<5x64x64xf32, #tpu.memory_space<vmem>>, vector<1x64x64xf32>,
    %c0_43 = arith.constant 0 : index
    %c0_44 = arith.constant 0 : index
    %36 = vector.load %arg2[%c0_43, %c0_44] : memref<64x16xf32, #tpu.memory_space<vmem>>, vector<64x16xf32>
    %c4 = arith.constant 4 : index
    %c0_45 = arith.constant 0 : index
    %c0_46 = arith.constant 0 : index
    %37 = vector.load %arg1[%c4, %c0_45, %c0_46] : memref<5x16x16xf32, #tpu.memory_space<vmem>>, vector<1x16x16xf32>
    %38 = vector.shape_cast %37 : vector<1x16x16xf32> to vector<16x16xf32>
    %cst_47 = arith.constant dense<0.000000e+00> : vector<64x16xf32>
    %39 = tpu.matmul %36, %38, %cst_47 {dimension_numbers = #tpu.dot_dimension_numbers<[1], [0], [0], [1], [0, 0, 1, 1], [], []>} : vector<64x16xf32>, vector<16x16xf32>, vector<64x16xf32> -> vector<64x16xf32>
    %c0_48 = arith.constant 0 : index
    %c0_49 = arith.constant 0 : index
    %40 = vector.load %arg3[%c0_48, %c0_49] : memref<16x64xf32, #tpu.memory_space<vmem>>, vector<16x64xf32>
    %cst_50 = arith.constant dense<0.000000e+00> : vector<64x64xf32>
    %41 = tpu.matmul %39, %40, %cst_50 {dimension_numbers = #tpu.dot_dimension_numbers<[1], [0], [0], [1], [0, 0, 1, 1], [], []>} : vector<64x16xf32>, vector<16x64xf32>, vector<64x64xf32> -> vector<64x64xf32>
    %c4_51 = arith.constant 4 : index
    %c0_52 = arith.constant 0 : index
    %c0_53 = arith.constant 0 : index
    %42 = vector.load %arg4[%c4_51, %c0_52, %c0_53] : memref<5x64x64xf32, #tpu.memory_space<vmem>>, vector<1x64x64xf32>
    %43 = vector.shape_cast %42 : vector<1x64x64xf32> to vector<64x64xf32>
    %44 = vector.shape_cast %41 : vector<64x64xf32> to vector<1x64x64xf32>
    tpu.vector_store %arg4[%c4_51, %c0_52, %c0_53], %44 {strides = array<i32>} : memref<5x64x64xf32, #tpu.memory_space<vmem>>, vector<1x64x64xf32>,
    return
  }
  func.func @transform_0(%arg0: i32) -> (i32, i32, i32) {
    %c0_i32 = arith.constant 0 : i32
    %c0_i32_0 = arith.constant 0 : i32
    %c0_i32_1 = arith.constant 0 : i32
    return %arg0, %c0_i32, %c0_i32_0 : i32, i32, i32
  }
  func.func @transform_1(%arg0: i32) -> (i32, i32) {
    %c0_i32 = arith.constant 0 : i32
    %c0_i32_0 = arith.constant 0 : i32
    %c0_i32_1 = arith.constant 0 : i32
    return %c0_i32, %c0_i32_0 : i32, i32
  }
  func.func @transform_2(%arg0: i32) -> (i32, i32) {
    %c0_i32 = arith.constant 0 : i32
    %c0_i32_0 = arith.constant 0 : i32
    %c0_i32_1 = arith.constant 0 : i32
    return %c0_i32, %c0_i32_0 : i32, i32
  }
  func.func @transform_3(%arg0: i32) -> (i32, i32, i32) {
    %c0_i32 = arith.constant 0 : i32
    %c0_i32_0 = arith.constant 0 : i32
    %c0_i32_1 = arith.constant 0 : i32
    return %arg0, %c0_i32, %c0_i32_0 : i32, i32, i32
  }
}

</mosaic_0001>

<bundles_post_ra>
// kernel: prop_head_forward.25
= control target key start
LH: loop header
LB: loop body
LE: loop exit
PB: predicated region body
PF: predicated region fallthrough
CT: control target
= control target key end

     0   :  { %s478_s15 = smov 0   ;;  %s480_s16 = smov 0   ;;  %s520_s0 = inlined_call_operand.vmem [shape: bf16[2,16,64], index: 0, kind: input, shape index: {}]   ;;  %s521_s1 = inlined_call_operand.vmem [shape: bf16[8,16], index: 1, kind: input, shape index: {}]   ;;  %s522_s2 = inlined_call_operand.vmem [shape: f32[8,1], index: 2, kind: input, shape index: {}]   ;;  %s523_s3 = inlined_call_operand.vmem [shape: f32[8,1], index: 3, kind: input, shape index: {}]   ;;  %s524_s4 = inlined_call_operand.vmem [shape: bf16[2,8,64], index: 4, kind: output, shape index: {}]  }
   0x1   :  { %s482_s17 = smov 0  }
   0x2 LB: > { %s26_s18 = sadd.s32 1, %s444_s16  ;;  %p380_p0 = scmp.ge.s32.totalorder %s448_s17, 1  ;;  %s448_s17 = sphi %s482_s17, %s14_s17   ;;  %s444_s16 = sphi %s480_s16, %s526_s16   ;;  %s440_s15 = sphi %s478_s15, %s525_s15  }
   0x3   : > { %p28_p1 = scmp.ge.s32.totalorder %s26_s18, 2  ;;  %p181_p2 = scmp.lt.s32.totalorder %s448_s17, 3 }
   0x5   : > { %s528_s18 = smov (%p28_p1, %s26_s18), 0  ;;  %p182_p3 = pnand %p380_p0, %p181_p2 }
   0x6   : > { %p212_p4 = scmp.lt.s32.totalorder (!%p182_p3), %s440_s15, 1 }
   0x7   : > { %185 = sbr.rel (%p182_p3) target bundleno = 221 (0xdd), region = 36 }
   0xc   : > { %v450_v0 = vmov 0.0   ;;  %vm451_vm0 = vmmov 0   ;;  %v281_v1 = vld [vmem:[%s522_s2] sm:$0xff]  ;;  %s530_s15 = smov (!%p212_p4, %s440_s15), 1  ;;  %v452_v2 = vmov 0   ;;  %vm237_vm1 = vcmask 130048  }
   0xd   : > { %391 = vmatprep.subr.bf16.mxu0 %v450_v0  ;;  %393 = vmatprep.mubr.msk.bf16.mxu0 %vm451_vm0, %v450_v0  ;;  %s388_s21 = sshll.u32 %s530_s15, 3  ;;  %v288_v3 = vld [vmem:[%s523_s3] sm:$0xff]  ;;  %s383_s29 = sshll.u32 %s530_s15, 2  ;;  %vm297_vm2 = vcmask 519168  }
   0xe   : > { %424 = vset.pattern.permute.xlu0 %v452_v2  ;;  %s219_s26 = scalar_lea.vmem %s520_s0, %s388_s21  ;;  %v228_v5 = vld [vmem:[%s521_s1] sm:$0xf]  ;;  %s226_s6 = scalar_lea.vmem %s524_s4, %s383_s29 }
   0xf   : > { %284 = vperm.xlu0 %424, %v281_v1   ;;  %v425_v4 = vld [vmem:[%s219_s26] sm:$0xff]  }
  0x10   : > { %392 = vmatpush3.bf16.msra.mxu0 %v425_v4 }
  0x13   : > { %291 = vperm.xlu0 %424, %v288_v3   ;;  %394 = vmatmul.mubr.msk.bf16.vlgmr.msra.gmra.mxu0 %vm237_vm1, %v228_v5 }
  0x8a   : > { %v285_v6 = vpop.permute.xlu0 %284 }
  0x8e   : > { %v292_v9 = vpop.permute.xlu0 %291 }
  0xd3   : > { %v275_v7 = vpop.f32.mrf.mxu0 }
  0xd4   : > { %v287_v8 = vmul.f32 %v285_v6, %v275_v7 }
  0xd5   : > { %v395_v10 = vpop.f32.mrf.mxu0 }
  0xd6   : > { %v294_v11 = vadd.f32 %v292_v9, %v287_v8 }
  0xd7   : > { %v278_v12 = vpop.f32.mrf.mxu0 }
  0xd8   : > { %v295_v13 = vmax.f32 %v294_v11, 0.0 }
  0xd9   : > { %v396_v14 = vpop.f32.mrf.mxu0 }
  0xda   : > { %v296_v15 = vpack.c.bf16 %v295_v13, %v295_v13 }
  0xdc   : > { %298 = vst.msk [vmem:[%s226_s6] sm:$0xf] %vm297_vm2, %v296_v15 }
  0xdd PF: > { %s14_s17 = sadd.s32 1, %s448_s17   ;;  %s525_s15 = smov %s444_s16 }
  0xde   : > { %p11_p5 = scmp.ge.s32.totalorder %s14_s17, 4   ;;  %s526_s16 = smov %s528_s18 }
  0xe0   :  { %13 = sbr.rel (!%p11_p5) target bundleno = 2 (0x2), region = 66 }

// kernel: prop_head_forward.22
= control target key start
LH: loop header
LB: loop body
LE: loop exit
PB: predicated region body
PF: predicated region fallthrough
CT: control target
= control target key end

     0   :  { %v1082_v0 = vmov 0.0   ;;  %vm1083_vm0 = vmmov 0   ;;  %vm24_vm1 = vcmask 130048   ;;  %vm121_vm2 = vcmask 60416   ;;  %s1272_s0 = inlined_call_operand.vmem [shape: bf16[8,16,16], index: 0, kind: input, shape index: {}]   ;;  %s1273_s1 = inlined_call_operand.vmem [shape: bf16[8,16], index: 1, kind: input, shape index: {}]   ;;  %s1274_s2 = inlined_call_operand.vmem [shape: bf16[16,8], index: 2, kind: input, shape index: {}]   ;;  %s1275_s3 = inlined_call_operand.vmem [shape: bf16[8,8,8], index: 3, kind: output, shape index: {}]  }
   0x1   :  { %968 = vmatprep.subr.bf16.mxu0 %v1082_v0  ;;  %v1066_v1 = vld [vmem:[%s1272_s0] sm:$0xff]   ;;  %970 = vmatprep.mubr.msk.bf16.mxu0 %vm1083_vm0, %v1082_v0  ;;  %v1067_v3 = vld [vmem:[%s1272_s0 + $0x8] sm:$0xff]   ;;  %v1068_v5 = vld [vmem:[%s1272_s0 + $0x10] sm:$0xff]  }
   0x2   :  { %974 = vmatprep.subr.bf16.mxu1 %v1082_v0  ;;  %976 = vmatprep.mubr.msk.bf16.mxu1 %vm1083_vm0, %v1082_v0  ;;  %v15_v2 = vld [vmem:[%s1273_s1] sm:$0xf]  ;;  %v1069_v7 = vld [vmem:[%s1272_s0 + $0x18] sm:$0xff]   ;;  %v1071_v11 = vld [vmem:[%s1272_s0 + $0x28] sm:$0xff]  }
   0x3   :  { %969 = vmatpush3.bf16.msra.mxu0 %v1066_v1  ;;  %v123_v4 = vld [vmem:[%s1273_s1] sm:$0xf]  ;;  %v1072_v13 = vld [vmem:[%s1272_s0 + $0x30] sm:$0xff]   ;;  %v1073_v15 = vld [vmem:[%s1272_s0 + $0x38] sm:$0xff]  }
   0x4   :  { %980 = vmatprep.subr.bf16.mxu0 %v1082_v0  ;;  %v231_v6 = vld [vmem:[%s1273_s1] sm:$0xf] }
   0x5   :  { %v339_v8 = vld [vmem:[%s1273_s1] sm:$0xf] }
   0x6   :  { %971 = vmatmul.mubr.msk.bf16.vlgmr.msra.gmra.mxu0 %vm24_vm1, %v15_v2  ;;  %v1070_v9 = vld [vmem:[%s1272_s0 + $0x20] sm:$0xff]  }
   0x7   :  { %981 = vmatpush3.bf16.msra.mxu0 %v1067_v3  ;;  %982 = vmatprep.mubr.msk.bf16.mxu0 %vm1083_vm0, %v1082_v0  ;;  %v447_v10 = vld [vmem:[%s1273_s1] sm:$0xf] }
   0x8   :  { %992 = vmatprep.subr.bf16.mxu0 %v1082_v0  ;;  %v555_v12 = vld [vmem:[%s1273_s1] sm:$0xf] }
   0x9   :  { %v663_v14 = vld [vmem:[%s1273_s1] sm:$0xf] }
   0xa   :  { %v771_v16 = vld [vmem:[%s1273_s1] sm:$0xf] }
   0xb   :  { %v1074_v17 = vld [vmem:[%s1274_s2] sm:$0xff]  }
   0xc   :  { %975 = vmatpush3.bf16.msra.mxu1 %v1074_v17  ;;  %v1075_v19 = vld [vmem:[%s1274_s2] sm:$0xff]  }
   0xd   :  { %986 = vmatprep.subr.bf16.mxu1 %v1082_v0  ;;  %v1076_v25 = vld [vmem:[%s1274_s2] sm:$0xff]  }
   0xe   :  { %983 = vmatmul.mubr.msk.bf16.vlgmr.msra.gmra.mxu0 %vm24_vm1, %v123_v4  ;;  %v1077_v31 = vld [vmem:[%s1274_s2] sm:$0xff]  }
   0xf   :  { %993 = vmatpush3.bf16.msra.mxu0 %v1068_v5  ;;  %994 = vmatprep.mubr.msk.bf16.mxu0 %vm1083_vm0, %v1082_v0  ;;  %v1078_v37 = vld [vmem:[%s1274_s2] sm:$0xff]  }
  0x10   :  { %1004 = vmatprep.subr.bf16.mxu0 %v1082_v0  ;;  %v1079_v43 = vld [vmem:[%s1274_s2] sm:$0xff]  }
  0x11   :  { %v1080_v49 = vld [vmem:[%s1274_s2] sm:$0xff]  }
  0x12   :  { %v1081_v55 = vld [vmem:[%s1274_s2] sm:$0xff]  }
  0x16   :  { %995 = vmatmul.mubr.msk.bf16.vlgmr.msra.gmra.mxu0 %vm24_vm1, %v231_v6 }
  0x17   :  { %1005 = vmatpush3.bf16.msra.mxu0 %v1069_v7  ;;  %1006 = vmatprep.mubr.msk.bf16.mxu0 %vm1083_vm0, %v1082_v0 }
  0x18   :  { %1016 = vmatprep.subr.bf16.mxu0 %v1082_v0 }
  0x1e   :  { %1007 = vmatmul.mubr.msk.bf16.vlgmr.msra.gmra.mxu0 %vm24_vm1, %v339_v8 }
  0x1f   :  { %1017 = vmatpush3.bf16.msra.mxu0 %v1070_v9  ;;  %1018 = vmatprep.mubr.msk.bf16.mxu0 %vm1083_vm0, %v1082_v0 }
  0x20   :  { %1028 = vmatprep.subr.bf16.mxu0 %v1082_v0 }
  0x26   :  { %1019 = vmatmul.mubr.msk.bf16.vlgmr.msra.gmra.mxu0 %vm24_vm1, %v447_v10 }
  0x27   :  { %1029 = vmatpush3.bf16.msra.mxu0 %v1071_v11  ;;  %1030 = vmatprep.mubr.msk.bf16.mxu0 %vm1083_vm0, %v1082_v0 }
  0x28   :  { %1040 = vmatprep.subr.bf16.mxu0 %v1082_v0 }
  0x2e   :  { %1031 = vmatmul.mubr.msk.bf16.vlgmr.msra.gmra.mxu0 %vm24_vm1, %v555_v12 }
  0x2f   :  { %1041 = vmatpush3.bf16.msra.mxu0 %v1072_v13  ;;  %1042 = vmatprep.mubr.msk.bf16.mxu0 %vm1083_vm0, %v1082_v0 }
  0x30   :  { %1052 = vmatprep.subr.bf16.mxu0 %v1082_v0 }
  0x36   :  { %1043 = vmatmul.mubr.msk.bf16.vlgmr.msra.gmra.mxu0 %vm24_vm1, %v663_v14 }
  0x37   :  { %1053 = vmatpush3.bf16.msra.mxu0 %v1073_v15  ;;  %1054 = vmatprep.mubr.msk.bf16.mxu0 %vm1083_vm0, %v1082_v0 }
  0x3e   :  { %1055 = vmatmul.mubr.msk.bf16.vlgmr.msra.gmra.mxu0 %vm24_vm1, %v771_v16 }
  0xc6   :  { %v62_v18 = vpop.f32.mrf.mxu0 }
  0xc7   :  { %v68_v20 = vpack.c.bf16 %v62_v18, %v62_v18 }
  0xc8   :  { %v972_v21 = vpop.f32.mrf.mxu0 }
  0xc9   :  { %977 = vmatmul.mubr.msk.bf16.vlgmr.msra.gmra.mxu1 %vm24_vm1, %v68_v20 }
  0xca   :  { %v65_v22 = vpop.f32.mrf.mxu0  ;;  %987 = vmatpush3.bf16.msra.mxu1 %v1075_v19  ;;  %988 = vmatprep.mubr.msk.bf16.mxu1 %vm1083_vm0, %v1082_v0 }
  0xcb   :  { %998 = vmatprep.subr.bf16.mxu1 %v1082_v0 }
  0xcc   :  { %v973_v23 = vpop.f32.mrf.mxu0 }
  0xce   :  { %v170_v24 = vpop.f32.mrf.mxu0 }
  0xcf   :  { %v176_v26 = vpack.c.bf16 %v170_v24, %v170_v24 }
  0xd0   :  { %v984_v27 = vpop.f32.mrf.mxu0 }
  0xd1   :  { %989 = vmatmul.mubr.msk.bf16.vlgmr.msra.gmra.mxu1 %vm24_vm1, %v176_v26 }
  0xd2   :  { %v173_v28 = vpop.f32.mrf.mxu0  ;;  %999 = vmatpush3.bf16.msra.mxu1 %v1076_v25  ;;  %1000 = vmatprep.mubr.msk.bf16.mxu1 %vm1083_vm0, %v1082_v0 }
  0xd3   :  { %1010 = vmatprep.subr.bf16.mxu1 %v1082_v0 }
  0xd4   :  { %v985_v29 = vpop.f32.mrf.mxu0 }
  0xd6   :  { %v278_v30 = vpop.f32.mrf.mxu0 }
  0xd7   :  { %v284_v32 = vpack.c.bf16 %v278_v30, %v278_v30 }
  0xd8   :  { %v996_v33 = vpop.f32.mrf.mxu0 }
  0xd9   :  { %1001 = vmatmul.mubr.msk.bf16.vlgmr.msra.gmra.mxu1 %vm24_vm1, %v284_v32 }
  0xda   :  { %v281_v34 = vpop.f32.mrf.mxu0  ;;  %1011 = vmatpush3.bf16.msra.mxu1 %v1077_v31  ;;  %1012 = vmatprep.mubr.msk.bf16.mxu1 %vm1083_vm0, %v1082_v0 }
  0xdb   :  { %1022 = vmatprep.subr.bf16.mxu1 %v1082_v0 }
  0xdc   :  { %v997_v35 = vpop.f32.mrf.mxu0 }
  0xde   :  { %v386_v36 = vpop.f32.mrf.mxu0 }
  0xdf   :  { %v392_v38 = vpack.c.bf16 %v386_v36, %v386_v36 }
  0xe0   :  { %v1008_v39 = vpop.f32.mrf.mxu0 }
  0xe1   :  { %1013 = vmatmul.mubr.msk.bf16.vlgmr.msra.gmra.mxu1 %vm24_vm1, %v392_v38 }
  0xe2   :  { %v389_v40 = vpop.f32.mrf.mxu0  ;;  %1023 = vmatpush3.bf16.msra.mxu1 %v1078_v37  ;;  %1024 = vmatprep.mubr.msk.bf16.mxu1 %vm1083_vm0, %v1082_v0 }
  0xe3   :  { %1034 = vmatprep.subr.bf16.mxu1 %v1082_v0 }
  0xe4   :  { %v1009_v41 = vpop.f32.mrf.mxu0 }
  0xe6   :  { %v494_v42 = vpop.f32.mrf.mxu0 }
  0xe7   :  { %v500_v44 = vpack.c.bf16 %v494_v42, %v494_v42 }
  0xe8   :  { %v1020_v45 = vpop.f32.mrf.mxu0 }
  0xe9   :  { %1025 = vmatmul.mubr.msk.bf16.vlgmr.msra.gmra.mxu1 %vm24_vm1, %v500_v44 }
  0xea   :  { %v497_v46 = vpop.f32.mrf.mxu0  ;;  %1035 = vmatpush3.bf16.msra.mxu1 %v1079_v43  ;;  %1036 = vmatprep.mubr.msk.bf16.mxu1 %vm1083_vm0, %v1082_v0 }
  0xeb   :  { %1046 = vmatprep.subr.bf16.mxu1 %v1082_v0 }
  0xec   :  { %v1021_v47 = vpop.f32.mrf.mxu0 }
  0xee   :  { %v602_v48 = vpop.f32.mrf.mxu0 }
  0xef   :  { %v608_v50 = vpack.c.bf16 %v602_v48, %v602_v48 }
  0xf0   :  { %v1032_v51 = vpop.f32.mrf.mxu0 }
  0xf1   :  { %1037 = vmatmul.mubr.msk.bf16.vlgmr.msra.gmra.mxu1 %vm24_vm1, %v608_v50 }
  0xf2   :  { %v605_v52 = vpop.f32.mrf.mxu0  ;;  %1047 = vmatpush3.bf16.msra.mxu1 %v1080_v49  ;;  %1048 = vmatprep.mubr.msk.bf16.mxu1 %vm1083_vm0, %v1082_v0 }
  0xf3   :  { %1058 = vmatprep.subr.bf16.mxu1 %v1082_v0 }
  0xf4   :  { %v1033_v53 = vpop.f32.mrf.mxu0 }
  0xf6   :  { %v710_v54 = vpop.f32.mrf.mxu0 }
  0xf7   :  { %v716_v56 = vpack.c.bf16 %v710_v54, %v710_v54 }
  0xf8   :  { %v1044_v57 = vpop.f32.mrf.mxu0 }
  0xf9   :  { %1049 = vmatmul.mubr.msk.bf16.vlgmr.msra.gmra.mxu1 %vm24_vm1, %v716_v56 }
  0xfa   :  { %v713_v58 = vpop.f32.mrf.mxu0  ;;  %1059 = vmatpush3.bf16.msra.mxu1 %v1081_v55  ;;  %1060 = vmatprep.mubr.msk.bf16.mxu1 %vm1083_vm0, %v1082_v0 }
  0xfc   :  { %v1045_v59 = vpop.f32.mrf.mxu0 }
  0xfe   :  { %v818_v60 = vpop.f32.mrf.mxu0 }
  0xff   :  { %v824_v61 = vpack.c.bf16 %v818_v60, %v818_v60 }
 0x100   :  { %v1056_v62 = vpop.f32.mrf.mxu0 }
 0x101   :  { %1061 = vmatmul.mubr.msk.bf16.vlgmr.msra.gmra.mxu1 %vm24_vm1, %v824_v61 }
 0x102   :  { %v821_v63 = vpop.f32.mrf.mxu0 }
 0x104   :  { %v1057_v1 = vpop.f32.mrf.mxu0 }
 0x189   :  { %v114_v2 = vpop.f32.mrf.mxu1 }
 0x18a   :  { %v120_v3 = vpack.c.bf16 %v114_v2, %v114_v2 }
 0x18b   :  { %v978_v4 = vpop.f32.mrf.mxu1 }
 0x18c   :  { %122 = vst.msk [vmem:[%s1275_s3] sm:$0xf] %vm121_vm2, %v120_v3 }
 0x18d   :  { %v117_v5 = vpop.f32.mrf.mxu1 }
 0x18f   :  { %v979_v6 = vpop.f32.mrf.mxu1 }
 0x191   :  { %v222_v0 = vpop.f32.mrf.mxu1 }
 0x192   :  { %v228_v7 = vpack.c.bf16 %v222_v0, %v222_v0 }
 0x193   :  { %v990_v8 = vpop.f32.mrf.mxu1 }
 0x194   :  { %893 = vst.msk [vmem:[%s1275_s3 + $0x4] sm:$0xf] %vm121_vm2, %v228_v7 }
 0x195   :  { %v225_v9 = vpop.f32.mrf.mxu1 }
 0x197   :  { %v991_v10 = vpop.f32.mrf.mxu1 }
 0x199   :  { %v330_v11 = vpop.f32.mrf.mxu1 }
 0x19a   :  { %v336_v12 = vpack.c.bf16 %v330_v11, %v330_v11 }
 0x19b   :  { %v1002_v13 = vpop.f32.mrf.mxu1 }
 0x19c   :  { %900 = vst.msk [vmem:[%s1275_s3 + $0x8] sm:$0xf] %vm121_vm2, %v336_v12 }
 0x19d   :  { %v333_v14 = vpop.f32.mrf.mxu1 }
 0x19f   :  { %v1003_v15 = vpop.f32.mrf.mxu1 }
 0x1a1   :  { %v438_v16 = vpop.f32.mrf.mxu1 }
 0x1a2   :  { %v444_v17 = vpack.c.bf16 %v438_v16, %v438_v16 }
 0x1a3   :  { %v1014_v18 = vpop.f32.mrf.mxu1 }
 0x1a4   :  { %907 = vst.msk [vmem:[%s1275_s3 + $0xc] sm:$0xf] %vm121_vm2, %v444_v17 }
 0x1a5   :  { %v441_v19 = vpop.f32.mrf.mxu1 }
 0x1a7   :  { %v1015_v20 = vpop.f32.mrf.mxu1 }
 0x1a9   :  { %v546_v21 = vpop.f32.mrf.mxu1 }
 0x1aa   :  { %v552_v22 = vpack.c.bf16 %v546_v21, %v546_v21 }
 0x1ab   :  { %v1026_v23 = vpop.f32.mrf.mxu1 }
 0x1ac   :  { %914 = vst.msk [vmem:[%s1275_s3 + $0x10] sm:$0xf] %vm121_vm2, %v552_v22 }
 0x1ad   :  { %v549_v24 = vpop.f32.mrf.mxu1 }
 0x1af   :  { %v1027_v25 = vpop.f32.mrf.mxu1 }
 0x1b1   :  { %v654_v26 = vpop.f32.mrf.mxu1 }
 0x1b2   :  { %v660_v27 = vpack.c.bf16 %v654_v26, %v654_v26 }
 0x1b3   :  { %v1038_v28 = vpop.f32.mrf.mxu1 }
 0x1b4   :  { %921 = vst.msk [vmem:[%s1275_s3 + $0x14] sm:$0xf] %vm121_vm2, %v660_v27 }
 0x1b5   :  { %v657_v29 = vpop.f32.mrf.mxu1 }
 0x1b7   :  { %v1039_v30 = vpop.f32.mrf.mxu1 }
 0x1b9   :  { %v762_v31 = vpop.f32.mrf.mxu1 }
 0x1ba   :  { %v768_v32 = vpack.c.bf16 %v762_v31, %v762_v31 }
 0x1bb   :  { %v1050_v33 = vpop.f32.mrf.mxu1 }
 0x1bc   :  { %928 = vst.msk [vmem:[%s1275_s3 + $0x18] sm:$0xf] %vm121_vm2, %v768_v32 }
 0x1bd   :  { %v765_v34 = vpop.f32.mrf.mxu1 }
 0x1bf   :  { %v1051_v35 = vpop.f32.mrf.mxu1 }
 0x1c1   :  { %v870_v36 = vpop.f32.mrf.mxu1 }
 0x1c2   :  { %v876_v37 = vpack.c.bf16 %v870_v36, %v870_v36 }
 0x1c3   :  { %v1062_v38 = vpop.f32.mrf.mxu1 }
 0x1c4   :  { %935 = vst.msk [vmem:[%s1275_s3 + $0x1c] sm:$0xf] %vm121_vm2, %v876_v37 }
 0x1c5   :  { %v873_v39 = vpop.f32.mrf.mxu1 }
 0x1c7   :  { %v1063_v40 = vpop.f32.mrf.mxu1 }

// kernel: prop_head_forward.24
= control target key start
LH: loop header
LB: loop body
LE: loop exit
PB: predicated region body
PF: predicated region fallthrough
CT: control target
= control target key end

     0   :  { %vm21_vm0 = vcmask 1040384   ;;  %v980_v0 = vmov 0.0   ;;  %vm981_vm1 = vmmov 0   ;;  %vm17_vm2 = vcmask 15360   ;;  %s1186_s0 = inlined_call_operand.vmem [shape: bf16[8,2,2], index: 0, kind: input, shape index: {}]   ;;  %s1187_s1 = inlined_call_operand.vmem [shape: bf16[8,2], index: 1, kind: input, shape index: {}]   ;;  %s1188_s2 = inlined_call_operand.vmem [shape: bf16[2,8], index: 2, kind: input, shape index: {}]   ;;  %s1189_s3 = inlined_call_operand.vmem [shape: bf16[8,8,8], index: 3, kind: output, shape index: {}]  }
   0x1   :  { %882 = vmatprep.subr.bf16.mxu0 %v980_v0  ;;  %v16_v1 = vld [vmem:[%s1186_s0] sm:$0x1]  ;;  %884 = vmatprep.mubr.msk.bf16.mxu0 %vm981_vm1, %v980_v0  ;;  %v822_v2 = vld [vmem:[%s1186_s0 + $0x1] sm:$0x1]  ;;  %v826_v6 = vld [vmem:[%s1186_s0 + $0x2] sm:$0x1] }
   0x2   :  { %v23_v3 = vsel %vm21_vm0, %v16_v1, 0  ;;  %888 = vmatprep.subr.bf16.mxu1 %v980_v0  ;;  %890 = vmatprep.mubr.msk.bf16.mxu1 %vm981_vm1, %v980_v0  ;;  %v15_v4 = vld [vmem:[%s1187_s1] sm:$0xf]  ;;  %v123_v5 = vsel %vm21_vm0, %v822_v2, 0  ;;  %v223_v8 = vsel %vm21_vm0, %v826_v6, 0  ;;  %vm114_vm3 = vcmask 60416  }
   0x3   :  { %883 = vmatpush3.bf16.msra.mxu0 %v23_v3  ;;  %v116_v7 = vld [vmem:[%s1187_s1] sm:$0xf]  ;;  %v834_v12 = vld [vmem:[%s1186_s0 + $0x4] sm:$0x1]  ;;  %v838_v15 = vld [vmem:[%s1186_s0 + $0x5] sm:$0x1] }
   0x4   :  { %894 = vmatprep.subr.bf16.mxu0 %v980_v0  ;;  %v830_v9 = vld [vmem:[%s1186_s0 + $0x3] sm:$0x1]  ;;  %v423_v14 = vsel %vm21_vm0, %v834_v12, 0  ;;  %v523_v17 = vsel %vm21_vm0, %v838_v15, 0  ;;  %v842_v18 = vld [vmem:[%s1186_s0 + $0x6] sm:$0x1] }
   0x5   :  { %v216_v10 = vld [vmem:[%s1187_s1] sm:$0xf]  ;;  %v323_v11 = vsel %vm21_vm0, %v830_v9, 0  ;;  %v623_v20 = vsel %vm21_vm0, %v842_v18, 0  ;;  %v846_v21 = vld [vmem:[%s1186_s0 + $0x7] sm:$0x1] }
   0x6   :  { %885 = vmatmul.mubr.msk.bf16.vlgmr.msra.gmra.mxu0 %vm17_vm2, %v15_v4  ;;  %v316_v13 = vld [vmem:[%s1187_s1] sm:$0xf]  ;;  %v723_v23 = vsel %vm21_vm0, %v846_v21, 0 }
   0x7   :  { %895 = vmatpush3.bf16.msra.mxu0 %v123_v5  ;;  %896 = vmatprep.mubr.msk.bf16.mxu0 %vm981_vm1, %v980_v0  ;;  %v416_v16 = vld [vmem:[%s1187_s1] sm:$0xf] }
   0x8   :  { %906 = vmatprep.subr.bf16.mxu0 %v980_v0  ;;  %v516_v19 = vld [vmem:[%s1187_s1] sm:$0xf] }
   0x9   :  { %v616_v22 = vld [vmem:[%s1187_s1] sm:$0xf] }
   0xa   :  { %v716_v24 = vld [vmem:[%s1187_s1] sm:$0xf] }
   0xb   :  { %v66_v25 = vld [vmem:[%s1188_s2] sm:$0x1] }
   0xc   :  { %v71_v26 = vsel %vm21_vm0, %v66_v25, 0  ;;  %v166_v27 = vld [vmem:[%s1188_s2] sm:$0x1] }
   0xd   :  { %889 = vmatpush3.bf16.msra.mxu1 %v71_v26  ;;  %v171_v30 = vsel %vm21_vm0, %v166_v27, 0  ;;  %v266_v34 = vld [vmem:[%s1188_s2] sm:$0x1] }
   0xe   :  { %897 = vmatmul.mubr.msk.bf16.vlgmr.msra.gmra.mxu0 %vm17_vm2, %v116_v7  ;;  %900 = vmatprep.subr.bf16.mxu1 %v980_v0  ;;  %v271_v37 = vsel %vm21_vm0, %v266_v34, 0  ;;  %v366_v41 = vld [vmem:[%s1188_s2] sm:$0x1] }
   0xf   :  { %907 = vmatpush3.bf16.msra.mxu0 %v223_v8  ;;  %908 = vmatprep.mubr.msk.bf16.mxu0 %vm981_vm1, %v980_v0  ;;  %v371_v44 = vsel %vm21_vm0, %v366_v41, 0  ;;  %v466_v48 = vld [vmem:[%s1188_s2] sm:$0x1] }
  0x10   :  { %918 = vmatprep.subr.bf16.mxu0 %v980_v0  ;;  %v471_v51 = vsel %vm21_vm0, %v466_v48, 0  ;;  %v566_v55 = vld [vmem:[%s1188_s2] sm:$0x1] }
  0x11   :  { %v571_v58 = vsel %vm21_vm0, %v566_v55, 0  ;;  %v666_v62 = vld [vmem:[%s1188_s2] sm:$0x1] }
  0x12   :  { %v671_v2 = vsel %vm21_vm0, %v666_v62, 0  ;;  %v766_v6 = vld [vmem:[%s1188_s2] sm:$0x1] }
  0x13   :  { %v771_v9 = vsel %vm21_vm0, %v766_v6, 0 }
  0x16   :  { %909 = vmatmul.mubr.msk.bf16.vlgmr.msra.gmra.mxu0 %vm17_vm2, %v216_v10 }
  0x17   :  { %919 = vmatpush3.bf16.msra.mxu0 %v323_v11  ;;  %920 = vmatprep.mubr.msk.bf16.mxu0 %vm981_vm1, %v980_v0 }
  0x18   :  { %930 = vmatprep.subr.bf16.mxu0 %v980_v0 }
  0x1e   :  { %921 = vmatmul.mubr.msk.bf16.vlgmr.msra.gmra.mxu0 %vm17_vm2, %v316_v13 }
  0x1f   :  { %931 = vmatpush3.bf16.msra.mxu0 %v423_v14  ;;  %932 = vmatprep.mubr.msk.bf16.mxu0 %vm981_vm1, %v980_v0 }
  0x20   :  { %942 = vmatprep.subr.bf16.mxu0 %v980_v0 }
  0x26   :  { %933 = vmatmul.mubr.msk.bf16.vlgmr.msra.gmra.mxu0 %vm17_vm2, %v416_v16 }
  0x27   :  { %943 = vmatpush3.bf16.msra.mxu0 %v523_v17  ;;  %944 = vmatprep.mubr.msk.bf16.mxu0 %vm981_vm1, %v980_v0 }
  0x28   :  { %954 = vmatprep.subr.bf16.mxu0 %v980_v0 }
  0x2e   :  { %945 = vmatmul.mubr.msk.bf16.vlgmr.msra.gmra.mxu0 %vm17_vm2, %v516_v19 }
  0x2f   :  { %955 = vmatpush3.bf16.msra.mxu0 %v623_v20  ;;  %956 = vmatprep.mubr.msk.bf16.mxu0 %vm981_vm1, %v980_v0 }
  0x30   :  { %966 = vmatprep.subr.bf16.mxu0 %v980_v0 }
  0x36   :  { %957 = vmatmul.mubr.msk.bf16.vlgmr.msra.gmra.mxu0 %vm17_vm2, %v616_v22 }
  0x37   :  { %967 = vmatpush3.bf16.msra.mxu0 %v723_v23  ;;  %968 = vmatprep.mubr.msk.bf16.mxu0 %vm981_vm1, %v980_v0 }
  0x3e   :  { %969 = vmatmul.mubr.msk.bf16.vlgmr.msra.gmra.mxu0 %vm17_vm2, %v716_v24 }
  0xc6   :  { %v59_v28 = vpop.f32.mrf.mxu0 }
  0xc7   :  { %v65_v29 = vpack.c.bf16 %v59_v28, %v59_v28 }
  0xc8   :  { %v886_v31 = vpop.f32.mrf.mxu0 }
  0xc9   :  { %891 = vmatmul.mubr.msk.bf16.vlgmr.msra.gmra.mxu1 %vm17_vm2, %v65_v29 }
  0xca   :  { %v62_v32 = vpop.f32.mrf.mxu0  ;;  %901 = vmatpush3.bf16.msra.mxu1 %v171_v30  ;;  %902 = vmatprep.mubr.msk.bf16.mxu1 %vm981_vm1, %v980_v0 }
  0xcb   :  { %912 = vmatprep.subr.bf16.mxu1 %v980_v0 }
  0xcc   :  { %v887_v33 = vpop.f32.mrf.mxu0 }
  0xce   :  { %v159_v35 = vpop.f32.mrf.mxu0 }
  0xcf   :  { %v165_v36 = vpack.c.bf16 %v159_v35, %v159_v35 }
  0xd0   :  { %v898_v38 = vpop.f32.mrf.mxu0 }
  0xd1   :  { %903 = vmatmul.mubr.msk.bf16.vlgmr.msra.gmra.mxu1 %vm17_vm2, %v165_v36 }
  0xd2   :  { %v162_v39 = vpop.f32.mrf.mxu0  ;;  %913 = vmatpush3.bf16.msra.mxu1 %v271_v37  ;;  %914 = vmatprep.mubr.msk.bf16.mxu1 %vm981_vm1, %v980_v0 }
  0xd3   :  { %924 = vmatprep.subr.bf16.mxu1 %v980_v0 }
  0xd4   :  { %v899_v40 = vpop.f32.mrf.mxu0 }
  0xd6   :  { %v259_v42 = vpop.f32.mrf.mxu0 }
  0xd7   :  { %v265_v43 = vpack.c.bf16 %v259_v42, %v259_v42 }
  0xd8   :  { %v910_v45 = vpop.f32.mrf.mxu0 }
  0xd9   :  { %915 = vmatmul.mubr.msk.bf16.vlgmr.msra.gmra.mxu1 %vm17_vm2, %v265_v43 }
  0xda   :  { %v262_v46 = vpop.f32.mrf.mxu0  ;;  %925 = vmatpush3.bf16.msra.mxu1 %v371_v44  ;;  %926 = vmatprep.mubr.msk.bf16.mxu1 %vm981_vm1, %v980_v0 }
  0xdb   :  { %936 = vmatprep.subr.bf16.mxu1 %v980_v0 }
  0xdc   :  { %v911_v47 = vpop.f32.mrf.mxu0 }
  0xde   :  { %v359_v49 = vpop.f32.mrf.mxu0 }
  0xdf   :  { %v365_v50 = vpack.c.bf16 %v359_v49, %v359_v49 }
  0xe0   :  { %v922_v52 = vpop.f32.mrf.mxu0 }
  0xe1   :  { %927 = vmatmul.mubr.msk.bf16.vlgmr.msra.gmra.mxu1 %vm17_vm2, %v365_v50 }
  0xe2   :  { %v362_v53 = vpop.f32.mrf.mxu0  ;;  %937 = vmatpush3.bf16.msra.mxu1 %v471_v51  ;;  %938 = vmatprep.mubr.msk.bf16.mxu1 %vm981_vm1, %v980_v0 }
  0xe3   :  { %948 = vmatprep.subr.bf16.mxu1 %v980_v0 }
  0xe4   :  { %v923_v54 = vpop.f32.mrf.mxu0 }
  0xe6   :  { %v459_v56 = vpop.f32.mrf.mxu0 }
  0xe7   :  { %v465_v57 = vpack.c.bf16 %v459_v56, %v459_v56 }
  0xe8   :  { %v934_v59 = vpop.f32.mrf.mxu0 }
  0xe9   :  { %939 = vmatmul.mubr.msk.bf16.vlgmr.msra.gmra.mxu1 %vm17_vm2, %v465_v57 }
  0xea   :  { %v462_v60 = vpop.f32.mrf.mxu0  ;;  %949 = vmatpush3.bf16.msra.mxu1 %v571_v58  ;;  %950 = vmatprep.mubr.msk.bf16.mxu1 %vm981_vm1, %v980_v0 }
  0xeb   :  { %960 = vmatprep.subr.bf16.mxu1 %v980_v0 }
  0xec   :  { %v935_v61 = vpop.f32.mrf.mxu0 }
  0xee   :  { %v559_v63 = vpop.f32.mrf.mxu0 }
  0xef   :  { %v565_v1 = vpack.c.bf16 %v559_v63, %v559_v63 }
  0xf0   :  { %v946_v3 = vpop.f32.mrf.mxu0 }
  0xf1   :  { %951 = vmatmul.mubr.msk.bf16.vlgmr.msra.gmra.mxu1 %vm17_vm2, %v565_v1 }
  0xf2   :  { %v562_v4 = vpop.f32.mrf.mxu0  ;;  %961 = vmatpush3.bf16.msra.mxu1 %v671_v2  ;;  %962 = vmatprep.mubr.msk.bf16.mxu1 %vm981_vm1, %v980_v0 }
  0xf3   :  { %972 = vmatprep.subr.bf16.mxu1 %v980_v0 }
  0xf4   :  { %v947_v5 = vpop.f32.mrf.mxu0 }
  0xf6   :  { %v659_v7 = vpop.f32.mrf.mxu0 }
  0xf7   :  { %v665_v8 = vpack.c.bf16 %v659_v7, %v659_v7 }
  0xf8   :  { %v958_v10 = vpop.f32.mrf.mxu0 }
  0xf9   :  { %963 = vmatmul.mubr.msk.bf16.vlgmr.msra.gmra.mxu1 %vm17_vm2, %v665_v8 }
  0xfa   :  { %v662_v11 = vpop.f32.mrf.mxu0  ;;  %973 = vmatpush3.bf16.msra.mxu1 %v771_v9  ;;  %974 = vmatprep.mubr.msk.bf16.mxu1 %vm981_vm1, %v980_v0 }
  0xfc   :  { %v959_v12 = vpop.f32.mrf.mxu0 }
  0xfe   :  { %v759_v13 = vpop.f32.mrf.mxu0 }
  0xff   :  { %v765_v14 = vpack.c.bf16 %v759_v13, %v759_v13 }
 0x100   :  { %v970_v15 = vpop.f32.mrf.mxu0 }
 0x101   :  { %975 = vmatmul.mubr.msk.bf16.vlgmr.msra.gmra.mxu1 %vm17_vm2, %v765_v14 }
 0x102   :  { %v762_v16 = vpop.f32.mrf.mxu0 }
 0x104   :  { %v971_v17 = vpop.f32.mrf.mxu0 }
 0x189   :  { %v107_v18 = vpop.f32.mrf.mxu1 }
 0x18a   :  { %v113_v19 = vpack.c.bf16 %v107_v18, %v107_v18 }
 0x18b   :  { %v892_v20 = vpop.f32.mrf.mxu1 }
 0x18c   :  { %115 = vst.msk [vmem:[%s1189_s3] sm:$0xf] %vm114_vm3, %v113_v19 }
 0x18d   :  { %v110_v21 = vpop.f32.mrf.mxu1 }
 0x18f   :  { %v893_v22 = vpop.f32.mrf.mxu1 }
 0x191   :  { %v207_v0 = vpop.f32.mrf.mxu1 }
 0x192   :  { %v213_v23 = vpack.c.bf16 %v207_v0, %v207_v0 }
 0x193   :  { %v904_v24 = vpop.f32.mrf.mxu1 }
 0x194   :  { %825 = vst.msk [vmem:[%s1189_s3 + $0x4] sm:$0xf] %vm114_vm3, %v213_v23 }
 0x195   :  { %v210_v25 = vpop.f32.mrf.mxu1 }
 0x197   :  { %v905_v26 = vpop.f32.mrf.mxu1 }
 0x199   :  { %v307_v27 = vpop.f32.mrf.mxu1 }
 0x19a   :  { %v313_v28 = vpack.c.bf16 %v307_v27, %v307_v27 }
 0x19b   :  { %v916_v29 = vpop.f32.mrf.mxu1 }
 0x19c   :  { %829 = vst.msk [vmem:[%s1189_s3 + $0x8] sm:$0xf] %vm114_vm3, %v313_v28 }
 0x19d   :  { %v310_v30 = vpop.f32.mrf.mxu1 }
 0x19f   :  { %v917_v31 = vpop.f32.mrf.mxu1 }
 0x1a1   :  { %v407_v32 = vpop.f32.mrf.mxu1 }
 0x1a2   :  { %v413_v33 = vpack.c.bf16 %v407_v32, %v407_v32 }
 0x1a3   :  { %v928_v34 = vpop.f32.mrf.mxu1 }
 0x1a4   :  { %833 = vst.msk [vmem:[%s1189_s3 + $0xc] sm:$0xf] %vm114_vm3, %v413_v33 }
 0x1a5   :  { %v410_v35 = vpop.f32.mrf.mxu1 }
 0x1a7   :  { %v929_v36 = vpop.f32.mrf.mxu1 }
 0x1a9   :  { %v507_v37 = vpop.f32.mrf.mxu1 }
 0x1aa   :  { %v513_v38 = vpack.c.bf16 %v507_v37, %v507_v37 }
 0x1ab   :  { %v940_v39 = vpop.f32.mrf.mxu1 }
 0x1ac   :  { %837 = vst.msk [vmem:[%s1189_s3 + $0x10] sm:$0xf] %vm114_vm3, %v513_v38 }
 0x1ad   :  { %v510_v40 = vpop.f32.mrf.mxu1 }
 0x1af   :  { %v941_v41 = vpop.f32.mrf.mxu1 }
 0x1b1   :  { %v607_v42 = vpop.f32.mrf.mxu1 }
 0x1b2   :  { %v613_v43 = vpack.c.bf16 %v607_v42, %v607_v42 }
 0x1b3   :  { %v952_v44 = vpop.f32.mrf.mxu1 }
 0x1b4   :  { %841 = vst.msk [vmem:[%s1189_s3 + $0x14] sm:$0xf] %vm114_vm3, %v613_v43 }
 0x1b5   :  { %v610_v45 = vpop.f32.mrf.mxu1 }
 0x1b7   :  { %v953_v46 = vpop.f32.mrf.mxu1 }
 0x1b9   :  { %v707_v47 = vpop.f32.mrf.mxu1 }
 0x1ba   :  { %v713_v48 = vpack.c.bf16 %v707_v47, %v707_v47 }
 0x1bb   :  { %v964_v49 = vpop.f32.mrf.mxu1 }
 0x1bc   :  { %845 = vst.msk [vmem:[%s1189_s3 + $0x18] sm:$0xf] %vm114_vm3, %v713_v48 }
 0x1bd   :  { %v710_v50 = vpop.f32.mrf.mxu1 }
 0x1bf   :  { %v965_v51 = vpop.f32.mrf.mxu1 }
 0x1c1   :  { %v807_v52 = vpop.f32.mrf.mxu1 }
 0x1c2   :  { %v813_v53 = vpack.c.bf16 %v807_v52, %v807_v52 }
 0x1c3   :  { %v976_v54 = vpop.f32.mrf.mxu1 }
 0x1c4   :  { %849 = vst.msk [vmem:[%s1189_s3 + $0x1c] sm:$0xf] %vm114_vm3, %v813_v53 }
 0x1c5   :  { %v810_v55 = vpop.f32.mrf.mxu1 }
 0x1c7   :  { %v977_v56 = vpop.f32.mrf.mxu1 }

// kernel: prop_head_forward.23
= control target key start
LH: loop header
LB: loop body
LE: loop exit
PB: predicated region body
PF: predicated region fallthrough
CT: control target
= control target key end

     0   :  { %vm21_vm0 = vcmask 1041408   ;;  %v980_v0 = vmov 0.0   ;;  %vm981_vm1 = vmmov 0   ;;  %vm17_vm2 = vcmask 31744   ;;  %s1186_s0 = inlined_call_operand.vmem [shape: bf16[8,4,4], index: 0, kind: input, shape index: {}]   ;;  %s1187_s1 = inlined_call_operand.vmem [shape: bf16[8,4], index: 1, kind: input, shape index: {}]   ;;  %s1188_s2 = inlined_call_operand.vmem [shape: bf16[4,8], index: 2, kind: input, shape index: {}]   ;;  %s1189_s3 = inlined_call_operand.vmem [shape: bf16[8,8,8], index: 3, kind: output, shape index: {}]  }
   0x1   :  { %882 = vmatprep.subr.bf16.mxu0 %v980_v0  ;;  %v16_v1 = vld [vmem:[%s1186_s0] sm:$0x3]  ;;  %884 = vmatprep.mubr.msk.bf16.mxu0 %vm981_vm1, %v980_v0  ;;  %v822_v2 = vld [vmem:[%s1186_s0 + $0x2] sm:$0x3]  ;;  %v826_v6 = vld [vmem:[%s1186_s0 + $0x4] sm:$0x3] }
   0x2   :  { %v23_v3 = vsel %vm21_vm0, %v16_v1, 0  ;;  %888 = vmatprep.subr.bf16.mxu1 %v980_v0  ;;  %890 = vmatprep.mubr.msk.bf16.mxu1 %vm981_vm1, %v980_v0  ;;  %v15_v4 = vld [vmem:[%s1187_s1] sm:$0xf]  ;;  %v123_v5 = vsel %vm21_vm0, %v822_v2, 0  ;;  %v223_v8 = vsel %vm21_vm0, %v826_v6, 0  ;;  %vm114_vm3 = vcmask 60416  }
   0x3   :  { %883 = vmatpush3.bf16.msra.mxu0 %v23_v3  ;;  %v116_v7 = vld [vmem:[%s1187_s1] sm:$0xf]  ;;  %v830_v9 = vld [vmem:[%s1186_s0 + $0x6] sm:$0x3]  ;;  %v834_v12 = vld [vmem:[%s1186_s0 + $0x8] sm:$0x3] }
   0x4   :  { %894 = vmatprep.subr.bf16.mxu0 %v980_v0  ;;  %v216_v10 = vld [vmem:[%s1187_s1] sm:$0xf]  ;;  %v323_v11 = vsel %vm21_vm0, %v830_v9, 0  ;;  %v423_v14 = vsel %vm21_vm0, %v834_v12, 0  ;;  %v838_v15 = vld [vmem:[%s1186_s0 + $0xa] sm:$0x3] }
   0x5   :  { %v316_v13 = vld [vmem:[%s1187_s1] sm:$0xf]  ;;  %v523_v17 = vsel %vm21_vm0, %v838_v15, 0  ;;  %v842_v18 = vld [vmem:[%s1186_s0 + $0xc] sm:$0x3] }
   0x6   :  { %885 = vmatmul.mubr.msk.bf16.vlgmr.msra.gmra.mxu0 %vm17_vm2, %v15_v4  ;;  %v416_v16 = vld [vmem:[%s1187_s1] sm:$0xf]  ;;  %v623_v20 = vsel %vm21_vm0, %v842_v18, 0  ;;  %v846_v21 = vld [vmem:[%s1186_s0 + $0xe] sm:$0x3] }
   0x7   :  { %895 = vmatpush3.bf16.msra.mxu0 %v123_v5  ;;  %896 = vmatprep.mubr.msk.bf16.mxu0 %vm981_vm1, %v980_v0  ;;  %v516_v19 = vld [vmem:[%s1187_s1] sm:$0xf]  ;;  %v723_v23 = vsel %vm21_vm0, %v846_v21, 0 }
   0x8   :  { %906 = vmatprep.subr.bf16.mxu0 %v980_v0  ;;  %v616_v22 = vld [vmem:[%s1187_s1] sm:$0xf] }
   0x9   :  { %v716_v24 = vld [vmem:[%s1187_s1] sm:$0xf] }
   0xa   :  { %v66_v25 = vld [vmem:[%s1188_s2] sm:$0x3] }
   0xb   :  { %v71_v26 = vsel %vm21_vm0, %v66_v25, 0  ;;  %v166_v27 = vld [vmem:[%s1188_s2] sm:$0x3] }
   0xc   :  { %889 = vmatpush3.bf16.msra.mxu1 %v71_v26  ;;  %v171_v30 = vsel %vm21_vm0, %v166_v27, 0  ;;  %v266_v34 = vld [vmem:[%s1188_s2] sm:$0x3] }
   0xd   :  { %900 = vmatprep.subr.bf16.mxu1 %v980_v0  ;;  %v271_v37 = vsel %vm21_vm0, %v266_v34, 0  ;;  %v366_v41 = vld [vmem:[%s1188_s2] sm:$0x3] }
   0xe   :  { %897 = vmatmul.mubr.msk.bf16.vlgmr.msra.gmra.mxu0 %vm17_vm2, %v116_v7  ;;  %v371_v44 = vsel %vm21_vm0, %v366_v41, 0  ;;  %v466_v48 = vld [vmem:[%s1188_s2] sm:$0x3] }
   0xf   :  { %907 = vmatpush3.bf16.msra.mxu0 %v223_v8  ;;  %908 = vmatprep.mubr.msk.bf16.mxu0 %vm981_vm1, %v980_v0  ;;  %v471_v51 = vsel %vm21_vm0, %v466_v48, 0  ;;  %v566_v55 = vld [vmem:[%s1188_s2] sm:$0x3] }
  0x10   :  { %918 = vmatprep.subr.bf16.mxu0 %v980_v0  ;;  %v571_v58 = vsel %vm21_vm0, %v566_v55, 0  ;;  %v666_v62 = vld [vmem:[%s1188_s2] sm:$0x3] }
  0x11   :  { %v671_v2 = vsel %vm21_vm0, %v666_v62, 0  ;;  %v766_v6 = vld [vmem:[%s1188_s2] sm:$0x3] }
  0x12   :  { %v771_v9 = vsel %vm21_vm0, %v766_v6, 0 }
  0x16   :  { %909 = vmatmul.mubr.msk.bf16.vlgmr.msra.gmra.mxu0 %vm17_vm2, %v216_v10 }
  0x17   :  { %919 = vmatpush3.bf16.msra.mxu0 %v323_v11  ;;  %920 = vmatprep.mubr.msk.bf16.mxu0 %vm981_vm1, %v980_v0 }
  0x18   :  { %930 = vmatprep.subr.bf16.mxu0 %v980_v0 }
  0x1e   :  { %921 = vmatmul.mubr.msk.bf16.vlgmr.msra.gmra.mxu0 %vm17_vm2, %v316_v13 }
  0x1f   :  { %931 = vmatpush3.bf16.msra.mxu0 %v423_v14  ;;  %932 = vmatprep.mubr.msk.bf16.mxu0 %vm981_vm1, %v980_v0 }
  0x20   :  { %942 = vmatprep.subr.bf16.mxu0 %v980_v0 }
  0x26   :  { %933 = vmatmul.mubr.msk.bf16.vlgmr.msra.gmra.mxu0 %vm17_vm2, %v416_v16 }
  0x27   :  { %943 = vmatpush3.bf16.msra.mxu0 %v523_v17  ;;  %944 = vmatprep.mubr.msk.bf16.mxu0 %vm981_vm1, %v980_v0 }
  0x28   :  { %954 = vmatprep.subr.bf16.mxu0 %v980_v0 }
  0x2e   :  { %945 = vmatmul.mubr.msk.bf16.vlgmr.msra.gmra.mxu0 %vm17_vm2, %v516_v19 }
  0x2f   :  { %955 = vmatpush3.bf16.msra.mxu0 %v623_v20  ;;  %956 = vmatprep.mubr.msk.bf16.mxu0 %vm981_vm1, %v980_v0 }
  0x30   :  { %966 = vmatprep.subr.bf16.mxu0 %v980_v0 }
  0x36   :  { %957 = vmatmul.mubr.msk.bf16.vlgmr.msra.gmra.mxu0 %vm17_vm2, %v616_v22 }
  0x37   :  { %967 = vmatpush3.bf16.msra.mxu0 %v723_v23  ;;  %968 = vmatprep.mubr.msk.bf16.mxu0 %vm981_vm1, %v980_v0 }
  0x3e   :  { %969 = vmatmul.mubr.msk.bf16.vlgmr.msra.gmra.mxu0 %vm17_vm2, %v716_v24 }
  0xc6   :  { %v59_v28 = vpop.f32.mrf.mxu0 }
  0xc7   :  { %v65_v29 = vpack.c.bf16 %v59_v28, %v59_v28 }
  0xc8   :  { %v886_v31 = vpop.f32.mrf.mxu0 }
  0xc9   :  { %891 = vmatmul.mubr.msk.bf16.vlgmr.msra.gmra.mxu1 %vm17_vm2, %v65_v29 }
  0xca   :  { %v62_v32 = vpop.f32.mrf.mxu0  ;;  %901 = vmatpush3.bf16.msra.mxu1 %v171_v30  ;;  %902 = vmatprep.mubr.msk.bf16.mxu1 %vm981_vm1, %v980_v0 }
  0xcb   :  { %912 = vmatprep.subr.bf16.mxu1 %v980_v0 }
  0xcc   :  { %v887_v33 = vpop.f32.mrf.mxu0 }
  0xce   :  { %v159_v35 = vpop.f32.mrf.mxu0 }
  0xcf   :  { %v165_v36 = vpack.c.bf16 %v159_v35, %v159_v35 }
  0xd0   :  { %v898_v38 = vpop.f32.mrf.mxu0 }
  0xd1   :  { %903 = vmatmul.mubr.msk.bf16.vlgmr.msra.gmra.mxu1 %vm17_vm2, %v165_v36 }
  0xd2   :  { %v162_v39 = vpop.f32.mrf.mxu0  ;;  %913 = vmatpush3.bf16.msra.mxu1 %v271_v37  ;;  %914 = vmatprep.mubr.msk.bf16.mxu1 %vm981_vm1, %v980_v0 }
  0xd3   :  { %924 = vmatprep.subr.bf16.mxu1 %v980_v0 }
  0xd4   :  { %v899_v40 = vpop.f32.mrf.mxu0 }
  0xd6   :  { %v259_v42 = vpop.f32.mrf.mxu0 }
  0xd7   :  { %v265_v43 = vpack.c.bf16 %v259_v42, %v259_v42 }
  0xd8   :  { %v910_v45 = vpop.f32.mrf.mxu0 }
  0xd9   :  { %915 = vmatmul.mubr.msk.bf16.vlgmr.msra.gmra.mxu1 %vm17_vm2, %v265_v43 }
  0xda   :  { %v262_v46 = vpop.f32.mrf.mxu0  ;;  %925 = vmatpush3.bf16.msra.mxu1 %v371_v44  ;;  %926 = vmatprep.mubr.msk.bf16.mxu1 %vm981_vm1, %v980_v0 }
  0xdb   :  { %936 = vmatprep.subr.bf16.mxu1 %v980_v0 }
  0xdc   :  { %v911_v47 = vpop.f32.mrf.mxu0 }
  0xde   :  { %v359_v49 = vpop.f32.mrf.mxu0 }
  0xdf   :  { %v365_v50 = vpack.c.bf16 %v359_v49, %v359_v49 }
  0xe0   :  { %v922_v52 = vpop.f32.mrf.mxu0 }
  0xe1   :  { %927 = vmatmul.mubr.msk.bf16.vlgmr.msra.gmra.mxu1 %vm17_vm2, %v365_v50 }
  0xe2   :  { %v362_v53 = vpop.f32.mrf.mxu0  ;;  %937 = vmatpush3.bf16.msra.mxu1 %v471_v51  ;;  %938 = vmatprep.mubr.msk.bf16.mxu1 %vm981_vm1, %v980_v0 }
  0xe3   :  { %948 = vmatprep.subr.bf16.mxu1 %v980_v0 }
  0xe4   :  { %v923_v54 = vpop.f32.mrf.mxu0 }
  0xe6   :  { %v459_v56 = vpop.f32.mrf.mxu0 }
  0xe7   :  { %v465_v57 = vpack.c.bf16 %v459_v56, %v459_v56 }
  0xe8   :  { %v934_v59 = vpop.f32.mrf.mxu0 }
  0xe9   :  { %939 = vmatmul.mubr.msk.bf16.vlgmr.msra.gmra.mxu1 %vm17_vm2, %v465_v57 }
  0xea   :  { %v462_v60 = vpop.f32.mrf.mxu0  ;;  %949 = vmatpush3.bf16.msra.mxu1 %v571_v58  ;;  %950 = vmatprep.mubr.msk.bf16.mxu1 %vm981_vm1, %v980_v0 }
  0xeb   :  { %960 = vmatprep.subr.bf16.mxu1 %v980_v0 }
  0xec   :  { %v935_v61 = vpop.f32.mrf.mxu0 }
  0xee   :  { %v559_v63 = vpop.f32.mrf.mxu0 }
  0xef   :  { %v565_v1 = vpack.c.bf16 %v559_v63, %v559_v63 }
  0xf0   :  { %v946_v3 = vpop.f32.mrf.mxu0 }
  0xf1   :  { %951 = vmatmul.mubr.msk.bf16.vlgmr.msra.gmra.mxu1 %vm17_vm2, %v565_v1 }
  0xf2   :  { %v562_v4 = vpop.f32.mrf.mxu0  ;;  %961 = vmatpush3.bf16.msra.mxu1 %v671_v2  ;;  %962 = vmatprep.mubr.msk.bf16.mxu1 %vm981_vm1, %v980_v0 }
  0xf3   :  { %972 = vmatprep.subr.bf16.mxu1 %v980_v0 }
  0xf4   :  { %v947_v5 = vpop.f32.mrf.mxu0 }
  0xf6   :  { %v659_v7 = vpop.f32.mrf.mxu0 }
  0xf7   :  { %v665_v8 = vpack.c.bf16 %v659_v7, %v659_v7 }
  0xf8   :  { %v958_v10 = vpop.f32.mrf.mxu0 }
  0xf9   :  { %963 = vmatmul.mubr.msk.bf16.vlgmr.msra.gmra.mxu1 %vm17_vm2, %v665_v8 }
  0xfa   :  { %v662_v11 = vpop.f32.mrf.mxu0  ;;  %973 = vmatpush3.bf16.msra.mxu1 %v771_v9  ;;  %974 = vmatprep.mubr.msk.bf16.mxu1 %vm981_vm1, %v980_v0 }
  0xfc   :  { %v959_v12 = vpop.f32.mrf.mxu0 }
  0xfe   :  { %v759_v13 = vpop.f32.mrf.mxu0 }
  0xff   :  { %v765_v14 = vpack.c.bf16 %v759_v13, %v759_v13 }
 0x100   :  { %v970_v15 = vpop.f32.mrf.mxu0 }
 0x101   :  { %975 = vmatmul.mubr.msk.bf16.vlgmr.msra.gmra.mxu1 %vm17_vm2, %v765_v14 }
 0x102   :  { %v762_v16 = vpop.f32.mrf.mxu0 }
 0x104   :  { %v971_v17 = vpop.f32.mrf.mxu0 }
 0x189   :  { %v107_v18 = vpop.f32.mrf.mxu1 }
 0x18a   :  { %v113_v19 = vpack.c.bf16 %v107_v18, %v107_v18 }
 0x18b   :  { %v892_v20 = vpop.f32.mrf.mxu1 }
 0x18c   :  { %115 = vst.msk [vmem:[%s1189_s3] sm:$0xf] %vm114_vm3, %v113_v19 }
 0x18d   :  { %v110_v21 = vpop.f32.mrf.mxu1 }
 0x18f   :  { %v893_v22 = vpop.f32.mrf.mxu1 }
 0x191   :  { %v207_v0 = vpop.f32.mrf.mxu1 }
 0x192   :  { %v213_v23 = vpack.c.bf16 %v207_v0, %v207_v0 }
 0x193   :  { %v904_v24 = vpop.f32.mrf.mxu1 }
 0x194   :  { %825 = vst.msk [vmem:[%s1189_s3 + $0x4] sm:$0xf] %vm114_vm3, %v213_v23 }
 0x195   :  { %v210_v25 = vpop.f32.mrf.mxu1 }
 0x197   :  { %v905_v26 = vpop.f32.mrf.mxu1 }
 0x199   :  { %v307_v27 = vpop.f32.mrf.mxu1 }
 0x19a   :  { %v313_v28 = vpack.c.bf16 %v307_v27, %v307_v27 }
 0x19b   :  { %v916_v29 = vpop.f32.mrf.mxu1 }
 0x19c   :  { %829 = vst.msk [vmem:[%s1189_s3 + $0x8] sm:$0xf] %vm114_vm3, %v313_v28 }
 0x19d   :  { %v310_v30 = vpop.f32.mrf.mxu1 }
 0x19f   :  { %v917_v31 = vpop.f32.mrf.mxu1 }
 0x1a1   :  { %v407_v32 = vpop.f32.mrf.mxu1 }
 0x1a2   :  { %v413_v33 = vpack.c.bf16 %v407_v32, %v407_v32 }
 0x1a3   :  { %v928_v34 = vpop.f32.mrf.mxu1 }
 0x1a4   :  { %833 = vst.msk [vmem:[%s1189_s3 + $0xc] sm:$0xf] %vm114_vm3, %v413_v33 }
 0x1a5   :  { %v410_v35 = vpop.f32.mrf.mxu1 }
 0x1a7   :  { %v929_v36 = vpop.f32.mrf.mxu1 }
 0x1a9   :  { %v507_v37 = vpop.f32.mrf.mxu1 }
 0x1aa   :  { %v513_v38 = vpack.c.bf16 %v507_v37, %v507_v37 }
 0x1ab   :  { %v940_v39 = vpop.f32.mrf.mxu1 }
 0x1ac   :  { %837 = vst.msk [vmem:[%s1189_s3 + $0x10] sm:$0xf] %vm114_vm3, %v513_v38 }
 0x1ad   :  { %v510_v40 = vpop.f32.mrf.mxu1 }
 0x1af   :  { %v941_v41 = vpop.f32.mrf.mxu1 }
 0x1b1   :  { %v607_v42 = vpop.f32.mrf.mxu1 }
 0x1b2   :  { %v613_v43 = vpack.c.bf16 %v607_v42, %v607_v42 }
 0x1b3   :  { %v952_v44 = vpop.f32.mrf.mxu1 }
 0x1b4   :  { %841 = vst.msk [vmem:[%s1189_s3 + $0x14] sm:$0xf] %vm114_vm3, %v613_v43 }
 0x1b5   :  { %v610_v45 = vpop.f32.mrf.mxu1 }
 0x1b7   :  { %v953_v46 = vpop.f32.mrf.mxu1 }
 0x1b9   :  { %v707_v47 = vpop.f32.mrf.mxu1 }
 0x1ba   :  { %v713_v48 = vpack.c.bf16 %v707_v47, %v707_v47 }
 0x1bb   :  { %v964_v49 = vpop.f32.mrf.mxu1 }
 0x1bc   :  { %845 = vst.msk [vmem:[%s1189_s3 + $0x18] sm:$0xf] %vm114_vm3, %v713_v48 }
 0x1bd   :  { %v710_v50 = vpop.f32.mrf.mxu1 }
 0x1bf   :  { %v965_v51 = vpop.f32.mrf.mxu1 }
 0x1c1   :  { %v807_v52 = vpop.f32.mrf.mxu1 }
 0x1c2   :  { %v813_v53 = vpack.c.bf16 %v807_v52, %v807_v52 }
 0x1c3   :  { %v976_v54 = vpop.f32.mrf.mxu1 }
 0x1c4   :  { %849 = vst.msk [vmem:[%s1189_s3 + $0x1c] sm:$0xf] %vm114_vm3, %v813_v53 }
 0x1c5   :  { %v810_v55 = vpop.f32.mrf.mxu1 }
 0x1c7   :  { %v977_v56 = vpop.f32.mrf.mxu1 }

// kernel: prop_head_forward.27
= control target key start
LH: loop header
LB: loop body
LE: loop exit
PB: predicated region body
PF: predicated region fallthrough
CT: control target
= control target key end

     0   :  { %s464_s15 = smov 0   ;;  %s466_s16 = smov 0   ;;  %s506_s0 = inlined_call_operand.vmem [shape: bf16[2,8,64], index: 0, kind: input, shape index: {}]   ;;  %s507_s1 = inlined_call_operand.vmem [shape: bf16[8,8], index: 1, kind: input, shape index: {}]   ;;  %s508_s2 = inlined_call_operand.vmem [shape: f32[8,1], index: 2, kind: input, shape index: {}]   ;;  %s509_s3 = inlined_call_operand.vmem [shape: f32[8,1], index: 3, kind: input, shape index: {}]   ;;  %s510_s4 = inlined_call_operand.vmem [shape: bf16[2,8,64], index: 4, kind: output, shape index: {}]  }
   0x1   :  { %s468_s17 = smov 0  }
   0x2 LB: > { %s26_s18 = sadd.s32 1, %s430_s16  ;;  %p370_p0 = scmp.ge.s32.totalorder %s434_s17, 1  ;;  %s434_s17 = sphi %s468_s17, %s14_s17   ;;  %s430_s16 = sphi %s466_s16, %s512_s16   ;;  %s426_s15 = sphi %s464_s15, %s511_s15  }
   0x3   : > { %p28_p1 = scmp.ge.s32.totalorder %s26_s18, 2  ;;  %p180_p2 = scmp.lt.s32.totalorder %s434_s17, 3 }
   0x5   : > { %s514_s18 = smov (%p28_p1, %s26_s18), 0  ;;  %p181_p3 = pnand %p370_p0, %p180_p2 }
   0x6   : > { %p210_p4 = scmp.lt.s32.totalorder (!%p181_p3), %s426_s15, 1 }
   0x7   : > { %184 = sbr.rel (%p181_p3) target bundleno = 220 (0xdc), region = 36 }
   0xc   : > { %v436_v0 = vmov 0.0   ;;  %vm437_vm0 = vmmov 0   ;;  %v275_v1 = vld [vmem:[%s508_s2] sm:$0xff]  ;;  %s516_s15 = smov (!%p210_p4, %s426_s15), 1  ;;  %v438_v2 = vmov 0   ;;  %vm231_vm1 = vcmask 1043456  }
   0xd   : > { %378 = vmatprep.subr.bf16.mxu0 %v436_v0  ;;  %380 = vmatprep.mubr.msk.bf16.mxu0 %vm437_vm0, %v436_v0  ;;  %s371_s21 = sshll.u32 %s516_s15, 2  ;;  %v282_v3 = vld [vmem:[%s509_s3] sm:$0xff]  ;;  %vm227_vm2 = vcmask 64512   ;;  %vm290_vm3 = vcmask 519168  }
   0xe   : > { %411 = vset.pattern.permute.xlu0 %v438_v2  ;;  %s216_s26 = scalar_lea.vmem %s506_s0, %s371_s21  ;;  %v225_v6 = vld [vmem:[%s507_s1] sm:$0xf]  ;;  %s223_s5 = scalar_lea.vmem %s510_s4, %s371_s21 }
   0xf   : > { %278 = vperm.xlu0 %411, %v275_v1   ;;  %v226_v4 = vld [vmem:[%s216_s26] sm:$0xf] }
  0x10   : > { %v233_v5 = vsel %vm231_vm1, %v226_v4, 0 }
  0x11   : > { %379 = vmatpush3.bf16.msra.mxu0 %v233_v5 }
  0x13   : > { %285 = vperm.xlu0 %411, %v282_v3  }
  0x14   : > { %381 = vmatmul.mubr.msk.bf16.vlgmr.msra.gmra.mxu0 %vm227_vm2, %v225_v6 }
  0x8a   : > { %v279_v7 = vpop.permute.xlu0 %278 }
  0x8e   : > { %v286_v10 = vpop.permute.xlu0 %285 }
  0xd4   : > { %v269_v8 = vpop.f32.mrf.mxu0 }
  0xd5   : > { %v281_v9 = vmul.f32 %v279_v7, %v269_v8 }
  0xd6   : > { %v382_v11 = vpop.f32.mrf.mxu0 }
  0xd7   : > { %v288_v12 = vadd.f32 %v286_v10, %v281_v9 }
  0xd8   : > { %v272_v13 = vpop.f32.mrf.mxu0 }
  0xd9   : > { %v289_v14 = vpack.c.bf16 %v288_v12, %v288_v12 }
  0xda   : > { %v383_v15 = vpop.f32.mrf.mxu0 }
  0xdb   : > { %291 = vst.msk [vmem:[%s223_s5] sm:$0xf] %vm290_vm3, %v289_v14 }
  0xdc PF: > { %s14_s17 = sadd.s32 1, %s434_s17   ;;  %s511_s15 = smov %s430_s16 }
  0xdd   : > { %p11_p5 = scmp.ge.s32.totalorder %s14_s17, 4   ;;  %s512_s16 = smov %s514_s18 }
  0xdf   :  { %13 = sbr.rel (!%p11_p5) target bundleno = 2 (0x2), region = 66 }

// kernel: prop_head_forward.26
= control target key start
LH: loop header
LB: loop body
LE: loop exit
PB: predicated region body
PF: predicated region fallthrough
CT: control target
= control target key end

     0   :  { %s529_s15 = smov 0   ;;  %s531_s16 = smov 0   ;;  %s575_s0 = inlined_call_operand.vmem [shape: bf16[2,72,64], index: 0, kind: input, shape index: {}]   ;;  %s576_s1 = inlined_call_operand.vmem [shape: bf16[8,72], index: 1, kind: input, shape index: {}]   ;;  %s577_s2 = inlined_call_operand.vmem [shape: f32[8,1], index: 2, kind: input, shape index: {}]   ;;  %s578_s3 = inlined_call_operand.vmem [shape: f32[8,1], index: 3, kind: input, shape index: {}]   ;;  %s579_s4 = inlined_call_operand.vmem [shape: bf16[2,8,64], index: 4, kind: output, shape index: {}]  }
   0x1   :  { %s533_s17 = smov 0  }
   0x2 LB: > { %s26_s18 = sadd.s32 1, %s495_s16  ;;  %p412_p0 = scmp.ge.s32.totalorder %s499_s17, 1  ;;  %s499_s17 = sphi %s533_s17, %s14_s17   ;;  %s495_s16 = sphi %s531_s16, %s581_s16   ;;  %s491_s15 = sphi %s529_s15, %s580_s15  }
   0x3   : > { %p28_p1 = scmp.ge.s32.totalorder %s26_s18, 2  ;;  %p181_p2 = scmp.lt.s32.totalorder %s499_s17, 3 }
   0x5   : > { %s583_s18 = smov (%p28_p1, %s26_s18), 0  ;;  %p182_p3 = pnand %p412_p0, %p181_p2 }
   0x6   : > { %p212_p4 = scmp.lt.s32.totalorder (!%p182_p3), %s491_s15, 1 }
   0x7   : > { %185 = sbr.rel (%p182_p3) target bundleno = 239 (0xef), region = 36 }
   0xc   : > { %v501_v0 = vmov 0.0   ;;  %vm502_vm0 = vmmov 0   ;;  %v313_v1 = vld [vmem:[%s577_s2] sm:$0xff]  ;;  %s585_s15 = smov (!%p212_p4, %s491_s15), 1  ;;  %v503_v2 = vmov 0   ;;  %vm269_vm1 = vcmask 1043456  }
   0xd   : > { %429 = vmatprep.subr.bf16.mxu0 %v501_v0  ;;  %439 = vmatprep.mubr.msk.bf16.mxu0 %vm502_vm0, %v501_v0  ;;  %s443_s21 = smul.u32 36, %s585_s15  ;;  %v320_v3 = vld [vmem:[%s578_s3] sm:$0xff]  ;;  %vm265_vm2 = vcmask 588800   ;;  %s414_s29 = sshll.u32 %s585_s15, 2  ;;  %vm329_vm3 = vcmask 519168  }
   0xe   : > { %471 = vset.pattern.permute.xlu0 %v503_v2  ;;  %v228_v10 = vld [vmem:[%s576_s1] sm:$0xf]  ;;  %s226_s6 = scalar_lea.vmem %s579_s4, %s414_s29 }
   0xf   : > { %316 = vperm.xlu0 %471, %v313_v1   ;;  %s219_s26 = scalar_lea.vmem %s575_s0, %s443_s21 }
  0x10   : > { %v472_v4 = vld [vmem:[%s219_s26 + $0x20] ss:$0 sps:$4 sm:$0xff]   ;;  %v473_v6 = vld [vmem:[%s219_s26 + $0x18] sm:$0xff]   ;;  %v474_v7 = vld [vmem:[%s219_s26 + $0x10] sm:$0xff]  }
  0x11   : > { %v271_v5 = vsel %vm269_vm1, %v472_v4, 0  ;;  %v475_v8 = vld [vmem:[%s219_s26 + $0x8] sm:$0xff]   ;;  %v476_v9 = vld [vmem:[%s219_s26] sm:$0xff]  }
  0x12   : > { %430 = vmatpush3.bf16.msra.mxu0 %v271_v5 }
  0x13   : > { %323 = vperm.xlu0 %471, %v320_v3   ;;  %431 = vmatprep.subr.bf16.mxu0 %v501_v0 }
  0x16   : > { %432 = vmatpush3.bf16.msra.mxu0 %v473_v6 }
  0x17   : > { %433 = vmatprep.subr.bf16.mxu0 %v501_v0 }
  0x1a   : > { %434 = vmatpush3.bf16.msra.mxu0 %v474_v7 }
  0x1b   : > { %435 = vmatprep.subr.bf16.mxu0 %v501_v0 }
  0x1e   : > { %436 = vmatpush3.bf16.msra.mxu0 %v475_v8 }
  0x1f   : > { %437 = vmatprep.subr.bf16.mxu0 %v501_v0 }
  0x22   : > { %438 = vmatpush3.bf16.msra.mxu0 %v476_v9 }
  0x25   : > { %440 = vmatmul.mubr.msk.bf16.vlgmr.msra.gmra.mxu0 %vm265_vm2, %v228_v10 }
  0x8a   : > { %v317_v11 = vpop.permute.xlu0 %316 }
  0x8e   : > { %v324_v14 = vpop.permute.xlu0 %323 }
  0xe5   : > { %v307_v12 = vpop.f32.mrf.mxu0 }
  0xe6   : > { %v319_v13 = vmul.f32 %v317_v11, %v307_v12 }
  0xe7   : > { %v441_v15 = vpop.f32.mrf.mxu0 }
  0xe8   : > { %v326_v16 = vadd.f32 %v324_v14, %v319_v13 }
  0xe9   : > { %v310_v17 = vpop.f32.mrf.mxu0 }
  0xea   : > { %v327_v18 = vmax.f32 %v326_v16, 0.0 }
  0xeb   : > { %v442_v19 = vpop.f32.mrf.mxu0 }
  0xec   : > { %v328_v20 = vpack.c.bf16 %v327_v18, %v327_v18 }
  0xee   : > { %330 = vst.msk [vmem:[%s226_s6] sm:$0xf] %vm329_vm3, %v328_v20 }
  0xef PF: > { %s14_s17 = sadd.s32 1, %s499_s17   ;;  %s580_s15 = smov %s495_s16 }
  0xf0   : > { %p11_p5 = scmp.ge.s32.totalorder %s14_s17, 4   ;;  %s581_s16 = smov %s583_s18 }
  0xf2   :  { %13 = sbr.rel (!%p11_p5) target bundleno = 2 (0x2), region = 66 }

// kernel: prop_head_forward.34
= control target key start
LH: loop header
LB: loop body
LE: loop exit
PB: predicated region body
PF: predicated region fallthrough
CT: control target
= control target key end

     0   :  { %s756_s12 = smov 0   ;;  %s758_s13 = smov 0   ;;  %s826_s0 = inlined_call_operand.vmem [shape: bf16[2,64,8], index: 0, kind: input, shape index: {}]   ;;  %s827_s1 = inlined_call_operand.vmem [shape: bf16[2,8,64], index: 1, kind: input, shape index: {}]   ;;  %s828_s2 = inlined_call_operand.vmem [shape: f32[2,2,64], index: 2, kind: input, shape index: {}]   ;;  %s829_s3 = inlined_call_operand.vmem [shape: f32[2,2,64], index: 3, kind: output, shape index: {}]  }
   0x1   :  { %s760_s14 = smov 0  }
   0x2 LB: > { %s25_s15 = sadd.s32 1, %s728_s13  ;;  %p600_p0 = scmp.ge.s32.totalorder %s732_s14, 1  ;;  %s732_s14 = sphi %s760_s14, %s13_s14   ;;  %s728_s13 = sphi %s758_s13, %s831_s13   ;;  %s724_s12 = sphi %s756_s12, %s830_s12  }
   0x3   : > { %p27_p1 = scmp.ge.s32.totalorder %s25_s15, 2  ;;  %p174_p2 = scmp.lt.s32.totalorder %s732_s14, 3 }
   0x5   : > { %s833_s15 = smov (%p27_p1, %s25_s15), 0  ;;  %p175_p3 = pnand %p600_p0, %p174_p2 }
   0x6   : > { %p211_p4 = scmp.lt.s32.totalorder (!%p175_p3), %s724_s12, 1 }
   0x7   : > { %178 = sbr.rel (%p175_p3) target bundleno = 518 (0x206), region = 32 }
   0xc   : > { %s835_s12 = smov (!%p211_p4, %s724_s12), 1  ;;  %vm277_vm0 = vcmask 1043456   ;;  %vm264_vm1 = vcmask 64512   ;;  %v734_v6 = vmov 0.0   ;;  %vm735_vm2 = vmmov 0  }
   0xd   : > { %s617_s16 = sshll.u32 %s835_s12, 5  ;;  %s603_s17 = sshll.u32 %s835_s12, 2  ;;  %642 = vmatprep.subr.mxu1 %v734_v6  ;;  %658 = vmatprep.mubr.msk.f32.mxu1 %vm735_vm2, %v734_v6  ;;  %vm346_vm3 = vcmask 523264   ;;  %vm496_vm4 = vcmask 517120  }
   0xe   : > { %s215_s20 = scalar_lea.vmem %s826_s0, %s617_s16  ;;  %s222_s23 = scalar_lea.vmem %s827_s1, %s603_s17 }
   0xf   : > { %v243_v0 = vld [vmem:[%s222_s23] sm:$0xf]  ;;  %v689_v3 = vld [vmem:[%s215_s20 + $0x8] sm:$0xff]   ;;  %v690_v4 = vld [vmem:[%s215_s20 + $0x10] sm:$0xff]   ;;  %s604_s24 = sshll.u32 %s835_s12, 1 }
  0x10   : > { %661 = vmatprep.subr.msk.bf16.mxu0 %vm277_vm0, %v243_v0  ;;  %v279_v1 = vsel %vm277_vm0, %v243_v0, 0  ;;  %v688_v2 = vld [vmem:[%s215_s20] sm:$0xff]   ;;  %v691_v5 = vld [vmem:[%s215_s20 + $0x18] sm:$0xff]   ;;  %s226_s27 = scalar_lea.vmem %s828_s2, %s604_s24  ;;  %s233_s30 = scalar_lea.vmem %s829_s3, %s604_s24 }
  0x11   : > { %633 = vmatpush3.bf16.msra.mxu0 %v279_v1  ;;  %634 = vmatprep.mubr.msk.bf16.mxu0 %vm264_vm1, %v688_v2 }
  0x14   : > { %635 = vmatmul.mubr.msk.bf16.vlgmr.msra.gmra.mxu0 %vm264_vm1, %v689_v3 }
  0x15   : > { %638 = vmatprep.mubr.msk.bf16.mxu0 %vm264_vm1, %v690_v4 }
  0x1c   : > { %639 = vmatmul.mubr.msk.bf16.gmra.mxu0 %vm264_vm1, %v691_v5 }
  0xd4   : > { %v636_v7 = vpop.f32.mrf.mxu0 }
  0xd5   : > { %v349_v20 = vsel %vm346_vm3, %v636_v7, -inf }
  0xd6   : > { %v315_v8 = vpop.f32.mrf.mxu0 }
  0xd7   : > { %v347_v21 = vsel %vm346_vm3, %v315_v8, -inf }
  0xd8   : > { %v637_v9 = vpop.f32.mrf.mxu0 }
  0xd9   : > { %v350_v14 = vsel %vm346_vm3, %v637_v9, -inf }
  0xda   : > { %v318_v10 = vpop.f32.mrf.mxu0 }
  0xdb   : > { %v348_v22 = vsel %vm346_vm3, %v318_v10, -inf }
  0xdc   : > { %v640_v11 = vpop.f32.mrf.mxu0 }
  0xdd   : > { %v355_v15 = vsel %vm346_vm3, %v640_v11, -inf }
  0xde   : > { %v331_v12 = vpop.f32.mrf.mxu0  ;;  %v356_v24 = vmax.f32 %v349_v20, %v355_v15 }
  0xdf   : > { %v351_v16 = vsel %vm346_vm3, %v331_v12, -inf }
  0xe0   : > { %v641_v13 = vpop.f32.mrf.mxu0  ;;  %v352_v25 = vmax.f32 %v347_v21, %v351_v16 }
  0xe1   : > { %v357_v17 = vsel %vm346_vm3, %v641_v13, -inf }
  0xe2   : > { %v358_v18 = vmax.f32 %v350_v14, %v357_v17  ;;  %v334_v19 = vpop.f32.mrf.mxu0 }
  0xe3   : > { %v353_v23 = vsel %vm346_vm3, %v334_v19, -inf }
  0xe4   : > { %v354_v26 = vmax.f32 %v348_v22, %v353_v23  ;;  %v360_v27 = vmax.f32 %v356_v24, %v358_v18 }
  0xe6   : > { %v359_v28 = vmax.f32 %v352_v25, %v354_v26 }
  0xe8   : > { %v361_v29 = vmax.f32 %v359_v28, %v360_v27  ;;  %v422_v27 = vld [vmem:[%s226_s27] sm:$0x3] }
  0xea   : > { %v362_v30 = vrot.slane %v361_v29, 4 }
  0xec   : > { %v363_v31 = vmax.f32 %v361_v29, %v362_v30 }
  0xee   : > { %v364_v32 = vrot.slane %v363_v31, 2 }
  0xf0   : > { %v365_v33 = vmax.f32 %v363_v31, %v364_v32 }
  0xf2   : > { %v366_v34 = vrot.slane %v365_v33, 1 }
  0xf4   : > { %v367_v35 = vmax.f32 %v365_v33, %v366_v34 }
  0xf6   : > { %v368_v36 = vsub.f32 %v315_v8, %v367_v35  ;;  %v369_v37 = vsub.f32 %v318_v10, %v367_v35  ;;  %v370_v38 = vsub.f32 %v636_v7, %v367_v35  ;;  %v371_v39 = vsub.f32 %v637_v9, %v367_v35 }
  0xf7   : > { %v372_v40 = vsub.f32 %v331_v12, %v367_v35  ;;  %v373_v44 = vsub.f32 %v334_v19, %v367_v35  ;;  %v374_v46 = vsub.f32 %v640_v11, %v367_v35  ;;  %v375_v49 = vsub.f32 %v641_v13, %v367_v35 }
  0xf8   : > { %v376_v41 = vmul.f32 1.442695, %v368_v36  ;;  %v378_v42 = vmul.f32 1.442695, %v369_v37  ;;  %v380_v43 = vmul.f32 1.442695, %v370_v38 }
  0xf9   : > { %v382_v45 = vmul.f32 1.442695, %v371_v39  ;;  %v384_v47 = vmul.f32 1.442695, %v372_v40  ;;  %v386_v48 = vmul.f32 1.442695, %v373_v44 }
  0xfa   : > { %692 = vpow2.f32 %v376_v41  ;;  %v388_v50 = vmul.f32 1.442695, %v374_v46  ;;  %v390_v51 = vmul.f32 1.442695, %v375_v49 }
  0xfb   : > { %694 = vpow2.f32 %v378_v42 }
  0xfc   : > { %696 = vpow2.f32 %v380_v43 }
  0xfd   : > { %698 = vpow2.f32 %v382_v45 }
  0xfe   : > { %700 = vpow2.f32 %v384_v47 }
  0xff   : > { %702 = vpow2.f32 %v386_v48 }
 0x100   : > { %704 = vpow2.f32 %v388_v50 }
 0x101   : > { %706 = vpow2.f32 %v390_v51 }
 0x107   : > { %v693_v52 = vpop.eup %692 }
 0x108   : > { %v695_v53 = vpop.eup %694  ;;  %v392_v54 = vsel %vm346_vm3, %v693_v52, 0.0 }
 0x109   : > { %v697_v55 = vpop.eup %696  ;;  %v393_v56 = vsel %vm346_vm3, %v695_v53, 0.0 }
 0x10a   : > { %v699_v57 = vpop.eup %698  ;;  %v394_v58 = vadd.f32 %v393_v56, %v392_v54  ;;  %v395_v59 = vsel %vm346_vm3, %v697_v55, 0.0 }
 0x10b   : > { %v701_v60 = vpop.eup %700  ;;  %v397_v62 = vsel %vm346_vm3, %v699_v57, 0.0 }
 0x10c   : > { %v396_v61 = vadd.f32 %v395_v59, %v394_v58  ;;  %v703_v63 = vpop.eup %702  ;;  %v399_v1 = vsel %vm346_vm3, %v701_v60, 0.0 }
 0x10d   : > { %v705_v2 = vpop.eup %704  ;;  %v401_v4 = vsel %vm346_vm3, %v703_v63, 0.0 }
 0x10e   : > { %v398_v0 = vadd.f32 %v397_v62, %v396_v61  ;;  %v707_v5 = vpop.eup %706  ;;  %v403_v8 = vsel %vm346_vm3, %v705_v2, 0.0 }
 0x10f   : > { %v405_v10 = vsel %vm346_vm3, %v707_v5, 0.0 }
 0x110   : > { %v400_v3 = vadd.f32 %v399_v1, %v398_v0 }
 0x112   : > { %v402_v7 = vadd.f32 %v401_v4, %v400_v3 }
 0x114   : > { %v404_v9 = vadd.f32 %v403_v8, %v402_v7 }
 0x116   : > { %v406_v11 = vadd.f32 %v405_v10, %v404_v9 }
 0x118   : > { %v407_v12 = vrot.slane %v406_v11, 4 }
 0x11a   : > { %v408_v13 = vadd.f32 %v407_v12, %v406_v11 }
 0x11c   : > { %v409_v14 = vrot.slane %v408_v13, 2 }
 0x11e   : > { %v410_v15 = vadd.f32 %v409_v14, %v408_v13 }
 0x120   : > { %v411_v16 = vrot.slane %v410_v15, 1 }
 0x122   : > { %v412_v17 = vadd.f32 %v411_v16, %v410_v15 }
 0x124   : > { %708 = vrcp.f32 %v412_v17 }
 0x131   : > { %v709_v18 = vpop.eup %708 }
 0x132   : > { %v421_v19 = vmul.f32 %v709_v18, %v707_v5  ;;  %v420_v20 = vmul.f32 %v709_v18, %v705_v2  ;;  %v419_v21 = vmul.f32 %v709_v18, %v703_v63  ;;  %v418_v22 = vmul.f32 %v709_v18, %v701_v60 }
 0x133   : > { %v417_v23 = vmul.f32 %v709_v18, %v699_v57  ;;  %v416_v24 = vmul.f32 %v709_v18, %v697_v55  ;;  %v415_v25 = vmul.f32 %v709_v18, %v695_v53  ;;  %v414_v26 = vmul.f32 %v709_v18, %v693_v52 }
 0x134   : > { %643 = vmatpush3.msra.mxu1 %v421_v19 }
 0x135   : > { %644 = vmatprep.subr.mxu1 %v734_v6 }
 0x136   : > { %645 = vmatpush3.msra.mxu1 %v420_v20 }
 0x137   : > { %646 = vmatprep.subr.mxu1 %v734_v6 }
 0x138   : > { %647 = vmatpush3.msra.mxu1 %v419_v21 }
 0x139   : > { %648 = vmatprep.subr.mxu1 %v734_v6 }
 0x13a   : > { %649 = vmatpush3.msra.mxu1 %v418_v22 }
 0x13b   : > { %650 = vmatprep.subr.mxu1 %v734_v6 }
 0x13c   : > { %651 = vmatpush3.msra.mxu1 %v417_v23 }
 0x13d   : > { %652 = vmatprep.subr.mxu1 %v734_v6 }
 0x13e   : > { %653 = vmatpush3.msra.mxu1 %v416_v24 }
 0x13f   : > { %654 = vmatprep.subr.mxu1 %v734_v6 }
 0x140   : > { %655 = vmatpush3.msra.mxu1 %v415_v25 }
 0x141   : > { %656 = vmatprep.subr.mxu1 %v734_v6 }
 0x142   : > { %657 = vmatpush3.msra.mxu1 %v414_v26 }
 0x143   : > { %659 = vmatmul.mubr.msk.f32.vlgmr.msra.gmra.mxu1 %vm346_vm3, %v422_v27 }
 0x203   : > { %v492_v28 = vpop.f32.mrf.mxu1 }
 0x204   : > { %497 = vst.msk [vmem:[%s233_s30] sm:$0x3] %vm496_vm4, %v492_v28 }
 0x205   : > { %v660_v29 = vpop.f32.mrf.mxu1 }
 0x206 PF: > { %s13_s14 = sadd.s32 1, %s732_s14   ;;  %s830_s12 = smov %s728_s13 }
 0x207   : > { %p10_p5 = scmp.ge.s32.totalorder %s13_s14, 4   ;;  %s831_s13 = smov %s833_s15 }
 0x209   :  { %12 = sbr.rel (!%p10_p5) target bundleno = 2 (0x2), region = 68 }

// kernel: prop_head_forward.35
= control target key start
LH: loop header
LB: loop body
LE: loop exit
PB: predicated region body
PF: predicated region fallthrough
CT: control target
= control target key end

     0   :  { %vm23_vm0 = vcmask 64512   ;;  %vm283_vm1 = vcmask 523264   ;;  %s1656_s0 = inlined_call_operand.vmem [shape: f32[4,8,8], index: 0, kind: input, shape index: {}]   ;;  %s1657_s1 = inlined_call_operand.vmem [shape: f32[64,8], index: 1, kind: input, shape index: {}]   ;;  %s1658_s2 = inlined_call_operand.vmem [shape: f32[8,64], index: 2, kind: input, shape index: {}]   ;;  %s1659_s3 = inlined_call_operand.vmem [shape: f32[4,64,64], index: 3, kind: output, shape index: {}]  }
   0x1   :  { %v22_v0 = vld [vmem:[%s1656_s0] sm:$0xff]  ;;  %v15_v2 = vld [vmem:[%s1657_s1 + $0x8] sm:$0xff]  ;;  %v16_v4 = vld [vmem:[%s1657_s1 + $0x10] sm:$0xff] }
   0x2   :  { %v14_v1 = vld [vmem:[%s1657_s1] sm:$0xff]  ;;  %1293 = vmatprep.subr.mxu0 %v22_v0  ;;  %v1146_v3 = vld [vmem:[%s1656_s0 + $0x8] sm:$0xff]  ;;  %v1171_v5 = vld [vmem:[%s1656_s0 + $0x10] sm:$0xff] }
   0x3   :  { %1295 = vmatprep.mubr.msk.f32.mxu0 %vm23_vm0, %v14_v1  ;;  %1294 = vmatpush3.msra.mxu0 %v22_v0  ;;  %v17_v6 = vld [vmem:[%s1657_s1 + $0x18] sm:$0xff]  ;;  %v18_v7 = vld [vmem:[%s1657_s1 + $0x20] sm:$0xff]  ;;  %v19_v8 = vld [vmem:[%s1657_s1 + $0x28] sm:$0xff] }
   0x4   :  { %1296 = vmatmul.mubr.msk.f32.vlgmr.msra.gmra.mxu0 %vm23_vm0, %v15_v2  ;;  %1321 = vmatprep.subr.mxu0 %v1146_v3  ;;  %v20_v9 = vld [vmem:[%s1657_s1 + $0x30] sm:$0xff]  ;;  %v21_v10 = vld [vmem:[%s1657_s1 + $0x38] sm:$0xff]  ;;  %v153_v12 = vld [vmem:[%s1658_s2] sm:$0xff] }
   0x5   :  { %1322 = vmatpush3.msra.mxu0 %v1146_v3  ;;  %1298 = vmatprep.mubr.msk.f32.mxu0 %vm23_vm0, %v16_v4  ;;  %v1196_v11 = vld [vmem:[%s1656_s0 + $0x18] sm:$0xff] }
   0x6   :  { %1349 = vmatprep.subr.mxu0 %v1171_v5  ;;  %1307 = vmatprep.subr.mxu1 %v153_v12 }
   0x7   :  { %1308 = vmatpush3.msra.mxu1 %v153_v12 }
   0x8   :  { %1299 = vmatmul.mubr.msk.f32.gmra.mxu0 %vm23_vm0, %v17_v6  ;;  %1335 = vmatprep.subr.mxu1 %v153_v12 }
   0x9   :  { %1301 = vmatprep.mubr.msk.f32.mxu0 %vm23_vm0, %v18_v7 }
   0xc   :  { %1302 = vmatmul.mubr.msk.f32.gmra.mxu0 %vm23_vm0, %v19_v8 }
   0xd   :  { %1304 = vmatprep.mubr.msk.f32.mxu0 %vm23_vm0, %v20_v9 }
  0x10   :  { %1305 = vmatmul.mubr.msk.f32.gmra.mxu0 %vm23_vm0, %v21_v10 }
  0x11   :  { %1323 = vmatprep.mubr.msk.f32.mxu0 %vm23_vm0, %v14_v1 }
  0x14   :  { %1324 = vmatmul.mubr.msk.f32.vlgmr.msra.gmra.mxu0 %vm23_vm0, %v15_v2 }
  0x15   :  { %1350 = vmatpush3.msra.mxu0 %v1171_v5  ;;  %1326 = vmatprep.mubr.msk.f32.mxu0 %vm23_vm0, %v16_v4 }
  0x16   :  { %1377 = vmatprep.subr.mxu0 %v1196_v11 }
  0x18   :  { %1327 = vmatmul.mubr.msk.f32.gmra.mxu0 %vm23_vm0, %v17_v6 }
  0x19   :  { %1329 = vmatprep.mubr.msk.f32.mxu0 %vm23_vm0, %v18_v7 }
  0x1c   :  { %1330 = vmatmul.mubr.msk.f32.gmra.mxu0 %vm23_vm0, %v19_v8 }
  0x1d   :  { %1332 = vmatprep.mubr.msk.f32.mxu0 %vm23_vm0, %v20_v9 }
  0x20   :  { %1333 = vmatmul.mubr.msk.f32.gmra.mxu0 %vm23_vm0, %v21_v10 }
  0x21   :  { %1351 = vmatprep.mubr.msk.f32.mxu0 %vm23_vm0, %v14_v1 }
  0x24   :  { %1352 = vmatmul.mubr.msk.f32.vlgmr.msra.gmra.mxu0 %vm23_vm0, %v15_v2 }
  0x25   :  { %1378 = vmatpush3.msra.mxu0 %v1196_v11  ;;  %1354 = vmatprep.mubr.msk.f32.mxu0 %vm23_vm0, %v16_v4 }
  0x28   :  { %1355 = vmatmul.mubr.msk.f32.gmra.mxu0 %vm23_vm0, %v17_v6 }
  0x29   :  { %1357 = vmatprep.mubr.msk.f32.mxu0 %vm23_vm0, %v18_v7 }
  0x2c   :  { %1358 = vmatmul.mubr.msk.f32.gmra.mxu0 %vm23_vm0, %v19_v8 }
  0x2d   :  { %1360 = vmatprep.mubr.msk.f32.mxu0 %vm23_vm0, %v20_v9 }
  0x30   :  { %1361 = vmatmul.mubr.msk.f32.gmra.mxu0 %vm23_vm0, %v21_v10 }
  0x31   :  { %1379 = vmatprep.mubr.msk.f32.mxu0 %vm23_vm0, %v14_v1 }
  0x34   :  { %1380 = vmatmul.mubr.msk.f32.vlgmr.msra.gmra.mxu0 %vm23_vm0, %v15_v2 }
  0x35   :  { %1382 = vmatprep.mubr.msk.f32.mxu0 %vm23_vm0, %v16_v4 }
  0x38   :  { %1383 = vmatmul.mubr.msk.f32.gmra.mxu0 %vm23_vm0, %v17_v6 }
  0x39   :  { %1385 = vmatprep.mubr.msk.f32.mxu0 %vm23_vm0, %v18_v7 }
  0x3c   :  { %1386 = vmatmul.mubr.msk.f32.gmra.mxu0 %vm23_vm0, %v19_v8 }
  0x3d   :  { %1388 = vmatprep.mubr.msk.f32.mxu0 %vm23_vm0, %v20_v9 }
  0x40   :  { %1389 = vmatmul.mubr.msk.f32.gmra.mxu0 %vm23_vm0, %v21_v10 }
  0xc4   :  { %v1297_v13 = vpop.f32.mrf.mxu0 }
  0xc6   :  { %v114_v14 = vpop.f32.mrf.mxu0 }
  0xc7   :  { %1309 = vmatprep.mubr.msk.f32.mxu1 %vm23_vm0, %v114_v14 }
  0xc8   :  { %v1300_v15 = vpop.f32.mrf.mxu0  ;;  %1310 = vmatmul.mubr.msk.f32.vlgmr.msra.gmra.mxu1 %vm23_vm0, %v1297_v13 }
  0xc9   :  { %1336 = vmatpush3.msra.mxu1 %v153_v12 }
  0xca   :  { %v124_v16 = vpop.f32.mrf.mxu0  ;;  %1363 = vmatprep.subr.mxu1 %v153_v12 }
  0xcb   :  { %1312 = vmatprep.mubr.msk.f32.mxu1 %vm23_vm0, %v124_v16 }
  0xcc   :  { %v1303_v17 = vpop.f32.mrf.mxu0  ;;  %1313 = vmatmul.mubr.msk.f32.gmra.mxu1 %vm23_vm0, %v1300_v15 }
  0xce   :  { %v134_v18 = vpop.f32.mrf.mxu0 }
  0xcf   :  { %1315 = vmatprep.mubr.msk.f32.mxu1 %vm23_vm0, %v134_v18 }
  0xd0   :  { %v1306_v19 = vpop.f32.mrf.mxu0  ;;  %1316 = vmatmul.mubr.msk.f32.gmra.mxu1 %vm23_vm0, %v1303_v17 }
  0xd2   :  { %v144_v20 = vpop.f32.mrf.mxu0 }
  0xd3   :  { %1318 = vmatprep.mubr.msk.f32.mxu1 %vm23_vm0, %v144_v20 }
  0xd4   :  { %1319 = vmatmul.mubr.msk.f32.gmra.mxu1 %vm23_vm0, %v1306_v19  ;;  %v1325_v21 = vpop.f32.mrf.mxu0 }
  0xd6   :  { %v392_v22 = vpop.f32.mrf.mxu0 }
  0xd7   :  { %1337 = vmatprep.mubr.msk.f32.mxu1 %vm23_vm0, %v392_v22 }
  0xd8   :  { %v1328_v23 = vpop.f32.mrf.mxu0  ;;  %1338 = vmatmul.mubr.msk.f32.vlgmr.msra.gmra.mxu1 %vm23_vm0, %v1325_v21 }
  0xd9   :  { %1364 = vmatpush3.msra.mxu1 %v153_v12 }
  0xda   :  { %v402_v24 = vpop.f32.mrf.mxu0  ;;  %1391 = vmatprep.subr.mxu1 %v153_v12 }
  0xdb   :  { %1340 = vmatprep.mubr.msk.f32.mxu1 %vm23_vm0, %v402_v24 }
  0xdc   :  { %v1331_v25 = vpop.f32.mrf.mxu0  ;;  %1341 = vmatmul.mubr.msk.f32.gmra.mxu1 %vm23_vm0, %v1328_v23 }
  0xde   :  { %v412_v26 = vpop.f32.mrf.mxu0 }
  0xdf   :  { %1343 = vmatprep.mubr.msk.f32.mxu1 %vm23_vm0, %v412_v26 }
  0xe0   :  { %v1334_v27 = vpop.f32.mrf.mxu0  ;;  %1344 = vmatmul.mubr.msk.f32.gmra.mxu1 %vm23_vm0, %v1331_v25 }
  0xe2   :  { %v422_v28 = vpop.f32.mrf.mxu0 }
  0xe3   :  { %1346 = vmatprep.mubr.msk.f32.mxu1 %vm23_vm0, %v422_v28 }
  0xe4   :  { %1347 = vmatmul.mubr.msk.f32.gmra.mxu1 %vm23_vm0, %v1334_v27  ;;  %v1353_v29 = vpop.f32.mrf.mxu0 }
  0xe6   :  { %v670_v30 = vpop.f32.mrf.mxu0 }
  0xe7   :  { %1365 = vmatprep.mubr.msk.f32.mxu1 %vm23_vm0, %v670_v30 }
  0xe8   :  { %v1356_v31 = vpop.f32.mrf.mxu0  ;;  %1366 = vmatmul.mubr.msk.f32.vlgmr.msra.gmra.mxu1 %vm23_vm0, %v1353_v29 }
  0xe9   :  { %1392 = vmatpush3.msra.mxu1 %v153_v12 }
  0xea   :  { %v680_v32 = vpop.f32.mrf.mxu0 }
  0xeb   :  { %1368 = vmatprep.mubr.msk.f32.mxu1 %vm23_vm0, %v680_v32 }
  0xec   :  { %v1359_v33 = vpop.f32.mrf.mxu0  ;;  %1369 = vmatmul.mubr.msk.f32.gmra.mxu1 %vm23_vm0, %v1356_v31 }
  0xee   :  { %v690_v34 = vpop.f32.mrf.mxu0 }
  0xef   :  { %1371 = vmatprep.mubr.msk.f32.mxu1 %vm23_vm0, %v690_v34 }
  0xf0   :  { %v1362_v35 = vpop.f32.mrf.mxu0  ;;  %1372 = vmatmul.mubr.msk.f32.gmra.mxu1 %vm23_vm0, %v1359_v33 }
  0xf2   :  { %v700_v36 = vpop.f32.mrf.mxu0 }
  0xf3   :  { %1374 = vmatprep.mubr.msk.f32.mxu1 %vm23_vm0, %v700_v36 }
  0xf4   :  { %1375 = vmatmul.mubr.msk.f32.gmra.mxu1 %vm23_vm0, %v1362_v35  ;;  %v1381_v37 = vpop.f32.mrf.mxu0 }
  0xf6   :  { %v948_v38 = vpop.f32.mrf.mxu0 }
  0xf7   :  { %1393 = vmatprep.mubr.msk.f32.mxu1 %vm23_vm0, %v948_v38 }
  0xf8   :  { %v1384_v39 = vpop.f32.mrf.mxu0  ;;  %1394 = vmatmul.mubr.msk.f32.vlgmr.msra.gmra.mxu1 %vm23_vm0, %v1381_v37 }
  0xfa   :  { %v958_v40 = vpop.f32.mrf.mxu0 }
  0xfb   :  { %1396 = vmatprep.mubr.msk.f32.mxu1 %vm23_vm0, %v958_v40 }
  0xfc   :  { %v1387_v41 = vpop.f32.mrf.mxu0  ;;  %1397 = vmatmul.mubr.msk.f32.gmra.mxu1 %vm23_vm0, %v1384_v39 }
  0xfe   :  { %v968_v42 = vpop.f32.mrf.mxu0 }
  0xff   :  { %1399 = vmatprep.mubr.msk.f32.mxu1 %vm23_vm0, %v968_v42 }
 0x100   :  { %v1390_v43 = vpop.f32.mrf.mxu0  ;;  %1400 = vmatmul.mubr.msk.f32.gmra.mxu1 %vm23_vm0, %v1387_v41 }
 0x102   :  { %v978_v44 = vpop.f32.mrf.mxu0 }
 0x103   :  { %1402 = vmatprep.mubr.msk.f32.mxu1 %vm23_vm0, %v978_v44 }
 0x104   :  { %1403 = vmatmul.mubr.msk.f32.gmra.mxu1 %vm23_vm0, %v1390_v43 }
 0x188   :  { %v1311_v45 = vpop.f32.mrf.mxu1 }
 0x189   :  { %285 = vst.msk [vmem:[%s1659_s3 + $0x8] sm:$0xff] %vm283_vm1, %v1311_v45 }
 0x18a   :  { %v244_v46 = vpop.f32.mrf.mxu1 }
 0x18b   :  { %284 = vst.msk [vmem:[%s1659_s3] sm:$0xff] %vm283_vm1, %v244_v46 }
 0x18c   :  { %v1314_v47 = vpop.f32.mrf.mxu1 }
 0x18d   :  { %287 = vst.msk [vmem:[%s1659_s3 + $0x18] sm:$0xff] %vm283_vm1, %v1314_v47 }
 0x18e   :  { %v254_v48 = vpop.f32.mrf.mxu1 }
 0x18f   :  { %286 = vst.msk [vmem:[%s1659_s3 + $0x10] sm:$0xff] %vm283_vm1, %v254_v48 }
 0x190   :  { %v1317_v49 = vpop.f32.mrf.mxu1 }
 0x191   :  { %289 = vst.msk [vmem:[%s1659_s3 + $0x28] sm:$0xff] %vm283_vm1, %v1317_v49 }
 0x192   :  { %v264_v50 = vpop.f32.mrf.mxu1 }
 0x193   :  { %288 = vst.msk [vmem:[%s1659_s3 + $0x20] sm:$0xff] %vm283_vm1, %v264_v50 }
 0x194   :  { %v1320_v51 = vpop.f32.mrf.mxu1 }
 0x195   :  { %291 = vst.msk [vmem:[%s1659_s3 + $0x38] sm:$0xff] %vm283_vm1, %v1320_v51 }
 0x196   :  { %v274_v52 = vpop.f32.mrf.mxu1 }
 0x197   :  { %290 = vst.msk [vmem:[%s1659_s3 + $0x30] sm:$0xff] %vm283_vm1, %v274_v52 }
 0x198   :  { %v1339_v53 = vpop.f32.mrf.mxu1 }
 0x199   :  { %1164 = vst.msk [vmem:[%s1659_s3 + $0x48] sm:$0xff] %vm283_vm1, %v1339_v53 }
 0x19a   :  { %v522_v54 = vpop.f32.mrf.mxu1 }
 0x19b   :  { %1163 = vst.msk [vmem:[%s1659_s3 + $0x40] sm:$0xff] %vm283_vm1, %v522_v54 }
 0x19c   :  { %v1342_v55 = vpop.f32.mrf.mxu1 }
 0x19d   :  { %1166 = vst.msk [vmem:[%s1659_s3 + $0x58] sm:$0xff] %vm283_vm1, %v1342_v55 }
 0x19e   :  { %v532_v56 = vpop.f32.mrf.mxu1 }
 0x19f   :  { %1165 = vst.msk [vmem:[%s1659_s3 + $0x50] sm:$0xff] %vm283_vm1, %v532_v56 }
 0x1a0   :  { %v1345_v57 = vpop.f32.mrf.mxu1 }
 0x1a1   :  { %1168 = vst.msk [vmem:[%s1659_s3 + $0x68] sm:$0xff] %vm283_vm1, %v1345_v57 }
 0x1a2   :  { %v542_v58 = vpop.f32.mrf.mxu1 }
 0x1a3   :  { %1167 = vst.msk [vmem:[%s1659_s3 + $0x60] sm:$0xff] %vm283_vm1, %v542_v58 }
 0x1a4   :  { %v1348_v59 = vpop.f32.mrf.mxu1 }
 0x1a5   :  { %1170 = vst.msk [vmem:[%s1659_s3 + $0x78] sm:$0xff] %vm283_vm1, %v1348_v59 }
 0x1a6   :  { %v552_v60 = vpop.f32.mrf.mxu1 }
 0x1a7   :  { %1169 = vst.msk [vmem:[%s1659_s3 + $0x70] sm:$0xff] %vm283_vm1, %v552_v60 }
 0x1a8   :  { %v1367_v61 = vpop.f32.mrf.mxu1 }
 0x1a9   :  { %1189 = vst.msk [vmem:[%s1659_s3 + $0x88] sm:$0xff] %vm283_vm1, %v1367_v61 }
 0x1aa   :  { %v800_v62 = vpop.f32.mrf.mxu1 }
 0x1ab   :  { %1188 = vst.msk [vmem:[%s1659_s3 + $0x80] sm:$0xff] %vm283_vm1, %v800_v62 }
 0x1ac   :  { %v1370_v63 = vpop.f32.mrf.mxu1 }
 0x1ad   :  { %1191 = vst.msk [vmem:[%s1659_s3 + $0x98] sm:$0xff] %vm283_vm1, %v1370_v63 }
 0x1ae   :  { %v810_v0 = vpop.f32.mrf.mxu1 }
 0x1af   :  { %1190 = vst.msk [vmem:[%s1659_s3 + $0x90] sm:$0xff] %vm283_vm1, %v810_v0 }
 0x1b0   :  { %v1373_v1 = vpop.f32.mrf.mxu1 }
 0x1b1   :  { %1193 = vst.msk [vmem:[%s1659_s3 + $0xa8] sm:$0xff] %vm283_vm1, %v1373_v1 }
 0x1b2   :  { %v820_v2 = vpop.f32.mrf.mxu1 }
 0x1b3   :  { %1192 = vst.msk [vmem:[%s1659_s3 + $0xa0] sm:$0xff] %vm283_vm1, %v820_v2 }
 0x1b4   :  { %v1376_v3 = vpop.f32.mrf.mxu1 }
 0x1b5   :  { %1195 = vst.msk [vmem:[%s1659_s3 + $0xb8] sm:$0xff] %vm283_vm1, %v1376_v3 }
 0x1b6   :  { %v830_v4 = vpop.f32.mrf.mxu1 }
 0x1b7   :  { %1194 = vst.msk [vmem:[%s1659_s3 + $0xb0] sm:$0xff] %vm283_vm1, %v830_v4 }
 0x1b8   :  { %v1395_v5 = vpop.f32.mrf.mxu1 }
 0x1b9   :  { %1214 = vst.msk [vmem:[%s1659_s3 + $0xc8] sm:$0xff] %vm283_vm1, %v1395_v5 }
 0x1ba   :  { %v1078_v6 = vpop.f32.mrf.mxu1 }
 0x1bb   :  { %1213 = vst.msk [vmem:[%s1659_s3 + $0xc0] sm:$0xff] %vm283_vm1, %v1078_v6 }
 0x1bc   :  { %v1398_v7 = vpop.f32.mrf.mxu1 }
 0x1bd   :  { %1216 = vst.msk [vmem:[%s1659_s3 + $0xd8] sm:$0xff] %vm283_vm1, %v1398_v7 }
 0x1be   :  { %v1088_v8 = vpop.f32.mrf.mxu1 }
 0x1bf   :  { %1215 = vst.msk [vmem:[%s1659_s3 + $0xd0] sm:$0xff] %vm283_vm1, %v1088_v8 }
 0x1c0   :  { %v1401_v9 = vpop.f32.mrf.mxu1 }
 0x1c1   :  { %1218 = vst.msk [vmem:[%s1659_s3 + $0xe8] sm:$0xff] %vm283_vm1, %v1401_v9 }
 0x1c2   :  { %v1098_v10 = vpop.f32.mrf.mxu1 }
 0x1c3   :  { %1217 = vst.msk [vmem:[%s1659_s3 + $0xe0] sm:$0xff] %vm283_vm1, %v1098_v10 }
 0x1c4   :  { %v1404_v11 = vpop.f32.mrf.mxu1 }
 0x1c5   :  { %1220 = vst.msk [vmem:[%s1659_s3 + $0xf8] sm:$0xff] %vm283_vm1, %v1404_v11 }
 0x1c6   :  { %v1108_v12 = vpop.f32.mrf.mxu1 }
 0x1c7   :  { %1219 = vst.msk [vmem:[%s1659_s3 + $0xf0] sm:$0xff] %vm283_vm1, %v1108_v12 }

// kernel: prop_head_forward.36
= control target key start
LH: loop header
LB: loop body
LE: loop exit
PB: predicated region body
PF: predicated region fallthrough
CT: control target
= control target key end

     0   :  { %v947_v0 = vmov 0.0   ;;  %vm948_vm0 = vmmov 0   ;;  %vm23_vm1 = vcmask 523264   ;;  %vm179_vm2 = vcmask 60416   ;;  %s1240_s0 = inlined_call_operand.vmem [shape: f32[4,64,64], index: 0, kind: input, shape index: {}]   ;;  %s1241_s2 = inlined_call_operand.vmem [shape: f32[64,8], index: 2, kind: input, shape index: {}]   ;;  %s1242_s1 = inlined_call_operand.vmem [shape: f32[8,64], index: 1, kind: input, shape index: {}]   ;;  %s1243_s3 = inlined_call_operand.vmem [shape: bf16[4,8,8], index: 3, kind: output, shape index: {}]  }
   0x1   :  { %793 = vmatprep.subr.mxu0 %v947_v0  ;;  %v22_v1 = vld [vmem:[%s1240_s0 + $0x38] sm:$0xff]  ;;  %v21_v2 = vld [vmem:[%s1240_s0 + $0x30] sm:$0xff]  ;;  %809 = vmatprep.mubr.msk.f32.mxu0 %vm948_vm0, %v947_v0  ;;  %v20_v3 = vld [vmem:[%s1240_s0 + $0x28] sm:$0xff] }
   0x2   :  { %794 = vmatpush3.msra.mxu0 %v22_v1  ;;  %812 = vmatprep.subr.mxu1 %v947_v0  ;;  %v19_v4 = vld [vmem:[%s1240_s0 + $0x20] sm:$0xff]  ;;  %v18_v5 = vld [vmem:[%s1240_s0 + $0x18] sm:$0xff]  ;;  %v17_v6 = vld [vmem:[%s1240_s0 + $0x10] sm:$0xff] }
   0x3   :  { %795 = vmatprep.subr.mxu0 %v947_v0  ;;  %828 = vmatprep.mubr.msk.f32.mxu1 %vm948_vm0, %v947_v0  ;;  %v16_v7 = vld [vmem:[%s1240_s0 + $0x8] sm:$0xff]  ;;  %v1004_v8 = vld [vmem:[%s1241_s2 + $0x38] sm:$0xff]  ;;  %v1009_v9 = vld [vmem:[%s1241_s2 + $0x30] sm:$0xff] }
   0x4   :  { %796 = vmatpush3.msra.mxu0 %v21_v2  ;;  %v15_v10 = vld [vmem:[%s1240_s0] sm:$0xff]  ;;  %813 = vmatpush3.msra.mxu1 %v1004_v8  ;;  %v695_v12 = vld [vmem:[%s1240_s0 + $0x78] sm:$0xff]  ;;  %v1031_v13 = vld [vmem:[%s1241_s2 + $0x28] sm:$0xff] }
   0x5   :  { %797 = vmatprep.subr.mxu0 %v947_v0  ;;  %v1019_v11 = vld [vmem:[%s1242_s1] sm:$0xff]  ;;  %814 = vmatprep.subr.mxu1 %v947_v0  ;;  %v694_v14 = vld [vmem:[%s1240_s0 + $0x70] sm:$0xff]  ;;  %v693_v16 = vld [vmem:[%s1240_s0 + $0x68] sm:$0xff] }
   0x6   :  { %798 = vmatpush3.msra.mxu0 %v20_v3  ;;  %815 = vmatpush3.msra.mxu1 %v1009_v9  ;;  %v1044_v15 = vld [vmem:[%s1241_s2 + $0x20] sm:$0xff]  ;;  %v1055_v17 = vld [vmem:[%s1241_s2 + $0x18] sm:$0xff]  ;;  %v1066_v19 = vld [vmem:[%s1241_s2 + $0x10] sm:$0xff] }
   0x7   :  { %799 = vmatprep.subr.mxu0 %v947_v0  ;;  %816 = vmatprep.subr.mxu1 %v947_v0  ;;  %v692_v18 = vld [vmem:[%s1240_s0 + $0x60] sm:$0xff]  ;;  %v691_v20 = vld [vmem:[%s1240_s0 + $0x58] sm:$0xff]  ;;  %v1077_v21 = vld [vmem:[%s1241_s2 + $0x8] sm:$0xff] }
   0x8   :  { %800 = vmatpush3.msra.mxu0 %v19_v4  ;;  %817 = vmatpush3.msra.mxu1 %v1031_v13  ;;  %v690_v22 = vld [vmem:[%s1240_s0 + $0x50] sm:$0xff]  ;;  %v689_v23 = vld [vmem:[%s1240_s0 + $0x48] sm:$0xff]  ;;  %v688_v24 = vld [vmem:[%s1240_s0 + $0x40] sm:$0xff] }
   0x9   :  { %801 = vmatprep.subr.mxu0 %v947_v0  ;;  %818 = vmatprep.subr.mxu1 %v947_v0  ;;  %v706_v25 = vld [vmem:[%s1240_s0 + $0xb8] sm:$0xff]  ;;  %v705_v26 = vld [vmem:[%s1240_s0 + $0xb0] sm:$0xff]  ;;  %v704_v27 = vld [vmem:[%s1240_s0 + $0xa8] sm:$0xff] }
   0xa   :  { %802 = vmatpush3.msra.mxu0 %v18_v5  ;;  %819 = vmatpush3.msra.mxu1 %v1044_v15  ;;  %v703_v28 = vld [vmem:[%s1240_s0 + $0xa0] sm:$0xff]  ;;  %v702_v29 = vld [vmem:[%s1240_s0 + $0x98] sm:$0xff]  ;;  %v701_v30 = vld [vmem:[%s1240_s0 + $0x90] sm:$0xff] }
   0xb   :  { %803 = vmatprep.subr.mxu0 %v947_v0  ;;  %820 = vmatprep.subr.mxu1 %v947_v0  ;;  %v700_v31 = vld [vmem:[%s1240_s0 + $0x88] sm:$0xff]  ;;  %v699_v32 = vld [vmem:[%s1240_s0 + $0x80] sm:$0xff]  ;;  %v717_v33 = vld [vmem:[%s1240_s0 + $0xf8] sm:$0xff] }
   0xc   :  { %804 = vmatpush3.msra.mxu0 %v17_v6  ;;  %821 = vmatpush3.msra.mxu1 %v1055_v17  ;;  %v716_v34 = vld [vmem:[%s1240_s0 + $0xf0] sm:$0xff]  ;;  %v715_v35 = vld [vmem:[%s1240_s0 + $0xe8] sm:$0xff]  ;;  %v714_v36 = vld [vmem:[%s1240_s0 + $0xe0] sm:$0xff] }
   0xd   :  { %805 = vmatprep.subr.mxu0 %v947_v0  ;;  %822 = vmatprep.subr.mxu1 %v947_v0  ;;  %v713_v37 = vld [vmem:[%s1240_s0 + $0xd8] sm:$0xff]  ;;  %v712_v38 = vld [vmem:[%s1240_s0 + $0xd0] sm:$0xff]  ;;  %v711_v39 = vld [vmem:[%s1240_s0 + $0xc8] sm:$0xff] }
   0xe   :  { %806 = vmatpush3.msra.mxu0 %v16_v7  ;;  %823 = vmatpush3.msra.mxu1 %v1066_v19  ;;  %v710_v40 = vld [vmem:[%s1240_s0 + $0xc0] sm:$0xff] }
   0xf   :  { %807 = vmatprep.subr.mxu0 %v947_v0  ;;  %824 = vmatprep.subr.mxu1 %v947_v0  ;;  %v97_v41 = vld [vmem:[%s1241_s2] sm:$0xff] }
  0x10   :  { %808 = vmatpush3.msra.mxu0 %v15_v10  ;;  %825 = vmatpush3.msra.mxu1 %v1077_v21 }
  0x11   :  { %810 = vmatmul.mubr.msk.f32.vlgmr.msra.gmra.mxu0 %vm23_vm1, %v1019_v11  ;;  %831 = vmatprep.subr.mxu0 %v947_v0 }
  0x12   :  { %832 = vmatpush3.msra.mxu0 %v695_v12  ;;  %847 = vmatprep.mubr.msk.f32.mxu0 %vm948_vm0, %v947_v0 }
  0x13   :  { %833 = vmatprep.subr.mxu0 %v947_v0  ;;  %826 = vmatprep.subr.mxu1 %v947_v0 }
  0x14   :  { %834 = vmatpush3.msra.mxu0 %v694_v14  ;;  %827 = vmatpush3.msra.mxu1 %v97_v41 }
  0x15   :  { %835 = vmatprep.subr.mxu0 %v947_v0  ;;  %850 = vmatprep.subr.mxu1 %v947_v0 }
  0x16   :  { %836 = vmatpush3.msra.mxu0 %v693_v16 }
  0x17   :  { %837 = vmatprep.subr.mxu0 %v947_v0 }
  0x18   :  { %838 = vmatpush3.msra.mxu0 %v692_v18 }
  0x19   :  { %839 = vmatprep.subr.mxu0 %v947_v0 }
  0x1a   :  { %840 = vmatpush3.msra.mxu0 %v691_v20 }
  0x1b   :  { %841 = vmatprep.subr.mxu0 %v947_v0 }
  0x1c   :  { %842 = vmatpush3.msra.mxu0 %v690_v22 }
  0x1d   :  { %843 = vmatprep.subr.mxu0 %v947_v0 }
  0x1e   :  { %844 = vmatpush3.msra.mxu0 %v689_v23 }
  0x1f   :  { %845 = vmatprep.subr.mxu0 %v947_v0 }
  0x20   :  { %846 = vmatpush3.msra.mxu0 %v688_v24 }
  0x21   :  { %848 = vmatmul.mubr.msk.f32.vlgmr.msra.gmra.mxu0 %vm23_vm1, %v1019_v11  ;;  %869 = vmatprep.subr.mxu0 %v947_v0 }
  0x22   :  { %870 = vmatpush3.msra.mxu0 %v706_v25  ;;  %885 = vmatprep.mubr.msk.f32.mxu0 %vm948_vm0, %v947_v0 }
  0x23   :  { %871 = vmatprep.subr.mxu0 %v947_v0 }
  0x24   :  { %872 = vmatpush3.msra.mxu0 %v705_v26 }
  0x25   :  { %873 = vmatprep.subr.mxu0 %v947_v0 }
  0x26   :  { %874 = vmatpush3.msra.mxu0 %v704_v27 }
  0x27   :  { %875 = vmatprep.subr.mxu0 %v947_v0 }
  0x28   :  { %876 = vmatpush3.msra.mxu0 %v703_v28 }
  0x29   :  { %877 = vmatprep.subr.mxu0 %v947_v0 }
  0x2a   :  { %878 = vmatpush3.msra.mxu0 %v702_v29 }
  0x2b   :  { %879 = vmatprep.subr.mxu0 %v947_v0 }
  0x2c   :  { %880 = vmatpush3.msra.mxu0 %v701_v30 }
  0x2d   :  { %881 = vmatprep.subr.mxu0 %v947_v0 }
  0x2e   :  { %882 = vmatpush3.msra.mxu0 %v700_v31 }
  0x2f   :  { %883 = vmatprep.subr.mxu0 %v947_v0 }
  0x30   :  { %884 = vmatpush3.msra.mxu0 %v699_v32 }
  0x31   :  { %886 = vmatmul.mubr.msk.f32.vlgmr.msra.gmra.mxu0 %vm23_vm1, %v1019_v11  ;;  %907 = vmatprep.subr.mxu0 %v947_v0 }
  0x32   :  { %908 = vmatpush3.msra.mxu0 %v717_v33  ;;  %923 = vmatprep.mubr.msk.f32.mxu0 %vm948_vm0, %v947_v0 }
  0x33   :  { %909 = vmatprep.subr.mxu0 %v947_v0 }
  0x34   :  { %910 = vmatpush3.msra.mxu0 %v716_v34 }
  0x35   :  { %911 = vmatprep.subr.mxu0 %v947_v0 }
  0x36   :  { %912 = vmatpush3.msra.mxu0 %v715_v35 }
  0x37   :  { %913 = vmatprep.subr.mxu0 %v947_v0 }
  0x38   :  { %914 = vmatpush3.msra.mxu0 %v714_v36 }
  0x39   :  { %915 = vmatprep.subr.mxu0 %v947_v0 }
  0x3a   :  { %916 = vmatpush3.msra.mxu0 %v713_v37 }
  0x3b   :  { %917 = vmatprep.subr.mxu0 %v947_v0 }
  0x3c   :  { %918 = vmatpush3.msra.mxu0 %v712_v38 }
  0x3d   :  { %919 = vmatprep.subr.mxu0 %v947_v0 }
  0x3e   :  { %920 = vmatpush3.msra.mxu0 %v711_v39 }
  0x3f   :  { %921 = vmatprep.subr.mxu0 %v947_v0 }
  0x40   :  { %922 = vmatpush3.msra.mxu0 %v710_v40 }
  0x41   :  { %924 = vmatmul.mubr.msk.f32.vlgmr.msra.gmra.mxu0 %vm23_vm1, %v1019_v11 }
  0xd1   :  { %v93_v42 = vpop.f32.mrf.mxu0 }
  0xd2   :  { %829 = vmatmul.mubr.msk.f32.vlgmr.msra.gmra.mxu1 %vm23_vm1, %v93_v42 }
  0xd3   :  { %v811_v43 = vpop.f32.mrf.mxu0  ;;  %851 = vmatpush3.msra.mxu1 %v1004_v8  ;;  %866 = vmatprep.mubr.msk.f32.mxu1 %vm948_vm0, %v947_v0 }
  0xd4   :  { %852 = vmatprep.subr.mxu1 %v947_v0 }
  0xd5   :  { %853 = vmatpush3.msra.mxu1 %v1009_v9 }
  0xd6   :  { %854 = vmatprep.subr.mxu1 %v947_v0 }
  0xd7   :  { %855 = vmatpush3.msra.mxu1 %v1031_v13 }
  0xd8   :  { %856 = vmatprep.subr.mxu1 %v947_v0 }
  0xd9   :  { %857 = vmatpush3.msra.mxu1 %v1044_v15 }
  0xda   :  { %858 = vmatprep.subr.mxu1 %v947_v0 }
  0xdb   :  { %859 = vmatpush3.msra.mxu1 %v1055_v17 }
  0xdc   :  { %860 = vmatprep.subr.mxu1 %v947_v0 }
  0xdd   :  { %861 = vmatpush3.msra.mxu1 %v1066_v19 }
  0xde   :  { %862 = vmatprep.subr.mxu1 %v947_v0 }
  0xdf   :  { %863 = vmatpush3.msra.mxu1 %v1077_v21 }
  0xe0   :  { %864 = vmatprep.subr.mxu1 %v947_v0 }
  0xe1   :  { %v260_v44 = vpop.f32.mrf.mxu0  ;;  %865 = vmatpush3.msra.mxu1 %v97_v41 }
  0xe2   :  { %867 = vmatmul.mubr.msk.f32.vlgmr.msra.gmra.mxu1 %vm23_vm1, %v260_v44  ;;  %888 = vmatprep.subr.mxu1 %v947_v0 }
  0xe3   :  { %v849_v45 = vpop.f32.mrf.mxu0  ;;  %889 = vmatpush3.msra.mxu1 %v1004_v8  ;;  %904 = vmatprep.mubr.msk.f32.mxu1 %vm948_vm0, %v947_v0 }
  0xe4   :  { %890 = vmatprep.subr.mxu1 %v947_v0 }
  0xe5   :  { %891 = vmatpush3.msra.mxu1 %v1009_v9 }
  0xe6   :  { %892 = vmatprep.subr.mxu1 %v947_v0 }
  0xe7   :  { %893 = vmatpush3.msra.mxu1 %v1031_v13 }
  0xe8   :  { %894 = vmatprep.subr.mxu1 %v947_v0 }
  0xe9   :  { %895 = vmatpush3.msra.mxu1 %v1044_v15 }
  0xea   :  { %896 = vmatprep.subr.mxu1 %v947_v0 }
  0xeb   :  { %897 = vmatpush3.msra.mxu1 %v1055_v17 }
  0xec   :  { %898 = vmatprep.subr.mxu1 %v947_v0 }
  0xed   :  { %899 = vmatpush3.msra.mxu1 %v1066_v19 }
  0xee   :  { %900 = vmatprep.subr.mxu1 %v947_v0 }
  0xef   :  { %901 = vmatpush3.msra.mxu1 %v1077_v21 }
  0xf0   :  { %902 = vmatprep.subr.mxu1 %v947_v0 }
  0xf1   :  { %v427_v46 = vpop.f32.mrf.mxu0  ;;  %903 = vmatpush3.msra.mxu1 %v97_v41 }
  0xf2   :  { %905 = vmatmul.mubr.msk.f32.vlgmr.msra.gmra.mxu1 %vm23_vm1, %v427_v46  ;;  %926 = vmatprep.subr.mxu1 %v947_v0 }
  0xf3   :  { %v887_v47 = vpop.f32.mrf.mxu0  ;;  %927 = vmatpush3.msra.mxu1 %v1004_v8  ;;  %942 = vmatprep.mubr.msk.f32.mxu1 %vm948_vm0, %v947_v0 }
  0xf4   :  { %928 = vmatprep.subr.mxu1 %v947_v0 }
  0xf5   :  { %929 = vmatpush3.msra.mxu1 %v1009_v9 }
  0xf6   :  { %930 = vmatprep.subr.mxu1 %v947_v0 }
  0xf7   :  { %931 = vmatpush3.msra.mxu1 %v1031_v13 }
  0xf8   :  { %932 = vmatprep.subr.mxu1 %v947_v0 }
  0xf9   :  { %933 = vmatpush3.msra.mxu1 %v1044_v15 }
  0xfa   :  { %934 = vmatprep.subr.mxu1 %v947_v0 }
  0xfb   :  { %935 = vmatpush3.msra.mxu1 %v1055_v17 }
  0xfc   :  { %936 = vmatprep.subr.mxu1 %v947_v0 }
  0xfd   :  { %937 = vmatpush3.msra.mxu1 %v1066_v19 }
  0xfe   :  { %938 = vmatprep.subr.mxu1 %v947_v0 }
  0xff   :  { %939 = vmatpush3.msra.mxu1 %v1077_v21 }
 0x100   :  { %940 = vmatprep.subr.mxu1 %v947_v0 }
 0x101   :  { %v594_v48 = vpop.f32.mrf.mxu0  ;;  %941 = vmatpush3.msra.mxu1 %v97_v41 }
 0x102   :  { %943 = vmatmul.mubr.msk.f32.vlgmr.msra.gmra.mxu1 %vm23_vm1, %v594_v48 }
 0x103   :  { %v925_v49 = vpop.f32.mrf.mxu0 }
 0x192   :  { %v174_v50 = vpop.f32.mrf.mxu1 }
 0x193   :  { %v178_v51 = vpack.c.bf16 %v174_v50, %v174_v50 }
 0x194   :  { %v830_v52 = vpop.f32.mrf.mxu1 }
 0x195   :  { %180 = vst.msk [vmem:[%s1243_s3] sm:$0xf] %vm179_vm2, %v178_v51 }
 0x1a2   :  { %v341_v53 = vpop.f32.mrf.mxu1 }
 0x1a3   :  { %v345_v54 = vpack.c.bf16 %v341_v53, %v341_v53 }
 0x1a4   :  { %v868_v55 = vpop.f32.mrf.mxu1 }
 0x1a5   :  { %698 = vst.msk [vmem:[%s1243_s3 + $0x4] sm:$0xf] %vm179_vm2, %v345_v54 }
 0x1b2   :  { %v508_v56 = vpop.f32.mrf.mxu1 }
 0x1b3   :  { %v512_v57 = vpack.c.bf16 %v508_v56, %v508_v56 }
 0x1b4   :  { %v906_v58 = vpop.f32.mrf.mxu1 }
 0x1b5   :  { %709 = vst.msk [vmem:[%s1243_s3 + $0x8] sm:$0xf] %vm179_vm2, %v512_v57 }
 0x1c2   :  { %v675_v59 = vpop.f32.mrf.mxu1 }
 0x1c3   :  { %v679_v60 = vpack.c.bf16 %v675_v59, %v675_v59 }
 0x1c4   :  { %v944_v61 = vpop.f32.mrf.mxu1 }
 0x1c5   :  { %720 = vst.msk [vmem:[%s1243_s3 + $0xc] sm:$0xf] %vm179_vm2, %v679_v60 }

// kernel: prop_head_forward.37
= control target key start
LH: loop header
LB: loop body
LE: loop exit
PB: predicated region body
PF: predicated region fallthrough
CT: control target
= control target key end

     0   :  { %s529_s15 = smov 0   ;;  %s531_s16 = smov 0   ;;  %s575_s0 = inlined_call_operand.vmem [shape: bf16[4,72,64], index: 0, kind: input, shape index: {}]   ;;  %s576_s1 = inlined_call_operand.vmem [shape: bf16[8,72], index: 1, kind: input, shape index: {}]   ;;  %s577_s2 = inlined_call_operand.vmem [shape: f32[8,1], index: 2, kind: input, shape index: {}]   ;;  %s578_s3 = inlined_call_operand.vmem [shape: f32[8,1], index: 3, kind: input, shape index: {}]   ;;  %s579_s4 = inlined_call_operand.vmem [shape: bf16[4,8,64], index: 4, kind: output, shape index: {}]  }
   0x1   :  { %s533_s17 = smov 0  }
   0x2 LB: > { %s26_s18 = sadd.s32 1, %s495_s16  ;;  %p412_p0 = scmp.ge.s32.totalorder %s499_s17, 1  ;;  %s499_s17 = sphi %s533_s17, %s14_s17   ;;  %s495_s16 = sphi %s531_s16, %s581_s16   ;;  %s491_s15 = sphi %s529_s15, %s580_s15  }
   0x3   : > { %p28_p1 = scmp.ge.s32.totalorder %s26_s18, 4  ;;  %p181_p2 = scmp.lt.s32.totalorder %s499_s17, 5 }
   0x5   : > { %s583_s18 = smov (%p28_p1, %s26_s18), 0  ;;  %p182_p3 = pnand %p412_p0, %p181_p2 }
   0x6   : > { %p212_p4 = scmp.lt.s32.totalorder (!%p182_p3), %s491_s15, 3 }
   0x7   : > { %185 = sbr.rel (%p182_p3) target bundleno = 239 (0xef), region = 36 }
   0xc   : > { %v501_v0 = vmov 0.0   ;;  %vm502_vm0 = vmmov 0   ;;  %v313_v1 = vld [vmem:[%s577_s2] sm:$0xff]  ;;  %s585_s15 = smov (!%p212_p4, %s491_s15), 3  ;;  %v503_v2 = vmov 0   ;;  %vm269_vm1 = vcmask 1043456  }
   0xd   : > { %429 = vmatprep.subr.bf16.mxu0 %v501_v0  ;;  %439 = vmatprep.mubr.msk.bf16.mxu0 %vm502_vm0, %v501_v0  ;;  %s443_s21 = smul.u32 36, %s585_s15  ;;  %v320_v3 = vld [vmem:[%s578_s3] sm:$0xff]  ;;  %vm265_vm2 = vcmask 588800   ;;  %s414_s29 = sshll.u32 %s585_s15, 2  ;;  %vm329_vm3 = vcmask 519168  }
   0xe   : > { %471 = vset.pattern.permute.xlu0 %v503_v2  ;;  %v228_v10 = vld [vmem:[%s576_s1] sm:$0xf]  ;;  %s226_s6 = scalar_lea.vmem %s579_s4, %s414_s29 }
   0xf   : > { %316 = vperm.xlu0 %471, %v313_v1   ;;  %s219_s26 = scalar_lea.vmem %s575_s0, %s443_s21 }
  0x10   : > { %v472_v4 = vld [vmem:[%s219_s26 + $0x20] ss:$0 sps:$4 sm:$0xff]   ;;  %v473_v6 = vld [vmem:[%s219_s26 + $0x18] sm:$0xff]   ;;  %v474_v7 = vld [vmem:[%s219_s26 + $0x10] sm:$0xff]  }
  0x11   : > { %v271_v5 = vsel %vm269_vm1, %v472_v4, 0  ;;  %v475_v8 = vld [vmem:[%s219_s26 + $0x8] sm:$0xff]   ;;  %v476_v9 = vld [vmem:[%s219_s26] sm:$0xff]  }
  0x12   : > { %430 = vmatpush3.bf16.msra.mxu0 %v271_v5 }
  0x13   : > { %323 = vperm.xlu0 %471, %v320_v3   ;;  %431 = vmatprep.subr.bf16.mxu0 %v501_v0 }
  0x16   : > { %432 = vmatpush3.bf16.msra.mxu0 %v473_v6 }
  0x17   : > { %433 = vmatprep.subr.bf16.mxu0 %v501_v0 }
  0x1a   : > { %434 = vmatpush3.bf16.msra.mxu0 %v474_v7 }
  0x1b   : > { %435 = vmatprep.subr.bf16.mxu0 %v501_v0 }
  0x1e   : > { %436 = vmatpush3.bf16.msra.mxu0 %v475_v8 }
  0x1f   : > { %437 = vmatprep.subr.bf16.mxu0 %v501_v0 }
  0x22   : > { %438 = vmatpush3.bf16.msra.mxu0 %v476_v9 }
  0x25   : > { %440 = vmatmul.mubr.msk.bf16.vlgmr.msra.gmra.mxu0 %vm265_vm2, %v228_v10 }
  0x8a   : > { %v317_v11 = vpop.permute.xlu0 %316 }
  0x8e   : > { %v324_v14 = vpop.permute.xlu0 %323 }
  0xe5   : > { %v307_v12 = vpop.f32.mrf.mxu0 }
  0xe6   : > { %v319_v13 = vmul.f32 %v317_v11, %v307_v12 }
  0xe7   : > { %v441_v15 = vpop.f32.mrf.mxu0 }
  0xe8   : > { %v326_v16 = vadd.f32 %v324_v14, %v319_v13 }
  0xe9   : > { %v310_v17 = vpop.f32.mrf.mxu0 }
  0xea   : > { %v327_v18 = vmax.f32 %v326_v16, 0.0 }
  0xeb   : > { %v442_v19 = vpop.f32.mrf.mxu0 }
  0xec   : > { %v328_v20 = vpack.c.bf16 %v327_v18, %v327_v18 }
  0xee   : > { %330 = vst.msk [vmem:[%s226_s6] sm:$0xf] %vm329_vm3, %v328_v20 }
  0xef PF: > { %s14_s17 = sadd.s32 1, %s499_s17   ;;  %s580_s15 = smov %s495_s16 }
  0xf0   : > { %p11_p5 = scmp.ge.s32.totalorder %s14_s17, 6   ;;  %s581_s16 = smov %s583_s18 }
  0xf2   :  { %13 = sbr.rel (!%p11_p5) target bundleno = 2 (0x2), region = 66 }

// kernel: prop_head_forward.41
= control target key start
LH: loop header
LB: loop body
LE: loop exit
PB: predicated region body
PF: predicated region fallthrough
CT: control target
= control target key end

     0   :  { %s575_s15 = smov 0   ;;  %s577_s16 = smov 0   ;;  %s644_s0 = inlined_call_operand.vmem [shape: bf16[4,8,64], index: 0, kind: input, shape index: {}]   ;;  %s645_s1 = inlined_call_operand.vmem [shape: bf16[32,8], index: 1, kind: input, shape index: {}]   ;;  %s646_s2 = inlined_call_operand.vmem [shape: f32[32,1], index: 2, kind: input, shape index: {}]   ;;  %s647_s3 = inlined_call_operand.vmem [shape: f32[32,1], index: 3, kind: input, shape index: {}]   ;;  %s648_s4 = inlined_call_operand.vmem [shape: bf16[4,32,64], index: 4, kind: output, shape index: {}]  }
   0x1   :  { %s579_s17 = smov 0  }
   0x2 LB: > { %s26_s18 = sadd.s32 1, %s543_s16  ;;  %p467_p0 = scmp.ge.s32.totalorder %s547_s17, 1  ;;  %s547_s17 = sphi %s579_s17, %s14_s17   ;;  %s543_s16 = sphi %s577_s16, %s650_s16   ;;  %s539_s15 = sphi %s575_s15, %s649_s15  }
   0x3   : > { %p28_p1 = scmp.ge.s32.totalorder %s26_s18, 4  ;;  %p180_p2 = scmp.lt.s32.totalorder %s547_s17, 5 }
   0x5   : > { %s652_s18 = smov (%p28_p1, %s26_s18), 0  ;;  %p181_p3 = pnand %p467_p0, %p180_p2 }
   0x6   : > { %p211_p4 = scmp.lt.s32.totalorder (!%p181_p3), %s539_s15, 3 }
   0x7   : > { %184 = sbr.rel (%p181_p3) target bundleno = 228 (0xe4), region = 36 }
   0xc   : > { %v523_v0 = vld [vmem:[%s645_s1] sm:$0xff]   ;;  %vm242_vm0 = vcmask 64512   ;;  %s654_s15 = smov (!%p211_p4, %s539_s15), 3  ;;  %v304_v1 = vld [vmem:[%s646_s2 + $0x10] sm:$0xff]  ;;  %v549_v3 = vmov 0   ;;  %vm249_vm1 = vcmask 1043456  }
   0xd   : > { %v302_v2 = vld [vmem:[%s646_s2] sm:$0xff]  ;;  %491 = vmatprep.mubr.msk.bf16.mxu0 %vm242_vm0, %v523_v0  ;;  %522 = vset.pattern.permute.xlu1 %v549_v3  ;;  %s468_s25 = sshll.u32 %s654_s15, 2  ;;  %v305_v4 = vld [vmem:[%s646_s2 + $0x18] sm:$0xff]  ;;  %v303_v6 = vld [vmem:[%s646_s2 + $0x8] sm:$0xff]  ;;  %s481_s21 = sshll.u32 %s654_s15, 4  ;;  %vm378_vm2 = vcmask 519168  }
   0xe   : > { %521 = vset.pattern.permute.xlu0 %v549_v3  ;;  %318 = vperm.xlu1 %522, %v304_v1   ;;  %s217_s28 = scalar_lea.vmem %s644_s0, %s468_s25  ;;  %v524_v8 = vld [vmem:[%s645_s1 + $0x8] sm:$0xff]   ;;  %v330_v10 = vld [vmem:[%s647_s3] sm:$0xff]  ;;  %v333_v11 = vld [vmem:[%s647_s3 + $0x18] sm:$0xff]  ;;  %s225_s24 = scalar_lea.vmem %s648_s4, %s481_s21 }
   0xf   : > { %308 = vperm.xlu0 %521, %v302_v2   ;;  %v231_v5 = vld [vmem:[%s217_s28] sm:$0xf]  ;;  %v331_v9 = vld [vmem:[%s647_s3 + $0x8] sm:$0xff]  ;;  %v332_v12 = vld [vmem:[%s647_s3 + $0x10] sm:$0xff] }
  0x10   : > { %495 = vmatprep.subr.msk.bf16.mxu0 %vm249_vm1, %v231_v5  ;;  %v251_v7 = vsel %vm249_vm1, %v231_v5, 0 }
  0x11   : > { %490 = vmatpush3.bf16.msra.mxu0 %v251_v7 }
  0x12   : > { %323 = vperm.xlu1 %522, %v305_v4  }
  0x13   : > { %313 = vperm.xlu0 %521, %v303_v6  }
  0x14   : > { %492 = vmatmul.mubr.msk.bf16.vlgmr.msra.gmra.mxu0 %vm242_vm0, %v524_v8 }
  0x16   : > { %341 = vperm.xlu1 %522, %v331_v9  }
  0x17   : > { %336 = vperm.xlu0 %521, %v330_v10  }
  0x1a   : > { %351 = vperm.xlu1 %522, %v333_v11  }
  0x1b   : > { %346 = vperm.xlu0 %521, %v332_v12  }
  0x89   : > { %v319_v14 = vpop.permute.xlu1 %318 }
  0x8a   : > { %v309_v13 = vpop.permute.xlu0 %308 }
  0x8d   : > { %v324_v16 = vpop.permute.xlu1 %323 }
  0x8e   : > { %v314_v15 = vpop.permute.xlu0 %313 }
  0x91   : > { %v342_v18 = vpop.permute.xlu1 %341 }
  0x92   : > { %v337_v17 = vpop.permute.xlu0 %336 }
  0x95   : > { %v352_v29 = vpop.permute.xlu1 %351 }
  0x96   : > { %v347_v21 = vpop.permute.xlu0 %346 }
  0xd4   : > { %v493_v19 = vpop.f32.mrf.mxu0 }
  0xd5   : > { %v328_v20 = vmul.f32 %v493_v19, %v319_v14 }
  0xd6   : > { %v287_v22 = vpop.f32.mrf.mxu0 }
  0xd7   : > { %v356_v23 = vadd.f32 %v347_v21, %v328_v20  ;;  %v326_v24 = vmul.f32 %v309_v13, %v287_v22 }
  0xd8   : > { %v494_v25 = vpop.f32.mrf.mxu0 }
  0xd9   : > { %v360_v26 = vmax.f32 %v356_v23, 0.0  ;;  %v354_v27 = vadd.f32 %v337_v17, %v326_v24  ;;  %v329_v28 = vmul.f32 %v494_v25, %v324_v16 }
  0xda   : > { %v290_v30 = vpop.f32.mrf.mxu0 }
  0xdb   : > { %v484_v31 = vpack.c.bf16 %v360_v26, %v360_v26  ;;  %v358_v32 = vmax.f32 %v354_v27, 0.0  ;;  %v357_v33 = vadd.f32 %v352_v29, %v329_v28  ;;  %v327_v34 = vmul.f32 %v314_v15, %v290_v30 }
  0xdd   : > { %381 = vst.msk [vmem:[%s225_s24 + $0x8] sm:$0xf] %vm378_vm2, %v484_v31  ;;  %v482_v35 = vpack.c.bf16 %v358_v32, %v358_v32  ;;  %v361_v36 = vmax.f32 %v357_v33, 0.0  ;;  %v355_v37 = vadd.f32 %v342_v18, %v327_v34 }
  0xdf   : > { %379 = vst.msk [vmem:[%s225_s24] sm:$0xf] %vm378_vm2, %v482_v35  ;;  %v485_v38 = vpack.c.bf16 %v361_v36, %v361_v36  ;;  %v359_v39 = vmax.f32 %v355_v37, 0.0 }
  0xe1   : > { %382 = vst.msk [vmem:[%s225_s24 + $0xc] sm:$0xf] %vm378_vm2, %v485_v38  ;;  %v483_v40 = vpack.c.bf16 %v359_v39, %v359_v39 }
  0xe3   : > { %380 = vst.msk [vmem:[%s225_s24 + $0x4] sm:$0xf] %vm378_vm2, %v483_v40 }
  0xe4 PF: > { %s14_s17 = sadd.s32 1, %s547_s17   ;;  %s649_s15 = smov %s543_s16 }
  0xe5   : > { %p11_p5 = scmp.ge.s32.totalorder %s14_s17, 6   ;;  %s650_s16 = smov %s652_s18 }
  0xe7   :  { %13 = sbr.rel (!%p11_p5) target bundleno = 2 (0x2), region = 66 }

// kernel: prop_head_forward.42
= control target key start
LH: loop header
LB: loop body
LE: loop exit
PB: predicated region body
PF: predicated region fallthrough
CT: control target
= control target key end

     0   :  { %s497_s15 = smov 0   ;;  %s499_s16 = smov 0   ;;  %s539_s0 = inlined_call_operand.vmem [shape: bf16[4,8,256], index: 0, kind: input, shape index: {}]   ;;  %s540_s1 = inlined_call_operand.vmem [shape: bf16[5,8], index: 1, kind: input, shape index: {}]   ;;  %s541_s2 = inlined_call_operand.vmem [shape: f32[5,1], index: 2, kind: input, shape index: {}]   ;;  %s542_s3 = inlined_call_operand.vmem [shape: f32[5,1], index: 3, kind: input, shape index: {}]   ;;  %s543_s4 = inlined_call_operand.vmem [shape: f32[4,5,256], index: 4, kind: output, shape index: {}]  }
   0x1   :  { %s501_s17 = smov 0  }
   0x2 LB: > { %s26_s18 = sadd.s32 1, %s465_s16  ;;  %p406_p0 = scmp.ge.s32.totalorder %s469_s17, 1  ;;  %s469_s17 = sphi %s501_s17, %s14_s17   ;;  %s465_s16 = sphi %s499_s16, %s545_s16   ;;  %s461_s15 = sphi %s497_s15, %s544_s15  }
   0x3   : > { %p28_p1 = scmp.ge.s32.totalorder %s26_s18, 4  ;;  %p183_p2 = scmp.lt.s32.totalorder %s469_s17, 5 }
   0x5   : > { %s547_s18 = smov (%p28_p1, %s26_s18), 0  ;;  %p184_p3 = pnand %p406_p0, %p183_p2 }
   0x6   : > { %p218_p4 = scmp.lt.s32.totalorder (!%p184_p3), %s461_s15, 3 }
   0x7   : > { %187 = sbr.rel (%p184_p3) target bundleno = 222 (0xde), region = 36 }
   0xc   : > { %v471_v0 = vmov 0   ;;  %v297_v1 = vld [vmem:[%s541_s2] sm:$0x1f]  ;;  %s549_s15 = smov (!%p218_p4, %s461_s15), 3  ;;  %vm249_vm0 = vcmask 1043456   ;;  %vm245_vm1 = vcmask 64512  }
   0xd   : > { %288 = vmatprep.mubr.bf16.mxu0 %v471_v0  ;;  %444 = vset.pattern.permute.xlu0 %v471_v0  ;;  %v305_v2 = vld [vmem:[%s542_s3] sm:$0x1f]  ;;  %s417_s23 = sshll.u32 %s549_s15, 3  ;;  %s418_s29 = sshll.u32 %s549_s15, 4 }
   0xe   : > { %300 = vperm.xlu0 %444, %v297_v1   ;;  %s225_s26 = scalar_lea.vmem %s539_s0, %s417_s23  ;;  %v238_v7 = vld [vmem:[%s540_s1] sm:$0x7]  ;;  %s235_s6 = scalar_lea.vmem %s543_s4, %s418_s29 }
   0xf   : > { %v239_v3 = vld [vmem:[%s225_s26] sm:$0xff] }
  0x10   : > { %v412_v4 = vcombine.high %v239_v3, %v239_v3  ;;  %v411_v5 = vcombine.low %v239_v3, %v239_v3 }
  0x12   : > { %308 = vperm.xlu0 %444, %v305_v2   ;;  %413 = vmatprep.subr.msk.bf16.mxu0 %vm249_vm0, %v412_v4  ;;  %v251_v6 = vsel %vm249_vm0, %v411_v5, 0 }
  0x13   : > { %271 = vmatpush1.bf16.msra.mxu0 %v251_v6 }
  0x16   : > { %414 = vmatmul.mubr.msk.bf16.vlgmr.msra.gmra.mxu0 %vm245_vm1, %v238_v7 }
  0x89   : > { %v301_v8 = vpop.permute.xlu0 %300 }
  0x8d   : > { %v309_v11 = vpop.permute.xlu0 %308 }
  0xd6   : > { %v290_v9 = vpop.f32.mrf.mxu0 }
  0xd7   : > { %v303_v10 = vmul.f32 %v301_v8, %v290_v9 }
  0xd8   : > { %v292_v12 = vpop.f32.mrf.mxu0 }
  0xd9   : > { %v311_v13 = vadd.f32 %v309_v11, %v303_v10  ;;  %v304_v14 = vmul.f32 %v301_v8, %v292_v12 }
  0xda   : > { %v294_v15 = vpop.f32.mrf.mxu0 }
  0xdb   : > { %313 = vst [vmem:[%s235_s6] sm:$0x1f] %v311_v13  ;;  %v312_v16 = vadd.f32 %v309_v11, %v304_v14 }
  0xdc   : > { %v295_v17 = vpop.f32.mrf.mxu0 }
  0xdd   : > { %314 = vst [vmem:[%s235_s6 + $0x8] sm:$0x1f] %v312_v16 }
  0xde PF: > { %s14_s17 = sadd.s32 1, %s469_s17   ;;  %s544_s15 = smov %s465_s16 }
  0xdf   : > { %p11_p5 = scmp.ge.s32.totalorder %s14_s17, 6   ;;  %s545_s16 = smov %s547_s18 }
  0xe1   :  { %13 = sbr.rel (!%p11_p5) target bundleno = 2 (0x2), region = 66 }

// kernel: prop_head_forward.43
= control target key start
LH: loop header
LB: loop body
LE: loop exit
PB: predicated region body
PF: predicated region fallthrough
CT: control target
= control target key end

     0   :  { %8 = vsyncpa [#allocation3], 0  ;;  %s2542_s0 = inlined_call_operand.vmem [shape: f32[20,16,16], index: 0, kind: input, shape index: {}]   ;;  %s2543_s1 = inlined_call_operand.vmem [shape: f32[64,16], index: 1, kind: input, shape index: {}]   ;;  %s2544_s2 = inlined_call_operand.vmem [shape: f32[16,64], index: 2, kind: input, shape index: {}]   ;;  %s2545_s3 = inlined_call_operand.hbm [shape: f32[20,64,64], index: 3, kind: output, shape index: {}]  }
   0x1   :  { %10 = vsyncpa [#allocation3 + $0x1], 0  ;;  %s2173_s12 = smov 0   ;;  %s2175_s13 = smov 0  }
   0x2   :  { %s2177_s14 = smov 0   ;;  %s2179_s15 = smov 0  }
   0x3 LB: > { %s2194_s16 = sadd.s32 4294967295, %s2148_s15   ;;  %s1652_s17 = sadd.s32 4294967294, %s2148_s15   ;;  %s2148_s15 = sphi %s2179_s15, %s2551_s15   ;;  %s2144_s14 = sphi %s2177_s14, %s2550_s14   ;;  %s2140_s13 = sphi %s2175_s13, %s2549_s13   ;;  %s2136_s12 = sphi %s2173_s12, %s2548_s12  }
   0x4   : > { %s2198_s18 = sadd.s32 1, %s2148_s15   ;;  %s91_s19 = sadd.s32 1, %s2144_s14 }
   0x5   : > { %s88_s20 = ssub.s32 %s2148_s15, %s2198_s18  ;;  %p101_p0 = scmp.ne.s32.totalorder %s2144_s14, %s2140_s13 }
   0x6   : > { %p89_p1 = scmp.eq.s32.totalorder %s88_s20, 0  ;;  %p102_p2 = scmp.eq.s32.totalorder %s2194_s16, 3 }
   0x7   : > { %p107_p3 = scmp.ne.s32.totalorder %s2140_s13, %s2136_s12  ;;  %p108_p4 = scmp.eq.s32.totalorder %s1652_s17, 3 }
   0x8   : > { %s2209_s21 = scalar_select %p89_p1, %s2144_s14, %s91_s19  }
   0x9   : > { %p2211_p5 = por %p102_p2, %p101_p0  ;;  %p2215_p6 = por %p108_p4, %p107_p3 }
   0xa   : > { %p1655_p7 = scmp.ge.s32.totalorder %s2148_s15, 1  ;;  %p142_p8 = scmp.lt.s32.totalorder %s2148_s15, 5 }
   0xc   : > { %p143_p9 = pnand %p1655_p7, %p142_p8 }
   0xd   : > { %s167_s24 = smul.u32 (!%p143_p9), 5, %s2194_s16  ;;  %s164_s4 = sand.u32 (!%p143_p9), 1, %s2140_s13  }
   0xe   : > { %146 = sbr.rel (%p143_p9) target bundleno = 508 (0x1fc), region = 32  ;;  %s2150_s19 = smov (!%p143_p9), [#allocation2]  }
   0xf   : > { %p168_p10 = scmp.lt.s32.totalorder (!%p143_p9), %s167_s24, 19  ;;  %s2046_s5 = smul.u32 (!%p143_p9), 320, %s164_s4 }
  0x10   : > { %s1785_s7 = smul.u32 (!%p143_p9), 5120, %s2194_s16  ;;  %s2502_s16 = scalar_lea.sflag (!%p143_p9), [#allocation3], %s164_s4 }
  0x11   : > { %s2409_s6 = scalar_lea.vmem (!%p143_p9), [#allocation2], %s2046_s5  ;;  %s2092_s20 = sshll.u32 (!%p143_p9), %s2150_s19, 4  ;;  %s2093_s20 = int_to_ptr.vmem [resolvable:$false] %s2092_s20 }
  0x12   : > { %s1590_s8 = sshll.u32 (!%p143_p9), %s2409_s6, 4  ;;  %s2492_s11 = scalar_lea.hbm (!%p143_p9), %s2545_s3, %s1785_s7  ;;  %s2494_s8 = int_to_ptr.vmem [resolvable:$true] %s1590_s8 }
  0x13   : > { %v2225_v0 = vld [vmem:[%s2543_s1] sm:$0xff]  ;;  %vm185_vm0 = vcmask 130048   ;;  %s2553_s24 = smov (!%p168_p10, %s167_s24), 19  ;;  %v2239_v3 = vld [vmem:[%s2543_s1 + $0x8] sm:$0xff]  ;;  %v2245_v5 = vld [vmem:[%s2543_s1 + $0x10] sm:$0xff]  ;;  %vm446_vm1 = vcmask 523264   ;;  %p2095_p0 = scmp.lt.s32.totalorder %s2494_s8, %s2093_s20 }
  0x14   : > { %1890 = vmatprep.mubr.msk.f32.mxu0 %vm185_vm0, %v2225_v0  ;;  %s1782_s27 = sshll.u32 %s2553_s24, 4  ;;  %v2255_v7 = vld [vmem:[%s2543_s1 + $0x18] sm:$0xff]  ;;  %v2261_v9 = vld [vmem:[%s2543_s1 + $0x20] sm:$0xff]  ;;  %v180_v10 = vld [vmem:[%s2543_s1 + $0x28] sm:$0xff]  ;;  %s2088_s17 = scalar_lea.vmem %s2494_s8, 5120 }
  0x15   : > { %s2232_s30 = scalar_lea.vmem %s2542_s0, %s1782_s27  ;;  %v181_v11 = vld [vmem:[%s2543_s1 + $0x30] sm:$0xff]  ;;  %v182_v12 = vld [vmem:[%s2543_s1 + $0x38] sm:$0xff]  ;;  %v2328_v18 = vld [vmem:[%s2544_s2 + $0x8] sm:$0xff]  ;;  %p2089_p11 = scmp.ne.s32.totalorder %s2494_s8, %s2088_s17 }
  0x16   : > { %v184_v1 = vld [vmem:[%s2232_s30 + $0x8] sm:$0xff]  ;;  %v183_v2 = vld [vmem:[%s2232_s30] sm:$0xff]  ;;  %v1675_v4 = vld [vmem:[%s2232_s30 + $0x18] sm:$0xff]  ;;  %1902 = vmatprep.subr.mxu1 %v2328_v18  ;;  %s2094_s24 = scalar_lea.vmem %s2093_s20, 10240 }
  0x17   : > { %1886 = vmatprep.subr.mxu0 %v184_v1  ;;  %v1674_v6 = vld [vmem:[%s2232_s30 + $0x10] sm:$0xff]  ;;  %v1701_v8 = vld [vmem:[%s2232_s30 + $0x28] sm:$0xff]  ;;  %v1700_v13 = vld [vmem:[%s2232_s30 + $0x20] sm:$0xff]  ;;  %1903 = vmatpush3.msra.mxu1 %v2328_v18  ;;  %p2090_p12 = pnand %p2089_p11, %p2211_p5  ;;  %p2096_p1 = scmp.lt.s32.totalorder %s2094_s24, %s2088_s17 }
  0x18   : > { %1887 = vmatpush3.msra.mxu0 %v184_v1  ;;  %v1727_v14 = vld [vmem:[%s2232_s30 + $0x38] sm:$0xff]  ;;  %v1726_v15 = vld [vmem:[%s2232_s30 + $0x30] sm:$0xff]  ;;  %v1753_v16 = vld [vmem:[%s2232_s30 + $0x48] sm:$0xff] }
  0x19   : > { %1888 = vmatprep.subr.mxu0 %v183_v2  ;;  %v1752_v17 = vld [vmem:[%s2232_s30 + $0x40] sm:$0xff]  ;;  %p2091_p13 = pneg %p2090_p12  ;;  %p2097_p2 = por %p2096_p1, %p2095_p0 }
  0x1a   : > { %1889 = vmatpush3.msra.mxu0 %v183_v2  ;;  %v2339_v19 = vld [vmem:[%s2544_s2] sm:$0xff] }
  0x1b   : > { %1891 = vmatmul.mubr.msk.f32.vlgmr.msra.gmra.mxu0 %vm185_vm0, %v2239_v3  ;;  %1918 = vmatprep.subr.mxu0 %v1675_v4  ;;  %p2098_p3 = pnand %p2097_p2, %p2091_p13 }
  0x1c   : > { %1919 = vmatpush3.msra.mxu0 %v1675_v4  ;;  %1893 = vmatprep.mubr.msk.f32.mxu0 %vm185_vm0, %v2245_v5 }
  0x1d   : > { %1920 = vmatprep.subr.mxu0 %v1674_v6  ;;  %1904 = vmatprep.subr.mxu1 %v2339_v19 }
  0x1e   : > { %1921 = vmatpush3.msra.mxu0 %v1674_v6  ;;  %1905 = vmatpush3.msra.mxu1 %v2339_v19 }
  0x1f   : > { %1894 = vmatmul.mubr.msk.f32.gmra.mxu0 %vm185_vm0, %v2255_v7  ;;  %1950 = vmatprep.subr.mxu0 %v1701_v8 }
  0x20   : > { %1896 = vmatprep.mubr.msk.f32.mxu0 %vm185_vm0, %v2261_v9  ;;  %1934 = vmatprep.subr.mxu1 %v2328_v18 }
  0x23   : > { %1897 = vmatmul.mubr.msk.f32.gmra.mxu0 %vm185_vm0, %v180_v10 }
  0x24   : > { %1899 = vmatprep.mubr.msk.f32.mxu0 %vm185_vm0, %v181_v11 }
  0x27   : > { %1900 = vmatmul.mubr.msk.f32.gmra.mxu0 %vm185_vm0, %v182_v12 }
  0x28   : > { %1922 = vmatprep.mubr.msk.f32.mxu0 %vm185_vm0, %v2225_v0 }
  0x2b   : > { %1923 = vmatmul.mubr.msk.f32.vlgmr.msra.gmra.mxu0 %vm185_vm0, %v2239_v3 }
  0x2c   : > { %1951 = vmatpush3.msra.mxu0 %v1701_v8  ;;  %1925 = vmatprep.mubr.msk.f32.mxu0 %vm185_vm0, %v2245_v5 }
  0x2d   : > { %1952 = vmatprep.subr.mxu0 %v1700_v13 }
  0x2e   : > { %1953 = vmatpush3.msra.mxu0 %v1700_v13 }
  0x2f   : > { %1926 = vmatmul.mubr.msk.f32.gmra.mxu0 %vm185_vm0, %v2255_v7  ;;  %1982 = vmatprep.subr.mxu0 %v1727_v14 }
  0x30   : > { %1928 = vmatprep.mubr.msk.f32.mxu0 %vm185_vm0, %v2261_v9 }
  0x33   : > { %1929 = vmatmul.mubr.msk.f32.gmra.mxu0 %vm185_vm0, %v180_v10 }
  0x34   : > { %1931 = vmatprep.mubr.msk.f32.mxu0 %vm185_vm0, %v181_v11 }
  0x37   : > { %1932 = vmatmul.mubr.msk.f32.gmra.mxu0 %vm185_vm0, %v182_v12 }
  0x38   : > { %1954 = vmatprep.mubr.msk.f32.mxu0 %vm185_vm0, %v2225_v0 }
  0x3b   : > { %1955 = vmatmul.mubr.msk.f32.vlgmr.msra.gmra.mxu0 %vm185_vm0, %v2239_v3 }
  0x3c   : > { %1983 = vmatpush3.msra.mxu0 %v1727_v14  ;;  %1957 = vmatprep.mubr.msk.f32.mxu0 %vm185_vm0, %v2245_v5 }
  0x3d   : > { %1984 = vmatprep.subr.mxu0 %v1726_v15 }
  0x3e   : > { %1985 = vmatpush3.msra.mxu0 %v1726_v15 }
  0x3f   : > { %1958 = vmatmul.mubr.msk.f32.gmra.mxu0 %vm185_vm0, %v2255_v7  ;;  %2014 = vmatprep.subr.mxu0 %v1753_v16 }
  0x40   : > { %1960 = vmatprep.mubr.msk.f32.mxu0 %vm185_vm0, %v2261_v9 }
  0x43   : > { %1961 = vmatmul.mubr.msk.f32.gmra.mxu0 %vm185_vm0, %v180_v10 }
  0x44   : > { %1963 = vmatprep.mubr.msk.f32.mxu0 %vm185_vm0, %v181_v11 }
  0x47   : > { %1964 = vmatmul.mubr.msk.f32.gmra.mxu0 %vm185_vm0, %v182_v12 }
  0x48   : > { %1986 = vmatprep.mubr.msk.f32.mxu0 %vm185_vm0, %v2225_v0 }
  0x4b   : > { %1987 = vmatmul.mubr.msk.f32.vlgmr.msra.gmra.mxu0 %vm185_vm0, %v2239_v3 }
  0x4c   : > { %2015 = vmatpush3.msra.mxu0 %v1753_v16  ;;  %1989 = vmatprep.mubr.msk.f32.mxu0 %vm185_vm0, %v2245_v5 }
  0x4d   : > { %2016 = vmatprep.subr.mxu0 %v1752_v17 }
  0x4e   : > { %2017 = vmatpush3.msra.mxu0 %v1752_v17 }
  0x4f   : > { %1990 = vmatmul.mubr.msk.f32.gmra.mxu0 %vm185_vm0, %v2255_v7 }
  0x50   : > { %1992 = vmatprep.mubr.msk.f32.mxu0 %vm185_vm0, %v2261_v9 }
  0x53   : > { %1993 = vmatmul.mubr.msk.f32.gmra.mxu0 %vm185_vm0, %v180_v10 }
  0x54   : > { %1995 = vmatprep.mubr.msk.f32.mxu0 %vm185_vm0, %v181_v11 }
  0x57   : > { %1996 = vmatmul.mubr.msk.f32.gmra.mxu0 %vm185_vm0, %v182_v12 }
  0x58   : > { %2018 = vmatprep.mubr.msk.f32.mxu0 %vm185_vm0, %v2225_v0 }
  0x5b   : > { %2019 = vmatmul.mubr.msk.f32.vlgmr.msra.gmra.mxu0 %vm185_vm0, %v2239_v3 }
  0x5c   : > { %2021 = vmatprep.mubr.msk.f32.mxu0 %vm185_vm0, %v2245_v5 }
  0x5f   : > { %2022 = vmatmul.mubr.msk.f32.gmra.mxu0 %vm185_vm0, %v2255_v7 }
  0x60   : > { %2024 = vmatprep.mubr.msk.f32.mxu0 %vm185_vm0, %v2261_v9 }
  0x63   : > { %2025 = vmatmul.mubr.msk.f32.gmra.mxu0 %vm185_vm0, %v180_v10 }
  0x64   : > { %2027 = vmatprep.mubr.msk.f32.mxu0 %vm185_vm0, %v181_v11 }
  0x67   : > { %2028 = vmatmul.mubr.msk.f32.gmra.mxu0 %vm185_vm0, %v182_v12 }
  0xdb   : > { %v1892_v20 = vpop.f32.mrf.mxu0 }
  0xdd   : > { %v276_v21 = vpop.f32.mrf.mxu0 }
  0xde   : > { %1906 = vmatprep.mubr.msk.f32.mxu1 %vm185_vm0, %v276_v21 }
  0xdf   : > { %v1895_v22 = vpop.f32.mrf.mxu0  ;;  %1907 = vmatmul.mubr.msk.f32.vlgmr.msra.gmra.mxu1 %vm185_vm0, %v1892_v20 }
  0xe0   : > { %1935 = vmatpush3.msra.mxu1 %v2328_v18 }
  0xe1   : > { %v286_v23 = vpop.f32.mrf.mxu0  ;;  %1936 = vmatprep.subr.mxu1 %v2339_v19 }
  0xe2   : > { %1909 = vmatprep.mubr.msk.f32.mxu1 %vm185_vm0, %v286_v23  ;;  %1937 = vmatpush3.msra.mxu1 %v2339_v19 }
  0xe3   : > { %v1898_v24 = vpop.f32.mrf.mxu0  ;;  %1910 = vmatmul.mubr.msk.f32.gmra.mxu1 %vm185_vm0, %v1895_v22  ;;  %1966 = vmatprep.subr.mxu1 %v2328_v18 }
  0xe5   : > { %v296_v25 = vpop.f32.mrf.mxu0 }
  0xe6   : > { %1912 = vmatprep.mubr.msk.f32.mxu1 %vm185_vm0, %v296_v25 }
  0xe7   : > { %v1901_v26 = vpop.f32.mrf.mxu0  ;;  %1913 = vmatmul.mubr.msk.f32.gmra.mxu1 %vm185_vm0, %v1898_v24 }
  0xe9   : > { %v306_v27 = vpop.f32.mrf.mxu0 }
  0xea   : > { %1915 = vmatprep.mubr.msk.f32.mxu1 %vm185_vm0, %v306_v27 }
  0xeb   : > { %1916 = vmatmul.mubr.msk.f32.gmra.mxu1 %vm185_vm0, %v1901_v26  ;;  %v1924_v28 = vpop.f32.mrf.mxu0 }
  0xed   : > { %v556_v29 = vpop.f32.mrf.mxu0 }
  0xee   : > { %1938 = vmatprep.mubr.msk.f32.mxu1 %vm185_vm0, %v556_v29 }
  0xef   : > { %v1927_v30 = vpop.f32.mrf.mxu0  ;;  %1939 = vmatmul.mubr.msk.f32.vlgmr.msra.gmra.mxu1 %vm185_vm0, %v1924_v28 }
  0xf0   : > { %1967 = vmatpush3.msra.mxu1 %v2328_v18 }
  0xf1   : > { %v566_v31 = vpop.f32.mrf.mxu0  ;;  %1968 = vmatprep.subr.mxu1 %v2339_v19 }
  0xf2   : > { %1941 = vmatprep.mubr.msk.f32.mxu1 %vm185_vm0, %v566_v31  ;;  %1969 = vmatpush3.msra.mxu1 %v2339_v19 }
  0xf3   : > { %v1930_v32 = vpop.f32.mrf.mxu0  ;;  %1942 = vmatmul.mubr.msk.f32.gmra.mxu1 %vm185_vm0, %v1927_v30  ;;  %1998 = vmatprep.subr.mxu1 %v2328_v18 }
  0xf5   : > { %v576_v33 = vpop.f32.mrf.mxu0 }
  0xf6   : > { %1944 = vmatprep.mubr.msk.f32.mxu1 %vm185_vm0, %v576_v33 }
  0xf7   : > { %v1933_v34 = vpop.f32.mrf.mxu0  ;;  %1945 = vmatmul.mubr.msk.f32.gmra.mxu1 %vm185_vm0, %v1930_v32 }
  0xf9   : > { %v586_v35 = vpop.f32.mrf.mxu0 }
  0xfa   : > { %1947 = vmatprep.mubr.msk.f32.mxu1 %vm185_vm0, %v586_v35 }
  0xfb   : > { %1948 = vmatmul.mubr.msk.f32.gmra.mxu1 %vm185_vm0, %v1933_v34  ;;  %v1956_v36 = vpop.f32.mrf.mxu0 }
  0xfd   : > { %v836_v37 = vpop.f32.mrf.mxu0 }
  0xfe   : > { %1970 = vmatprep.mubr.msk.f32.mxu1 %vm185_vm0, %v836_v37 }
  0xff   : > { %v1959_v38 = vpop.f32.mrf.mxu0  ;;  %1971 = vmatmul.mubr.msk.f32.vlgmr.msra.gmra.mxu1 %vm185_vm0, %v1956_v36 }
 0x100   : > { %1999 = vmatpush3.msra.mxu1 %v2328_v18 }
 0x101   : > { %v846_v39 = vpop.f32.mrf.mxu0  ;;  %2000 = vmatprep.subr.mxu1 %v2339_v19 }
 0x102   : > { %1973 = vmatprep.mubr.msk.f32.mxu1 %vm185_vm0, %v846_v39  ;;  %2001 = vmatpush3.msra.mxu1 %v2339_v19 }
 0x103   : > { %v1962_v40 = vpop.f32.mrf.mxu0  ;;  %1974 = vmatmul.mubr.msk.f32.gmra.mxu1 %vm185_vm0, %v1959_v38  ;;  %2030 = vmatprep.subr.mxu1 %v2328_v18 }
 0x105   : > { %v856_v41 = vpop.f32.mrf.mxu0 }
 0x106   : > { %1976 = vmatprep.mubr.msk.f32.mxu1 %vm185_vm0, %v856_v41 }
 0x107   : > { %v1965_v42 = vpop.f32.mrf.mxu0  ;;  %1977 = vmatmul.mubr.msk.f32.gmra.mxu1 %vm185_vm0, %v1962_v40 }
 0x109   : > { %v866_v43 = vpop.f32.mrf.mxu0 }
 0x10a   : > { %1979 = vmatprep.mubr.msk.f32.mxu1 %vm185_vm0, %v866_v43 }
 0x10b   : > { %1980 = vmatmul.mubr.msk.f32.gmra.mxu1 %vm185_vm0, %v1965_v42  ;;  %v1988_v44 = vpop.f32.mrf.mxu0 }
 0x10d   : > { %v1116_v45 = vpop.f32.mrf.mxu0 }
 0x10e   : > { %2002 = vmatprep.mubr.msk.f32.mxu1 %vm185_vm0, %v1116_v45 }
 0x10f   : > { %v1991_v46 = vpop.f32.mrf.mxu0  ;;  %2003 = vmatmul.mubr.msk.f32.vlgmr.msra.gmra.mxu1 %vm185_vm0, %v1988_v44 }
 0x110   : > { %2031 = vmatpush3.msra.mxu1 %v2328_v18 }
 0x111   : > { %v1126_v47 = vpop.f32.mrf.mxu0  ;;  %2032 = vmatprep.subr.mxu1 %v2339_v19 }
 0x112   : > { %2005 = vmatprep.mubr.msk.f32.mxu1 %vm185_vm0, %v1126_v47  ;;  %2033 = vmatpush3.msra.mxu1 %v2339_v19 }
 0x113   : > { %v1994_v48 = vpop.f32.mrf.mxu0  ;;  %2006 = vmatmul.mubr.msk.f32.gmra.mxu1 %vm185_vm0, %v1991_v46 }
 0x115   : > { %v1136_v49 = vpop.f32.mrf.mxu0 }
 0x116   : > { %2008 = vmatprep.mubr.msk.f32.mxu1 %vm185_vm0, %v1136_v49 }
 0x117   : > { %v1997_v50 = vpop.f32.mrf.mxu0  ;;  %2009 = vmatmul.mubr.msk.f32.gmra.mxu1 %vm185_vm0, %v1994_v48 }
 0x119   : > { %v1146_v51 = vpop.f32.mrf.mxu0 }
 0x11a   : > { %2011 = vmatprep.mubr.msk.f32.mxu1 %vm185_vm0, %v1146_v51 }
 0x11b   : > { %2012 = vmatmul.mubr.msk.f32.gmra.mxu1 %vm185_vm0, %v1997_v50  ;;  %v2020_v52 = vpop.f32.mrf.mxu0 }
 0x11d   : > { %v1396_v53 = vpop.f32.mrf.mxu0 }
 0x11e   : > { %2034 = vmatprep.mubr.msk.f32.mxu1 %vm185_vm0, %v1396_v53 }
 0x11f   : > { %v2023_v54 = vpop.f32.mrf.mxu0  ;;  %2035 = vmatmul.mubr.msk.f32.vlgmr.msra.gmra.mxu1 %vm185_vm0, %v2020_v52 }
 0x121   : > { %v1406_v55 = vpop.f32.mrf.mxu0 }
 0x122   : > { %2037 = vmatprep.mubr.msk.f32.mxu1 %vm185_vm0, %v1406_v55 }
 0x123   : > { %v2026_v56 = vpop.f32.mrf.mxu0  ;;  %2038 = vmatmul.mubr.msk.f32.gmra.mxu1 %vm185_vm0, %v2023_v54 }
 0x125   : > { %v1416_v57 = vpop.f32.mrf.mxu0 }
 0x126   : > { %2040 = vmatprep.mubr.msk.f32.mxu1 %vm185_vm0, %v1416_v57 }
 0x127   : > { %v2029_v58 = vpop.f32.mrf.mxu0  ;;  %2041 = vmatmul.mubr.msk.f32.gmra.mxu1 %vm185_vm0, %v2026_v56 }
 0x129   : > { %v1426_v59 = vpop.f32.mrf.mxu0 }
 0x12a   : > { %2043 = vmatprep.mubr.msk.f32.mxu1 %vm185_vm0, %v1426_v59 }
 0x12b   : > { %2044 = vmatmul.mubr.msk.f32.gmra.mxu1 %vm185_vm0, %v2029_v58 }
 0x19f   : > { %v1908_v60 = vpop.f32.mrf.mxu1 }
 0x1a0   : > { %448 = vst.msk [vmem:[%s2409_s6 + $0x8] sm:$0xff] %vm446_vm1, %v1908_v60 }
 0x1a1   : > { %v407_v61 = vpop.f32.mrf.mxu1 }
 0x1a2   : > { %447 = vst.msk [vmem:[%s2409_s6] sm:$0xff] %vm446_vm1, %v407_v61 }
 0x1a3   : > { %v1911_v62 = vpop.f32.mrf.mxu1 }
 0x1a4   : > { %450 = vst.msk [vmem:[%s2409_s6 + $0x18] sm:$0xff] %vm446_vm1, %v1911_v62 }
 0x1a5   : > { %v417_v63 = vpop.f32.mrf.mxu1 }
 0x1a6   : > { %449 = vst.msk [vmem:[%s2409_s6 + $0x10] sm:$0xff] %vm446_vm1, %v417_v63 }
 0x1a7   : > { %v1914_v0 = vpop.f32.mrf.mxu1 }
 0x1a8   : > { %452 = vst.msk [vmem:[%s2409_s6 + $0x28] sm:$0xff] %vm446_vm1, %v1914_v0 }
 0x1a9   : > { %v427_v1 = vpop.f32.mrf.mxu1 }
 0x1aa   : > { %451 = vst.msk [vmem:[%s2409_s6 + $0x20] sm:$0xff] %vm446_vm1, %v427_v1 }
 0x1ab   : > { %v1917_v2 = vpop.f32.mrf.mxu1 }
 0x1ac   : > { %454 = vst.msk [vmem:[%s2409_s6 + $0x38] sm:$0xff] %vm446_vm1, %v1917_v2 }
 0x1ad   : > { %v437_v3 = vpop.f32.mrf.mxu1 }
 0x1ae   : > { %453 = vst.msk [vmem:[%s2409_s6 + $0x30] sm:$0xff] %vm446_vm1, %v437_v3 }
 0x1af   : > { %v1940_v4 = vpop.f32.mrf.mxu1 }
 0x1b0   : > { %1693 = vst.msk [vmem:[%s2409_s6 + $0x48] sm:$0xff] %vm446_vm1, %v1940_v4 }
 0x1b1   : > { %v687_v5 = vpop.f32.mrf.mxu1 }
 0x1b2   : > { %1692 = vst.msk [vmem:[%s2409_s6 + $0x40] sm:$0xff] %vm446_vm1, %v687_v5 }
 0x1b3   : > { %v1943_v6 = vpop.f32.mrf.mxu1 }
 0x1b4   : > { %1695 = vst.msk [vmem:[%s2409_s6 + $0x58] sm:$0xff] %vm446_vm1, %v1943_v6 }
 0x1b5   : > { %v697_v7 = vpop.f32.mrf.mxu1 }
 0x1b6   : > { %1694 = vst.msk [vmem:[%s2409_s6 + $0x50] sm:$0xff] %vm446_vm1, %v697_v7 }
 0x1b7   : > { %v1946_v8 = vpop.f32.mrf.mxu1 }
 0x1b8   : > { %1697 = vst.msk [vmem:[%s2409_s6 + $0x68] sm:$0xff] %vm446_vm1, %v1946_v8 }
 0x1b9   : > { %v707_v9 = vpop.f32.mrf.mxu1 }
 0x1ba   : > { %1696 = vst.msk [vmem:[%s2409_s6 + $0x60] sm:$0xff] %vm446_vm1, %v707_v9 }
 0x1bb   : > { %v1949_v10 = vpop.f32.mrf.mxu1 }
 0x1bc   : > { %1699 = vst.msk [vmem:[%s2409_s6 + $0x78] sm:$0xff] %vm446_vm1, %v1949_v10 }
 0x1bd   : > { %v717_v11 = vpop.f32.mrf.mxu1 }
 0x1be   : > { %1698 = vst.msk [vmem:[%s2409_s6 + $0x70] sm:$0xff] %vm446_vm1, %v717_v11 }
 0x1bf   : > { %v1972_v12 = vpop.f32.mrf.mxu1 }
 0x1c0   : > { %1719 = vst.msk [vmem:[%s2409_s6 + $0x88] sm:$0xff] %vm446_vm1, %v1972_v12 }
 0x1c1   : > { %v967_v13 = vpop.f32.mrf.mxu1 }
 0x1c2   : > { %1718 = vst.msk [vmem:[%s2409_s6 + $0x80] sm:$0xff] %vm446_vm1, %v967_v13 }
 0x1c3   : > { %v1975_v14 = vpop.f32.mrf.mxu1 }
 0x1c4   : > { %1721 = vst.msk [vmem:[%s2409_s6 + $0x98] sm:$0xff] %vm446_vm1, %v1975_v14 }
 0x1c5   : > { %v977_v15 = vpop.f32.mrf.mxu1 }
 0x1c6   : > { %1720 = vst.msk [vmem:[%s2409_s6 + $0x90] sm:$0xff] %vm446_vm1, %v977_v15 }
 0x1c7   : > { %v1978_v16 = vpop.f32.mrf.mxu1 }
 0x1c8   : > { %1723 = vst.msk [vmem:[%s2409_s6 + $0xa8] sm:$0xff] %vm446_vm1, %v1978_v16 }
 0x1c9   : > { %v987_v17 = vpop.f32.mrf.mxu1 }
 0x1ca   : > { %1722 = vst.msk [vmem:[%s2409_s6 + $0xa0] sm:$0xff] %vm446_vm1, %v987_v17 }
 0x1cb   : > { %v1981_v18 = vpop.f32.mrf.mxu1 }
 0x1cc   : > { %1725 = vst.msk [vmem:[%s2409_s6 + $0xb8] sm:$0xff] %vm446_vm1, %v1981_v18 }
 0x1cd   : > { %v997_v19 = vpop.f32.mrf.mxu1 }
 0x1ce   : > { %1724 = vst.msk [vmem:[%s2409_s6 + $0xb0] sm:$0xff] %vm446_vm1, %v997_v19 }
 0x1cf   : > { %v2004_v20 = vpop.f32.mrf.mxu1 }
 0x1d0   : > { %1745 = vst.msk [vmem:[%s2409_s6 + $0xc8] sm:$0xff] %vm446_vm1, %v2004_v20 }
 0x1d1   : > { %v1247_v21 = vpop.f32.mrf.mxu1 }
 0x1d2   : > { %1744 = vst.msk [vmem:[%s2409_s6 + $0xc0] sm:$0xff] %vm446_vm1, %v1247_v21 }
 0x1d3   : > { %v2007_v22 = vpop.f32.mrf.mxu1 }
 0x1d4   : > { %1747 = vst.msk [vmem:[%s2409_s6 + $0xd8] sm:$0xff] %vm446_vm1, %v2007_v22 }
 0x1d5   : > { %v1257_v23 = vpop.f32.mrf.mxu1 }
 0x1d6   : > { %1746 = vst.msk [vmem:[%s2409_s6 + $0xd0] sm:$0xff] %vm446_vm1, %v1257_v23 }
 0x1d7   : > { %v2010_v24 = vpop.f32.mrf.mxu1 }
 0x1d8   : > { %1749 = vst.msk [vmem:[%s2409_s6 + $0xe8] sm:$0xff] %vm446_vm1, %v2010_v24 }
 0x1d9   : > { %v1267_v25 = vpop.f32.mrf.mxu1 }
 0x1da   : > { %1748 = vst.msk [vmem:[%s2409_s6 + $0xe0] sm:$0xff] %vm446_vm1, %v1267_v25 }
 0x1db   : > { %v2013_v26 = vpop.f32.mrf.mxu1 }
 0x1dc   : > { %1751 = vst.msk [vmem:[%s2409_s6 + $0xf8] sm:$0xff] %vm446_vm1, %v2013_v26 }
 0x1dd   : > { %v1277_v27 = vpop.f32.mrf.mxu1 }
 0x1de   : > { %1750 = vst.msk [vmem:[%s2409_s6 + $0xf0] sm:$0xff] %vm446_vm1, %v1277_v27 }
 0x1df   : > { %v2036_v28 = vpop.f32.mrf.mxu1 }
 0x1e0   : > { %1771 = vst.msk [vmem:[%s2409_s6 + $0x108] sm:$0xff] %vm446_vm1, %v2036_v28 }
 0x1e1   : > { %v1527_v29 = vpop.f32.mrf.mxu1 }
 0x1e2   : > { %1770 = vst.msk [vmem:[%s2409_s6 + $0x100] sm:$0xff] %vm446_vm1, %v1527_v29 }
 0x1e3   : > { %v2039_v30 = vpop.f32.mrf.mxu1 }
 0x1e4   : > { %1773 = vst.msk [vmem:[%s2409_s6 + $0x118] sm:$0xff] %vm446_vm1, %v2039_v30 }
 0x1e5   : > { %v1537_v31 = vpop.f32.mrf.mxu1 }
 0x1e6   : > { %1772 = vst.msk [vmem:[%s2409_s6 + $0x110] sm:$0xff] %vm446_vm1, %v1537_v31 }
 0x1e7   : > { %v2042_v32 = vpop.f32.mrf.mxu1 }
 0x1e8   : > { %1775 = vst.msk [vmem:[%s2409_s6 + $0x128] sm:$0xff] %vm446_vm1, %v2042_v32 }
 0x1e9   : > { %v1547_v33 = vpop.f32.mrf.mxu1 }
 0x1ea   : > { %1774 = vst.msk [vmem:[%s2409_s6 + $0x120] sm:$0xff] %vm446_vm1, %v1547_v33 }
 0x1eb   : > { %v2045_v34 = vpop.f32.mrf.mxu1 }
 0x1ec   : > { %1777 = vst.msk [vmem:[%s2409_s6 + $0x138] sm:$0xff] %vm446_vm1, %v2045_v34 }
 0x1ed   : > { %v1557_v35 = vpop.f32.mrf.mxu1 }
 0x1ee   : > { %1776 = vst.msk [vmem:[%s2409_s6 + $0x130] sm:$0xff] %vm446_vm1, %v1557_v35 }
 0x1ef   : > { %2101 = shalt.err (!%p2098_p3)
}
 0x1f0   : > { %s2102_s25 = scalar_lea.hbm %s2492_s11, 5120  ;;  %s2106_s28 = scalar_lea.hbm %s2545_s3, 20480 }
 0x1f1   : > { %p2103_p4 = scmp.ne.s32.totalorder %s2492_s11, %s2102_s25  ;;  %p2107_p9 = scmp.lt.s32.totalorder %s2492_s11, %s2545_s3 }
 0x1f2   : > { %p2108_p10 = scmp.lt.s32.totalorder %s2106_s28, %s2102_s25 }
 0x1f3   : > { %p2104_p7 = pnand %p2103_p4, %p2211_p5 }
 0x1f4   : > { %p2109_p11 = por %p2108_p10, %p2107_p9 }
 0x1f5   : > { %p2105_p8 = pneg %p2104_p7 }
 0x1f7   : > { %p2110_p12 = pnand %p2109_p11, %p2105_p8 }
 0x1f9   : > { %2113 = shalt.err (!%p2110_p12)
}
 0x1fa   : > { %s2151_s4 = smov 128   ;;  %s2152_s5 = smov 8  }
 0x1fb   : > { %2047 = dma.vmem_to_hbm [thread:$0]  (%p2211_p5), %s2494_s8, 5120, %s2492_s11, %s2502_s16, %s2151_s4, %s2151_s4, %s2152_s5  }
 0x1fc PF: > { %p2053_p13 = scmp.ge.s32.totalorder %s2148_s15, 2  ;;  %s1605_s6 = sand.u32 1, %s2136_s12  }
 0x1fd   : > { %s1606_s7 = scalar_lea.sflag [#allocation3], %s1605_s6 }
 0x1fe   : > { %p2050_p0 = pnand %p2053_p13, %p2215_p6 }
 0x200   : > { %p2051_p1 = pneg %p2050_p0 }
 0x202   : > { %2131 = dma.done.wait (%p2051_p1), %s1606_s7, 5120  }
 0x203   : > { %2133 = vsyncadd (%p2051_p1), %s1606_s7, 4294962176  ;;  %p13_p2 = scmp.ge.s32.totalorder %s2198_s18, 6   ;;  %s2548_s12 = smov %s2140_s13 }
 0x204   : > { %s2549_s13 = smov %s2144_s14  ;;  %s2550_s14 = smov %s2209_s21 }
 0x205   : > { %s2551_s15 = smov %s2198_s18  ;;  %15 = sbr.rel (!%p13_p2) target bundleno = 3 (0x3), region = 75 }
 0x20a   :  { %1611 = vsyncpa [#allocation3], 1 }
 0x20b   :  { %1613 = vsyncpa [#allocation3 + $0x1], 1 }

</bundles_post_ra>
